<compile_context>
chip_gen: v7x
topology: tpu7x:2x2x1
jax: 0.10.0
libtpu: 0.0.40
codegen_flags: <defaults>
</compile_context>

<pallas_src>
import functools

import jax
import jax.numpy as jnp
import numpy as np
from jax import lax
from jax.experimental import pallas as pl
from jax.experimental.pallas import tpu as pltpu

KSIZE = 7
PAD = 3          # kernel_size=7 -> padding=3
LANES = 128

# Budget for the double-buffered input tile (comfortable on v5e's 16 MiB scoped
# default after the vmem_limit raise, and on v7x's 64 MiB physical VMEM).
_IN_BLOCK_BUDGET = 16 * 1024 * 1024


def _round_up(x, m):
    return (x + m - 1) // m * m


def _pick_channel_tile(C, HW, itemsize):
    """Largest legal channel tile whose double-buffered input block fits budget."""
    if C % 8 != 0 or 2 * C * HW * itemsize <= _IN_BLOCK_BUDGET:
        # TODO(synk): if C % 8 != 0 *and* the full-channel block overflows VMEM,
        # fall back to a padded / factored channel tile.
        return C
    best = 8
    for t in range(8, C, 8):
        if C % t == 0 and 2 * t * HW * itemsize <= _IN_BLOCK_BUDGET:
            best = t
    return best


def _separable_masks(H, W, HW_pad):
    """(14, HW_pad) f32: rows 0..6 = row-validity (incl. in-image) per kh,
    rows 7..13 = column-validity per kw, for a 7x7 SAME conv on the flattened
    spatial axis.  Pure shape constants (7x smaller than a per-tap table)."""
    p = np.arange(HW_pad)
    hh = p // W
    ww = p % W
    in_img = p < H * W
    rows = np.zeros((KSIZE, HW_pad), np.float32)
    cols = np.zeros((KSIZE, HW_pad), np.float32)
    for k in range(KSIZE):
        d = k - PAD
        rows[k] = (in_img & (hh + d >= 0) & (hh + d < H)).astype(np.float32)
        cols[k] = ((ww + d >= 0) & (ww + d < W)).astype(np.float32)
    return np.concatenate([rows, cols], axis=0)


def _spatial_attention_kernel(x_ref, w_ref, mask_ref, o_ref, *scratch,
                              C, W, HW, HW_pad, multi_step):
    # x_ref   : (1, TC, HW)       one channel tile of one image (flat spatial)
    # w_ref   : (98,) f32 SMEM    conv weights, index = cin*49 + kh*7 + kw
    # mask_ref: (14, HW_pad) f32  separable edge masks (7 row + 7 col)
    # o_ref   : (1, 1, HW)
    # scratch : [m_sc (1,HW) x.dtype, s_sc (1,HW) f32,]  feat_sc (2, HW_pad) f32
    if multi_step:
        m_sc, s_sc, feat_sc = scratch
    else:
        (feat_sc,) = scratch

    x = x_ref[0]                                                # (TC, HW)
    # Channel max in the input dtype (bf16 native on v6e/v7x); sum in f32.
    blk_max = jnp.max(x, axis=0, keepdims=True)                 # (1, HW)
    blk_sum = jnp.sum(x.astype(jnp.float32), axis=0, keepdims=True)

    def finalize(mx_raw, sum_f32):
        mx = mx_raw.astype(jnp.float32)                         # (1, HW)
        av = sum_f32 * (1.0 / C)                                # (1, HW)
        if HW_pad != HW:
            feat_sc[...] = jnp.zeros_like(feat_sc)              # zero the lane pad
        feat_sc[:, :HW] = jnp.concatenate([mx, av], axis=0)

        f0 = feat_sc[0:1, :]                                    # (1, HW_pad) max row
        f1 = feat_sc[1:2, :]                                    # (1, HW_pad) avg row
        col_m = [mask_ref[KSIZE + kw:KSIZE + kw + 1, :] for kw in range(KSIZE)]

        def rolled(v, delta):
            # out[p] = v[p + delta] (cyclic over HW_pad; out-of-image taps are
            # zeroed by the edge masks / zeroed pad region).
            s = (-delta) % HW_pad
            return v if s == 0 else pltpu.roll(v, shift=s, axis=1)

        conv = jnp.zeros((1, HW_pad), jnp.float32)
        # TODO(synk): chunk this accumulate over lane blocks for very large H*W
        #             to keep the accumulator in vregs instead of spilled VMEM.
        for kh in range(KSIZE):
            dh = kh - PAD
            b0 = rolled(f0, dh * W)
            b1 = rolled(f1, dh * W)
            row_acc = jnp.zeros((1, HW_pad), jnp.float32)
            for kw in range(KSIZE):
                dw = kw - PAD
                t0 = rolled(b0, dw)
                t1 = rolled(b1, dw)
                w0 = w_ref[kh * KSIZE + kw]                      # max-channel weight
                w1 = w_ref[KSIZE * KSIZE + kh * KSIZE + kw]      # avg-channel weight
                row_acc = row_acc + col_m[kw] * (w0 * t0 + w1 * t1)
            conv = conv + mask_ref[kh:kh + 1, :] * row_acc

        conv = conv[:, :HW] if HW_pad != HW else conv
        o_ref[0] = jax.nn.sigmoid(conv).astype(o_ref.dtype)

    if multi_step:
        c = pl.program_id(1)

        @pl.when(c == 0)
        def _init():
            m_sc[...] = blk_max
            s_sc[...] = blk_sum

        @pl.when(c > 0)
        def _accumulate():
            m_sc[...] = jnp.maximum(m_sc[...], blk_max)
            s_sc[...] = s_sc[...] + blk_sum

        @pl.when(c == pl.num_programs(1) - 1)
        def _finalize():
            finalize(m_sc[...], s_sc[...])
    else:
        finalize(blk_max, blk_sum)


def spatial_attention(x, conv_weight, *, channel_tile=None):
    """x: (N, C, H, W); conv_weight: (1, 2, 7, 7) -> (N, 1, H, W)."""
    N, C, H, W = x.shape
    HW = H * W
    HW_pad = _round_up(HW, LANES)
    itemsize = x.dtype.itemsize

    if channel_tile is None:
        TC = _pick_channel_tile(C, HW, itemsize)
    else:
        assert C % channel_tile == 0 and (channel_tile % 8 == 0 or channel_tile == C)
        TC = channel_tile
    n_ct = C // TC
    multi_step = n_ct > 1

    # Lane-dense flattened spatial layout; NO full-tensor pad (an extra HBM
    # read+write pass over x) -- unaligned tails are handled by masked ld/st.
    x_flat = x.reshape(N, C, HW)
    masks = jnp.asarray(_separable_masks(H, W, HW_pad))          # (14, HW_pad)
    w_flat = conv_weight.astype(jnp.float32).reshape(-1)         # (98,) SMEM scalars

    kernel = functools.partial(_spatial_attention_kernel,
                               C=C, W=W, HW=HW, HW_pad=HW_pad,
                               multi_step=multi_step)

    scratch_shapes = []
    if multi_step:
        scratch_shapes += [pltpu.VMEM((1, HW), x.dtype),         # running channel max
                           pltpu.VMEM((1, HW), jnp.float32)]     # running channel sum
    scratch_shapes += [pltpu.VMEM((2, HW_pad), jnp.float32)]     # padded (max, avg)

    # VMEM sizing: double-buffered input + mask table + output + scratch, with
    # slack for finalize temporaries; capped to stay safe on v7x (64 MiB phys).
    est = (2 * TC * HW * itemsize + 2 * int(masks.size) * 4 + 2 * HW * itemsize
           + 2 * HW_pad * 4 + (HW * itemsize + HW * 4 if multi_step else 0))
    vmem_limit = int(min(max(2 * est + (8 << 20), 32 << 20), 48 << 20))

    cost = pl.CostEstimate(
        flops=int(2 * N * C * HW + (4 * KSIZE * KSIZE + 2) * N * HW),
        transcendentals=int(N * HW),
        bytes_accessed=int(x_flat.size * itemsize + masks.size * 4
                           + w_flat.size * 4 + N * HW * itemsize))

    out = pl.pallas_call(
        kernel,
        out_shape=jax.ShapeDtypeStruct((N, 1, HW), x.dtype),
        grid_spec=pltpu.PrefetchScalarGridSpec(
            num_scalar_prefetch=0,
            grid=(N, n_ct),
            in_specs=[
                # one channel tile per step; full-extent (possibly unaligned) HW
                pl.BlockSpec((1, TC, HW), lambda n, c: (n, c, 0)),
                # 98 conv weights as SMEM scalars
                pl.BlockSpec(memory_space=pltpu.MemorySpace.SMEM),
                # separable edge masks: constant index -> fetched once, resident
                pl.BlockSpec((2 * KSIZE, HW_pad), lambda n, c: (0, 0)),
            ],
            out_specs=pl.BlockSpec((1, 1, HW), lambda n, c: (n, 0, 0)),
            scratch_shapes=scratch_shapes,
        ),
        compiler_params=pltpu.CompilerParams(
            dimension_semantics=("parallel", "arbitrary"),
            vmem_limit_bytes=vmem_limit),
        cost_estimate=cost,
    )(x_flat, w_flat, masks)

    return out.reshape(N, 1, H, W)


def _reference(x, conv_weight):
    mx = jnp.max(x, axis=1, keepdims=True)
    av = jnp.mean(x, axis=1, keepdims=True)
    feat = jnp.concatenate([mx, av], axis=1)
    out = lax.conv_general_dilated(
        feat, conv_weight,
        window_strides=(1, 1),
        padding=((PAD, PAD), (PAD, PAD)),
        dimension_numbers=("NCHW", "OIHW", "NCHW"))
    return jax.nn.sigmoid(out)


if __name__ == "__main__":
    key = jax.random.PRNGKey(0)
    kx1, kw, kx2, kx3 = jax.random.split(key, 4)

    # Synthetic conv weight, matches nn.Conv2d(2, 1, 7, padding=3, bias=False)
    conv_weight = (jax.random.normal(kw, (1, 2, KSIZE, KSIZE), dtype=jnp.float32)
                   * (1.0 / (2 * KSIZE * KSIZE) ** 0.5))

    # 1) Primary shape from the module spec (f32, H*W a lane multiple).
    x1 = jax.random.normal(kx1, (2, 4, 16, 16), dtype=jnp.float32)
    out1 = jax.block_until_ready(spatial_attention(x1, conv_weight))
    np.testing.assert_allclose(np.asarray(out1),
                               np.asarray(_reference(x1, conv_weight)),
                               rtol=1e-5, atol=1e-5)

    # 2) H*W not a multiple of 128 + forced channel tiling (multi-step path).
    x2 = jax.random.normal(kx2, (1, 16, 14, 14), dtype=jnp.float32)
    out2 = jax.block_until_ready(spatial_attention(x2, conv_weight, channel_tile=8))
    np.testing.assert_allclose(np.asarray(out2),
                               np.asarray(_reference(x2, conv_weight)),
                               rtol=1e-5, atol=1e-5)

    # 3) bf16 input with unaligned H*W (channel max stays bf16; sum in f32).
    x3 = jax.random.normal(kx3, (2, 8, 14, 14), dtype=jnp.float32).astype(jnp.bfloat16)
    out3 = jax.block_until_ready(spatial_attention(x3, conv_weight))
    ref3 = _reference(x3.astype(jnp.float32), conv_weight)
    np.testing.assert_allclose(np.asarray(out3).astype(np.float32),
                               np.asarray(ref3), rtol=0.0, atol=2e-2)

    print("KERNEL_OK")
</pallas_src>

<mosaic_0001>
module attributes {stable_mosaic.version = 11 : i64} {
  func.func @_spatial_attention_kernel(%arg0: i32, %arg1: i32, %arg2: memref<1x4x256xf32, #tpu.memory_space<vmem>>, %arg3: memref<98xf32, #tpu.memory_space<smem>>, %arg4: memref<14x256xf32, #tpu.memory_space<vmem>>, %arg5: memref<1x1x256xf32, #tpu.memory_space<vmem>>, %arg6: memref<2x256xf32, #tpu.memory_space<vmem>>) attributes {dimension_semantics = [#tpu.dimension_semantics<parallel>, #tpu.dimension_semantics<arbitrary>], iteration_bounds = array<i64: 2, 1>, scalar_prefetch = 0 : i64, scratch_operands = 1 : i64, tpu.core_type = #tpu.core_type<tc>, window_params = [{transform_indices = @transform_0, window_bounds = array<i64: 1, 4, 256>}, {transform_indices = @transform_1, window_bounds = array<i64: 98>}, {pipeline_mode = #tpu.pipeline_mode<synchronous>, transform_indices = @transform_2, window_bounds = array<i64: 14, 256>}, {transform_indices = @transform_3, window_bounds = array<i64: 1, 1, 256>}]} {
    %c0 = arith.constant 0 : index
    %c0_0 = arith.constant 0 : index
    %c0_1 = arith.constant 0 : index
    %0 = vector.load %arg2[%c0, %c0_0, %c0_1] : memref<1x4x256xf32, #tpu.memory_space<vmem>>, vector<1x4x256xf32>
    %1 = vector.shape_cast %0 : vector<1x4x256xf32> to vector<4x256xf32>
    %cst = arith.constant dense<0xFF800000> : vector<256xf32>
    %2 = vector.multi_reduction <maximumf>, %1, %cst [0] : vector<4x256xf32> to vector<256xf32>
    %3 = vector.shape_cast %2 : vector<256xf32> to vector<1x256xf32>
    %cst_2 = arith.constant dense<0.000000e+00> : vector<256xf32>
    %4 = vector.multi_reduction <add>, %1, %cst_2 [0] : vector<4x256xf32> to vector<256xf32>
    %5 = vector.shape_cast %4 : vector<256xf32> to vector<1x256xf32>
    %cst_3 = arith.constant 2.500000e-01 : f32
    %6 = vector.broadcast %cst_3 : f32 to vector<1x256xf32>
    %7 = arith.mulf %5, %6 : vector<1x256xf32>
    %8 = tpu.concatenate %3, %7 in 0 : vector<1x256xf32>, vector<1x256xf32> -> vector<2x256xf32>
    %c0_4 = arith.constant 0 : index
    %c0_5 = arith.constant 0 : index
    %9 = vector.load %arg6[%c0_4, %c0_5] : memref<2x256xf32, #tpu.memory_space<vmem>>, vector<2x256xf32>
    tpu.vector_store %arg6[%c0_4, %c0_5], %8 {strides = array<i32>} : memref<2x256xf32, #tpu.memory_space<vmem>>, vector<2x256xf32>,
    %c0_6 = arith.constant 0 : index
    %c0_7 = arith.constant 0 : index
    %10 = vector.load %arg6[%c0_6, %c0_7] : memref<2x256xf32, #tpu.memory_space<vmem>>, vector<1x256xf32>
    %c1 = arith.constant 1 : index
    %c0_8 = arith.constant 0 : index
    %11 = vector.load %arg6[%c1, %c0_8] : memref<2x256xf32, #tpu.memory_space<vmem>>, vector<1x256xf32>
    %c7 = arith.constant 7 : index
    %c0_9 = arith.constant 0 : index
    %12 = vector.load %arg4[%c7, %c0_9] : memref<14x256xf32, #tpu.memory_space<vmem>>, vector<1x256xf32>
    %c8 = arith.constant 8 : index
    %c0_10 = arith.constant 0 : index
    %13 = vector.load %arg4[%c8, %c0_10] : memref<14x256xf32, #tpu.memory_space<vmem>>, vector<1x256xf32>
    %c9 = arith.constant 9 : index
    %c0_11 = arith.constant 0 : index
    %14 = vector.load %arg4[%c9, %c0_11] : memref<14x256xf32, #tpu.memory_space<vmem>>, vector<1x256xf32>
    %c10 = arith.constant 10 : index
    %c0_12 = arith.constant 0 : index
    %15 = vector.load %arg4[%c10, %c0_12] : memref<14x256xf32, #tpu.memory_space<vmem>>, vector<1x256xf32>
    %c11 = arith.constant 11 : index
    %c0_13 = arith.constant 0 : index
    %16 = vector.load %arg4[%c11, %c0_13] : memref<14x256xf32, #tpu.memory_space<vmem>>, vector<1x256xf32>
    %c12 = arith.constant 12 : index
    %c0_14 = arith.constant 0 : index
    %17 = vector.load %arg4[%c12, %c0_14] : memref<14x256xf32, #tpu.memory_space<vmem>>, vector<1x256xf32>
    %c13 = arith.constant 13 : index
    %c0_15 = arith.constant 0 : index
    %18 = vector.load %arg4[%c13, %c0_15] : memref<14x256xf32, #tpu.memory_space<vmem>>, vector<1x256xf32>
    %cst_16 = arith.constant 0.000000e+00 : f32
    %19 = vector.broadcast %cst_16 : f32 to vector<1x256xf32>
    %c48_i32 = arith.constant 48 : i32
    %20 = tpu.dynamic_rotate %10 by %c48_i32 dim 1 : vector<1x256xf32>, i32 -> vector<1x256xf32>
    %c48_i32_17 = arith.constant 48 : i32
    %21 = tpu.dynamic_rotate %11 by %c48_i32_17 dim 1 : vector<1x256xf32>, i32 -> vector<1x256xf32>
    %cst_18 = arith.constant 0.000000e+00 : f32
    %22 = vector.broadcast %cst_18 : f32 to vector<1x256xf32>
    %c3_i32 = arith.constant 3 : i32
    %23 = tpu.dynamic_rotate %20 by %c3_i32 dim 1 : vector<1x256xf32>, i32 -> vector<1x256xf32>
    %c3_i32_19 = arith.constant 3 : i32
    %24 = tpu.dynamic_rotate %21 by %c3_i32_19 dim 1 : vector<1x256xf32>, i32 -> vector<1x256xf32>
    %c0_20 = arith.constant 0 : index
    %25 = memref.load %arg3[%c0_20] : memref<98xf32, #tpu.memory_space<smem>>
    %c49 = arith.constant 49 : index
    %26 = memref.load %arg3[%c49] : memref<98xf32, #tpu.memory_space<smem>>
    %27 = vector.broadcast %25 : f32 to vector<1x256xf32>
    %28 = arith.mulf %27, %23 : vector<1x256xf32>
    %29 = vector.broadcast %26 : f32 to vector<1x256xf32>
    %30 = arith.mulf %29, %24 : vector<1x256xf32>
    %31 = arith.addf %28, %30 : vector<1x256xf32>
    %32 = arith.mulf %12, %31 : vector<1x256xf32>
    %33 = arith.addf %22, %32 : vector<1x256xf32>
    %c2_i32 = arith.constant 2 : i32
    %34 = tpu.dynamic_rotate %20 by %c2_i32 dim 1 : vector<1x256xf32>, i32 -> vector<1x256xf32>
    %c2_i32_21 = arith.constant 2 : i32
    %35 = tpu.dynamic_rotate %21 by %c2_i32_21 dim 1 : vector<1x256xf32>, i32 -> vector<1x256xf32>
    %c1_22 = arith.constant 1 : index
    %36 = memref.load %arg3[%c1_22] : memref<98xf32, #tpu.memory_space<smem>>
    %c50 = arith.constant 50 : index
    %37 = memref.load %arg3[%c50] : memref<98xf32, #tpu.memory_space<smem>>
    %38 = vector.broadcast %36 : f32 to vector<1x256xf32>
    %39 = arith.mulf %38, %34 : vector<1x256xf32>
    %40 = vector.broadcast %37 : f32 to vector<1x256xf32>
    %41 = arith.mulf %40, %35 : vector<1x256xf32>
    %42 = arith.addf %39, %41 : vector<1x256xf32>
    %43 = arith.mulf %13, %42 : vector<1x256xf32>
    %44 = arith.addf %33, %43 : vector<1x256xf32>
    %c1_i32 = arith.constant 1 : i32
    %45 = tpu.dynamic_rotate %20 by %c1_i32 dim 1 : vector<1x256xf32>, i32 -> vector<1x256xf32>
    %c1_i32_23 = arith.constant 1 : i32
    %46 = tpu.dynamic_rotate %21 by %c1_i32_23 dim 1 : vector<1x256xf32>, i32 -> vector<1x256xf32>
    %c2 = arith.constant 2 : index
    %47 = memref.load %arg3[%c2] : memref<98xf32, #tpu.memory_space<smem>>
    %c51 = arith.constant 51 : index
    %48 = memref.load %arg3[%c51] : memref<98xf32, #tpu.memory_space<smem>>
    %49 = vector.broadcast %47 : f32 to vector<1x256xf32>
    %50 = arith.mulf %49, %45 : vector<1x256xf32>
    %51 = vector.broadcast %48 : f32 to vector<1x256xf32>
    %52 = arith.mulf %51, %46 : vector<1x256xf32>
    %53 = arith.addf %50, %52 : vector<1x256xf32>
    %54 = arith.mulf %14, %53 : vector<1x256xf32>
    %55 = arith.addf %44, %54 : vector<1x256xf32>
    %c3 = arith.constant 3 : index
    %56 = memref.load %arg3[%c3] : memref<98xf32, #tpu.memory_space<smem>>
    %c52 = arith.constant 52 : index
    %57 = memref.load %arg3[%c52] : memref<98xf32, #tpu.memory_space<smem>>
    %58 = vector.broadcast %56 : f32 to vector<1x256xf32>
    %59 = arith.mulf %58, %20 : vector<1x256xf32>
    %60 = vector.broadcast %57 : f32 to vector<1x256xf32>
    %61 = arith.mulf %60, %21 : vector<1x256xf32>
    %62 = arith.addf %59, %61 : vector<1x256xf32>
    %63 = arith.mulf %15, %62 : vector<1x256xf32>
    %64 = arith.addf %55, %63 : vector<1x256xf32>
    %c255_i32 = arith.constant 255 : i32
    %65 = tpu.dynamic_rotate %20 by %c255_i32 dim 1 : vector<1x256xf32>, i32 -> vector<1x256xf32>
    %c255_i32_24 = arith.constant 255 : i32
    %66 = tpu.dynamic_rotate %21 by %c255_i32_24 dim 1 : vector<1x256xf32>, i32 -> vector<1x256xf32>
    %c4 = arith.constant 4 : index
    %67 = memref.load %arg3[%c4] : memref<98xf32, #tpu.memory_space<smem>>
    %c53 = arith.constant 53 : index
    %68 = memref.load %arg3[%c53] : memref<98xf32, #tpu.memory_space<smem>>
    %69 = vector.broadcast %67 : f32 to vector<1x256xf32>
    %70 = arith.mulf %69, %65 : vector<1x256xf32>
    %71 = vector.broadcast %68 : f32 to vector<1x256xf32>
    %72 = arith.mulf %71, %66 : vector<1x256xf32>
    %73 = arith.addf %70, %72 : vector<1x256xf32>
    %74 = arith.mulf %16, %73 : vector<1x256xf32>
    %75 = arith.addf %64, %74 : vector<1x256xf32>
    %c254_i32 = arith.constant 254 : i32
    %76 = tpu.dynamic_rotate %20 by %c254_i32 dim 1 : vector<1x256xf32>, i32 -> vector<1x256xf32>
    %c254_i32_25 = arith.constant 254 : i32
    %77 = tpu.dynamic_rotate %21 by %c254_i32_25 dim 1 : vector<1x256xf32>, i32 -> vector<1x256xf32>
    %c5 = arith.constant 5 : index
    %78 = memref.load %arg3[%c5] : memref<98xf32, #tpu.memory_space<smem>>
    %c54 = arith.constant 54 : index
    %79 = memref.load %arg3[%c54] : memref<98xf32, #tpu.memory_space<smem>>
    %80 = vector.broadcast %78 : f32 to vector<1x256xf32>
    %81 = arith.mulf %80, %76 : vector<1x256xf32>
    %82 = vector.broadcast %79 : f32 to vector<1x256xf32>
    %83 = arith.mulf %82, %77 : vector<1x256xf32>
    %84 = arith.addf %81, %83 : vector<1x256xf32>
    %85 = arith.mulf %17, %84 : vector<1x256xf32>
    %86 = arith.addf %75, %85 : vector<1x256xf32>
    %c253_i32 = arith.constant 253 : i32
    %87 = tpu.dynamic_rotate %20 by %c253_i32 dim 1 : vector<1x256xf32>, i32 -> vector<1x256xf32>
    %c253_i32_26 = arith.constant 253 : i32
    %88 = tpu.dynamic_rotate %21 by %c253_i32_26 dim 1 : vector<1x256xf32>, i32 -> vector<1x256xf32>
    %c6 = arith.constant 6 : index
    %89 = memref.load %arg3[%c6] : memref<98xf32, #tpu.memory_space<smem>>
    %c55 = arith.constant 55 : index
    %90 = memref.load %arg3[%c55] : memref<98xf32, #tpu.memory_space<smem>>
    %91 = vector.broadcast %89 : f32 to vector<1x256xf32>
    %92 = arith.mulf %91, %87 : vector<1x256xf32>
    %93 = vector.broadcast %90 : f32 to vector<1x256xf32>
    %94 = arith.mulf %93, %88 : vector<1x256xf32>
    %95 = arith.addf %92, %94 : vector<1x256xf32>
    %96 = arith.mulf %18, %95 : vector<1x256xf32>
    %97 = arith.addf %86, %96 : vector<1x256xf32>
    %c0_27 = arith.constant 0 : index
    %c0_28 = arith.constant 0 : index
    %98 = vector.load %arg4[%c0_27, %c0_28] : memref<14x256xf32, #tpu.memory_space<vmem>>, vector<1x256xf32>
    %99 = arith.mulf %98, %97 : vector<1x256xf32>
    %100 = arith.addf %19, %99 : vector<1x256xf32>
    %c32_i32 = arith.constant 32 : i32
    %101 = tpu.dynamic_rotate %10 by %c32_i32 dim 1 : vector<1x256xf32>, i32 -> vector<1x256xf32>
    %c32_i32_29 = arith.constant 32 : i32
    %102 = tpu.dynamic_rotate %11 by %c32_i32_29 dim 1 : vector<1x256xf32>, i32 -> vector<1x256xf32>
    %cst_30 = arith.constant 0.000000e+00 : f32
    %103 = vector.broadcast %cst_30 : f32 to vector<1x256xf32>
    %c3_i32_31 = arith.constant 3 : i32
    %104 = tpu.dynamic_rotate %101 by %c3_i32_31 dim 1 : vector<1x256xf32>, i32 -> vector<1x256xf32>
    %c3_i32_32 = arith.constant 3 : i32
    %105 = tpu.dynamic_rotate %102 by %c3_i32_32 dim 1 : vector<1x256xf32>, i32 -> vector<1x256xf32>
    %c7_33 = arith.constant 7 : index
    %106 = memref.load %arg3[%c7_33] : memref<98xf32, #tpu.memory_space<smem>>
    %c56 = arith.constant 56 : index
    %107 = memref.load %arg3[%c56] : memref<98xf32, #tpu.memory_space<smem>>
    %108 = vector.broadcast %106 : f32 to vector<1x256xf32>
    %109 = arith.mulf %108, %104 : vector<1x256xf32>
    %110 = vector.broadcast %107 : f32 to vector<1x256xf32>
    %111 = arith.mulf %110, %105 : vector<1x256xf32>
    %112 = arith.addf %109, %111 : vector<1x256xf32>
    %113 = arith.mulf %12, %112 : vector<1x256xf32>
    %114 = arith.addf %103, %113 : vector<1x256xf32>
    %c2_i32_34 = arith.constant 2 : i32
    %115 = tpu.dynamic_rotate %101 by %c2_i32_34 dim 1 : vector<1x256xf32>, i32 -> vector<1x256xf32>
    %c2_i32_35 = arith.constant 2 : i32
    %116 = tpu.dynamic_rotate %102 by %c2_i32_35 dim 1 : vector<1x256xf32>, i32 -> vector<1x256xf32>
    %c8_36 = arith.constant 8 : index
    %117 = memref.load %arg3[%c8_36] : memref<98xf32, #tpu.memory_space<smem>>
    %c57 = arith.constant 57 : index
    %118 = memref.load %arg3[%c57] : memref<98xf32, #tpu.memory_space<smem>>
    %119 = vector.broadcast %117 : f32 to vector<1x256xf32>
    %120 = arith.mulf %119, %115 : vector<1x256xf32>
    %121 = vector.broadcast %118 : f32 to vector<1x256xf32>
    %122 = arith.mulf %121, %116 : vector<1x256xf32>
    %123 = arith.addf %120, %122 : vector<1x256xf32>
    %124 = arith.mulf %13, %123 : vector<1x256xf32>
    %125 = arith.addf %114, %124 : vector<1x256xf32>
    %c1_i32_37 = arith.constant 1 : i32
    %126 = tpu.dynamic_rotate %101 by %c1_i32_37 dim 1 : vector<1x256xf32>, i32 -> vector<1x256xf32>
    %c1_i32_38 = arith.constant 1 : i32
    %127 = tpu.dynamic_rotate %102 by %c1_i32_38 dim 1 : vector<1x256xf32>, i32 -> vector<1x256xf32>
    %c9_39 = arith.constant 9 : index
    %128 = memref.load %arg3[%c9_39] : memref<98xf32, #tpu.memory_space<smem>>
    %c58 = arith.constant 58 : index
    %129 = memref.load %arg3[%c58] : memref<98xf32, #tpu.memory_space<smem>>
    %130 = vector.broadcast %128 : f32 to vector<1x256xf32>
    %131 = arith.mulf %130, %126 : vector<1x256xf32>
    %132 = vector.broadcast %129 : f32 to vector<1x256xf32>
    %133 = arith.mulf %132, %127 : vector<1x256xf32>
    %134 = arith.addf %131, %133 : vector<1x256xf32>
    %135 = arith.mulf %14, %134 : vector<1x256xf32>
    %136 = arith.addf %125, %135 : vector<1x256xf32>
    %c10_40 = arith.constant 10 : index
    %137 = memref.load %arg3[%c10_40] : memref<98xf32, #tpu.memory_space<smem>>
    %c59 = arith.constant 59 : index
    %138 = memref.load %arg3[%c59] : memref<98xf32, #tpu.memory_space<smem>>
    %139 = vector.broadcast %137 : f32 to vector<1x256xf32>
    %140 = arith.mulf %139, %101 : vector<1x256xf32>
    %141 = vector.broadcast %138 : f32 to vector<1x256xf32>
    %142 = arith.mulf %141, %102 : vector<1x256xf32>
    %143 = arith.addf %140, %142 : vector<1x256xf32>
    %144 = arith.mulf %15, %143 : vector<1x256xf32>
    %145 = arith.addf %136, %144 : vector<1x256xf32>
    %c255_i32_41 = arith.constant 255 : i32
    %146 = tpu.dynamic_rotate %101 by %c255_i32_41 dim 1 : vector<1x256xf32>, i32 -> vector<1x256xf32>
    %c255_i32_42 = arith.constant 255 : i32
    %147 = tpu.dynamic_rotate %102 by %c255_i32_42 dim 1 : vector<1x256xf32>, i32 -> vector<1x256xf32>
    %c11_43 = arith.constant 11 : index
    %148 = memref.load %arg3[%c11_43] : memref<98xf32, #tpu.memory_space<smem>>
    %c60 = arith.constant 60 : index
    %149 = memref.load %arg3[%c60] : memref<98xf32, #tpu.memory_space<smem>>
    %150 = vector.broadcast %148 : f32 to vector<1x256xf32>
    %151 = arith.mulf %150, %146 : vector<1x256xf32>
    %152 = vector.broadcast %149 : f32 to vector<1x256xf32>
    %153 = arith.mulf %152, %147 : vector<1x256xf32>
    %154 = arith.addf %151, %153 : vector<1x256xf32>
    %155 = arith.mulf %16, %154 : vector<1x256xf32>
    %156 = arith.addf %145, %155 : vector<1x256xf32>
    %c254_i32_44 = arith.constant 254 : i32
    %157 = tpu.dynamic_rotate %101 by %c254_i32_44 dim 1 : vector<1x256xf32>, i32 -> vector<1x256xf32>
    %c254_i32_45 = arith.constant 254 : i32
    %158 = tpu.dynamic_rotate %102 by %c254_i32_45 dim 1 : vector<1x256xf32>, i32 -> vector<1x256xf32>
    %c12_46 = arith.constant 12 : index
    %159 = memref.load %arg3[%c12_46] : memref<98xf32, #tpu.memory_space<smem>>
    %c61 = arith.constant 61 : index
    %160 = memref.load %arg3[%c61] : memref<98xf32, #tpu.memory_space<smem>>
    %161 = vector.broadcast %159 : f32 to vector<1x256xf32>
    %162 = arith.mulf %161, %157 : vector<1x256xf32>
    %163 = vector.broadcast %160 : f32 to vector<1x256xf32>
    %164 = arith.mulf %163, %158 : vector<1x256xf32>
    %165 = arith.addf %162, %164 : vector<1x256xf32>
    %166 = arith.mulf %17, %165 : vector<1x256xf32>
    %167 = arith.addf %156, %166 : vector<1x256xf32>
    %c253_i32_47 = arith.constant 253 : i32
    %168 = tpu.dynamic_rotate %101 by %c253_i32_47 dim 1 : vector<1x256xf32>, i32 -> vector<1x256xf32>
    %c253_i32_48 = arith.constant 253 : i32
    %169 = tpu.dynamic_rotate %102 by %c253_i32_48 dim 1 : vector<1x256xf32>, i32 -> vector<1x256xf32>
    %c13_49 = arith.constant 13 : index
    %170 = memref.load %arg3[%c13_49] : memref<98xf32, #tpu.memory_space<smem>>
    %c62 = arith.constant 62 : index
    %171 = memref.load %arg3[%c62] : memref<98xf32, #tpu.memory_space<smem>>
    %172 = vector.broadcast %170 : f32 to vector<1x256xf32>
    %173 = arith.mulf %172, %168 : vector<1x256xf32>
    %174 = vector.broadcast %171 : f32 to vector<1x256xf32>
    %175 = arith.mulf %174, %169 : vector<1x256xf32>
    %176 = arith.addf %173, %175 : vector<1x256xf32>
    %177 = arith.mulf %18, %176 : vector<1x256xf32>
    %178 = arith.addf %167, %177 : vector<1x256xf32>
    %c1_50 = arith.constant 1 : index
    %c0_51 = arith.constant 0 : index
    %179 = vector.load %arg4[%c1_50, %c0_51] : memref<14x256xf32, #tpu.memory_space<vmem>>, vector<1x256xf32>
    %180 = arith.mulf %179, %178 : vector<1x256xf32>
    %181 = arith.addf %100, %180 : vector<1x256xf32>
    %c16_i32 = arith.constant 16 : i32
    %182 = tpu.dynamic_rotate %10 by %c16_i32 dim 1 : vector<1x256xf32>, i32 -> vector<1x256xf32>
    %c16_i32_52 = arith.constant 16 : i32
    %183 = tpu.dynamic_rotate %11 by %c16_i32_52 dim 1 : vector<1x256xf32>, i32 -> vector<1x256xf32>
    %cst_53 = arith.constant 0.000000e+00 : f32
    %184 = vector.broadcast %cst_53 : f32 to vector<1x256xf32>
    %c3_i32_54 = arith.constant 3 : i32
    %185 = tpu.dynamic_rotate %182 by %c3_i32_54 dim 1 : vector<1x256xf32>, i32 -> vector<1x256xf32>
    %c3_i32_55 = arith.constant 3 : i32
    %186 = tpu.dynamic_rotate %183 by %c3_i32_55 dim 1 : vector<1x256xf32>, i32 -> vector<1x256xf32>
    %c14 = arith.constant 14 : index
    %187 = memref.load %arg3[%c14] : memref<98xf32, #tpu.memory_space<smem>>
    %c63 = arith.constant 63 : index
    %188 = memref.load %arg3[%c63] : memref<98xf32, #tpu.memory_space<smem>>
    %189 = vector.broadcast %187 : f32 to vector<1x256xf32>
    %190 = arith.mulf %189, %185 : vector<1x256xf32>
    %191 = vector.broadcast %188 : f32 to vector<1x256xf32>
    %192 = arith.mulf %191, %186 : vector<1x256xf32>
    %193 = arith.addf %190, %192 : vector<1x256xf32>
    %194 = arith.mulf %12, %193 : vector<1x256xf32>
    %195 = arith.addf %184, %194 : vector<1x256xf32>
    %c2_i32_56 = arith.constant 2 : i32
    %196 = tpu.dynamic_rotate %182 by %c2_i32_56 dim 1 : vector<1x256xf32>, i32 -> vector<1x256xf32>
    %c2_i32_57 = arith.constant 2 : i32
    %197 = tpu.dynamic_rotate %183 by %c2_i32_57 dim 1 : vector<1x256xf32>, i32 -> vector<1x256xf32>
    %c15 = arith.constant 15 : index
    %198 = memref.load %arg3[%c15] : memref<98xf32, #tpu.memory_space<smem>>
    %c64 = arith.constant 64 : index
    %199 = memref.load %arg3[%c64] : memref<98xf32, #tpu.memory_space<smem>>
    %200 = vector.broadcast %198 : f32 to vector<1x256xf32>
    %201 = arith.mulf %200, %196 : vector<1x256xf32>
    %202 = vector.broadcast %199 : f32 to vector<1x256xf32>
    %203 = arith.mulf %202, %197 : vector<1x256xf32>
    %204 = arith.addf %201, %203 : vector<1x256xf32>
    %205 = arith.mulf %13, %204 : vector<1x256xf32>
    %206 = arith.addf %195, %205 : vector<1x256xf32>
    %c1_i32_58 = arith.constant 1 : i32
    %207 = tpu.dynamic_rotate %182 by %c1_i32_58 dim 1 : vector<1x256xf32>, i32 -> vector<1x256xf32>
    %c1_i32_59 = arith.constant 1 : i32
    %208 = tpu.dynamic_rotate %183 by %c1_i32_59 dim 1 : vector<1x256xf32>, i32 -> vector<1x256xf32>
    %c16 = arith.constant 16 : index
    %209 = memref.load %arg3[%c16] : memref<98xf32, #tpu.memory_space<smem>>
    %c65 = arith.constant 65 : index
    %210 = memref.load %arg3[%c65] : memref<98xf32, #tpu.memory_space<smem>>
    %211 = vector.broadcast %209 : f32 to vector<1x256xf32>
    %212 = arith.mulf %211, %207 : vector<1x256xf32>
    %213 = vector.broadcast %210 : f32 to vector<1x256xf32>
    %214 = arith.mulf %213, %208 : vector<1x256xf32>
    %215 = arith.addf %212, %214 : vector<1x256xf32>
    %216 = arith.mulf %14, %215 : vector<1x256xf32>
    %217 = arith.addf %206, %216 : vector<1x256xf32>
    %c17 = arith.constant 17 : index
    %218 = memref.load %arg3[%c17] : memref<98xf32, #tpu.memory_space<smem>>
    %c66 = arith.constant 66 : index
    %219 = memref.load %arg3[%c66] : memref<98xf32, #tpu.memory_space<smem>>
    %220 = vector.broadcast %218 : f32 to vector<1x256xf32>
    %221 = arith.mulf %220, %182 : vector<1x256xf32>
    %222 = vector.broadcast %219 : f32 to vector<1x256xf32>
    %223 = arith.mulf %222, %183 : vector<1x256xf32>
    %224 = arith.addf %221, %223 : vector<1x256xf32>
    %225 = arith.mulf %15, %224 : vector<1x256xf32>
    %226 = arith.addf %217, %225 : vector<1x256xf32>
    %c255_i32_60 = arith.constant 255 : i32
    %227 = tpu.dynamic_rotate %182 by %c255_i32_60 dim 1 : vector<1x256xf32>, i32 -> vector<1x256xf32>
    %c255_i32_61 = arith.constant 255 : i32
    %228 = tpu.dynamic_rotate %183 by %c255_i32_61 dim 1 : vector<1x256xf32>, i32 -> vector<1x256xf32>
    %c18 = arith.constant 18 : index
    %229 = memref.load %arg3[%c18] : memref<98xf32, #tpu.memory_space<smem>>
    %c67 = arith.constant 67 : index
    %230 = memref.load %arg3[%c67] : memref<98xf32, #tpu.memory_space<smem>>
    %231 = vector.broadcast %229 : f32 to vector<1x256xf32>
    %232 = arith.mulf %231, %227 : vector<1x256xf32>
    %233 = vector.broadcast %230 : f32 to vector<1x256xf32>
    %234 = arith.mulf %233, %228 : vector<1x256xf32>
    %235 = arith.addf %232, %234 : vector<1x256xf32>
    %236 = arith.mulf %16, %235 : vector<1x256xf32>
    %237 = arith.addf %226, %236 : vector<1x256xf32>
    %c254_i32_62 = arith.constant 254 : i32
    %238 = tpu.dynamic_rotate %182 by %c254_i32_62 dim 1 : vector<1x256xf32>, i32 -> vector<1x256xf32>
    %c254_i32_63 = arith.constant 254 : i32
    %239 = tpu.dynamic_rotate %183 by %c254_i32_63 dim 1 : vector<1x256xf32>, i32 -> vector<1x256xf32>
    %c19 = arith.constant 19 : index
    %240 = memref.load %arg3[%c19] : memref<98xf32, #tpu.memory_space<smem>>
    %c68 = arith.constant 68 : index
    %241 = memref.load %arg3[%c68] : memref<98xf32, #tpu.memory_space<smem>>
    %242 = vector.broadcast %240 : f32 to vector<1x256xf32>
    %243 = arith.mulf %242, %238 : vector<1x256xf32>
    %244 = vector.broadcast %241 : f32 to vector<1x256xf32>
    %245 = arith.mulf %244, %239 : vector<1x256xf32>
    %246 = arith.addf %243, %245 : vector<1x256xf32>
    %247 = arith.mulf %17, %246 : vector<1x256xf32>
    %248 = arith.addf %237, %247 : vector<1x256xf32>
    %c253_i32_64 = arith.constant 253 : i32
    %249 = tpu.dynamic_rotate %182 by %c253_i32_64 dim 1 : vector<1x256xf32>, i32 -> vector<1x256xf32>
    %c253_i32_65 = arith.constant 253 : i32
    %250 = tpu.dynamic_rotate %183 by %c253_i32_65 dim 1 : vector<1x256xf32>, i32 -> vector<1x256xf32>
    %c20 = arith.constant 20 : index
    %251 = memref.load %arg3[%c20] : memref<98xf32, #tpu.memory_space<smem>>
    %c69 = arith.constant 69 : index
    %252 = memref.load %arg3[%c69] : memref<98xf32, #tpu.memory_space<smem>>
    %253 = vector.broadcast %251 : f32 to vector<1x256xf32>
    %254 = arith.mulf %253, %249 : vector<1x256xf32>
    %255 = vector.broadcast %252 : f32 to vector<1x256xf32>
    %256 = arith.mulf %255, %250 : vector<1x256xf32>
    %257 = arith.addf %254, %256 : vector<1x256xf32>
    %258 = arith.mulf %18, %257 : vector<1x256xf32>
    %259 = arith.addf %248, %258 : vector<1x256xf32>
    %c2_66 = arith.constant 2 : index
    %c0_67 = arith.constant 0 : index
    %260 = vector.load %arg4[%c2_66, %c0_67] : memref<14x256xf32, #tpu.memory_space<vmem>>, vector<1x256xf32>
    %261 = arith.mulf %260, %259 : vector<1x256xf32>
    %262 = arith.addf %181, %261 : vector<1x256xf32>
    %cst_68 = arith.constant 0.000000e+00 : f32
    %263 = vector.broadcast %cst_68 : f32 to vector<1x256xf32>
    %c3_i32_69 = arith.constant 3 : i32
    %264 = tpu.dynamic_rotate %10 by %c3_i32_69 dim 1 : vector<1x256xf32>, i32 -> vector<1x256xf32>
    %c3_i32_70 = arith.constant 3 : i32
    %265 = tpu.dynamic_rotate %11 by %c3_i32_70 dim 1 : vector<1x256xf32>, i32 -> vector<1x256xf32>
    %c21 = arith.constant 21 : index
    %266 = memref.load %arg3[%c21] : memref<98xf32, #tpu.memory_space<smem>>
    %c70 = arith.constant 70 : index
    %267 = memref.load %arg3[%c70] : memref<98xf32, #tpu.memory_space<smem>>
    %268 = vector.broadcast %266 : f32 to vector<1x256xf32>
    %269 = arith.mulf %268, %264 : vector<1x256xf32>
    %270 = vector.broadcast %267 : f32 to vector<1x256xf32>
    %271 = arith.mulf %270, %265 : vector<1x256xf32>
    %272 = arith.addf %269, %271 : vector<1x256xf32>
    %273 = arith.mulf %12, %272 : vector<1x256xf32>
    %274 = arith.addf %263, %273 : vector<1x256xf32>
    %c2_i32_71 = arith.constant 2 : i32
    %275 = tpu.dynamic_rotate %10 by %c2_i32_71 dim 1 : vector<1x256xf32>, i32 -> vector<1x256xf32>
    %c2_i32_72 = arith.constant 2 : i32
    %276 = tpu.dynamic_rotate %11 by %c2_i32_72 dim 1 : vector<1x256xf32>, i32 -> vector<1x256xf32>
    %c22 = arith.constant 22 : index
    %277 = memref.load %arg3[%c22] : memref<98xf32, #tpu.memory_space<smem>>
    %c71 = arith.constant 71 : index
    %278 = memref.load %arg3[%c71] : memref<98xf32, #tpu.memory_space<smem>>
    %279 = vector.broadcast %277 : f32 to vector<1x256xf32>
    %280 = arith.mulf %279, %275 : vector<1x256xf32>
    %281 = vector.broadcast %278 : f32 to vector<1x256xf32>
    %282 = arith.mulf %281, %276 : vector<1x256xf32>
    %283 = arith.addf %280, %282 : vector<1x256xf32>
    %284 = arith.mulf %13, %283 : vector<1x256xf32>
    %285 = arith.addf %274, %284 : vector<1x256xf32>
    %c1_i32_73 = arith.constant 1 : i32
    %286 = tpu.dynamic_rotate %10 by %c1_i32_73 dim 1 : vector<1x256xf32>, i32 -> vector<1x256xf32>
    %c1_i32_74 = arith.constant 1 : i32
    %287 = tpu.dynamic_rotate %11 by %c1_i32_74 dim 1 : vector<1x256xf32>, i32 -> vector<1x256xf32>
    %c23 = arith.constant 23 : index
    %288 = memref.load %arg3[%c23] : memref<98xf32, #tpu.memory_space<smem>>
    %c72 = arith.constant 72 : index
    %289 = memref.load %arg3[%c72] : memref<98xf32, #tpu.memory_space<smem>>
    %290 = vector.broadcast %288 : f32 to vector<1x256xf32>
    %291 = arith.mulf %290, %286 : vector<1x256xf32>
    %292 = vector.broadcast %289 : f32 to vector<1x256xf32>
    %293 = arith.mulf %292, %287 : vector<1x256xf32>
    %294 = arith.addf %291, %293 : vector<1x256xf32>
    %295 = arith.mulf %14, %294 : vector<1x256xf32>
    %296 = arith.addf %285, %295 : vector<1x256xf32>
    %c24 = arith.constant 24 : index
    %297 = memref.load %arg3[%c24] : memref<98xf32, #tpu.memory_space<smem>>
    %c73 = arith.constant 73 : index
    %298 = memref.load %arg3[%c73] : memref<98xf32, #tpu.memory_space<smem>>
    %299 = vector.broadcast %297 : f32 to vector<1x256xf32>
    %300 = arith.mulf %299, %10 : vector<1x256xf32>
    %301 = vector.broadcast %298 : f32 to vector<1x256xf32>
    %302 = arith.mulf %301, %11 : vector<1x256xf32>
    %303 = arith.addf %300, %302 : vector<1x256xf32>
    %304 = arith.mulf %15, %303 : vector<1x256xf32>
    %305 = arith.addf %296, %304 : vector<1x256xf32>
    %c255_i32_75 = arith.constant 255 : i32
    %306 = tpu.dynamic_rotate %10 by %c255_i32_75 dim 1 : vector<1x256xf32>, i32 -> vector<1x256xf32>
    %c255_i32_76 = arith.constant 255 : i32
    %307 = tpu.dynamic_rotate %11 by %c255_i32_76 dim 1 : vector<1x256xf32>, i32 -> vector<1x256xf32>
    %c25 = arith.constant 25 : index
    %308 = memref.load %arg3[%c25] : memref<98xf32, #tpu.memory_space<smem>>
    %c74 = arith.constant 74 : index
    %309 = memref.load %arg3[%c74] : memref<98xf32, #tpu.memory_space<smem>>
    %310 = vector.broadcast %308 : f32 to vector<1x256xf32>
    %311 = arith.mulf %310, %306 : vector<1x256xf32>
    %312 = vector.broadcast %309 : f32 to vector<1x256xf32>
    %313 = arith.mulf %312, %307 : vector<1x256xf32>
    %314 = arith.addf %311, %313 : vector<1x256xf32>
    %315 = arith.mulf %16, %314 : vector<1x256xf32>
    %316 = arith.addf %305, %315 : vector<1x256xf32>
    %c254_i32_77 = arith.constant 254 : i32
    %317 = tpu.dynamic_rotate %10 by %c254_i32_77 dim 1 : vector<1x256xf32>, i32 -> vector<1x256xf32>
    %c254_i32_78 = arith.constant 254 : i32
    %318 = tpu.dynamic_rotate %11 by %c254_i32_78 dim 1 : vector<1x256xf32>, i32 -> vector<1x256xf32>
    %c26 = arith.constant 26 : index
    %319 = memref.load %arg3[%c26] : memref<98xf32, #tpu.memory_space<smem>>
    %c75 = arith.constant 75 : index
    %320 = memref.load %arg3[%c75] : memref<98xf32, #tpu.memory_space<smem>>
    %321 = vector.broadcast %319 : f32 to vector<1x256xf32>
    %322 = arith.mulf %321, %317 : vector<1x256xf32>
    %323 = vector.broadcast %320 : f32 to vector<1x256xf32>
    %324 = arith.mulf %323, %318 : vector<1x256xf32>
    %325 = arith.addf %322, %324 : vector<1x256xf32>
    %326 = arith.mulf %17, %325 : vector<1x256xf32>
    %327 = arith.addf %316, %326 : vector<1x256xf32>
    %c253_i32_79 = arith.constant 253 : i32
    %328 = tpu.dynamic_rotate %10 by %c253_i32_79 dim 1 : vector<1x256xf32>, i32 -> vector<1x256xf32>
    %c253_i32_80 = arith.constant 253 : i32
    %329 = tpu.dynamic_rotate %11 by %c253_i32_80 dim 1 : vector<1x256xf32>, i32 -> vector<1x256xf32>
    %c27 = arith.constant 27 : index
    %330 = memref.load %arg3[%c27] : memref<98xf32, #tpu.memory_space<smem>>
    %c76 = arith.constant 76 : index
    %331 = memref.load %arg3[%c76] : memref<98xf32, #tpu.memory_space<smem>>
    %332 = vector.broadcast %330 : f32 to vector<1x256xf32>
    %333 = arith.mulf %332, %328 : vector<1x256xf32>
    %334 = vector.broadcast %331 : f32 to vector<1x256xf32>
    %335 = arith.mulf %334, %329 : vector<1x256xf32>
    %336 = arith.addf %333, %335 : vector<1x256xf32>
    %337 = arith.mulf %18, %336 : vector<1x256xf32>
    %338 = arith.addf %327, %337 : vector<1x256xf32>
    %c3_81 = arith.constant 3 : index
    %c0_82 = arith.constant 0 : index
    %339 = vector.load %arg4[%c3_81, %c0_82] : memref<14x256xf32, #tpu.memory_space<vmem>>, vector<1x256xf32>
    %340 = arith.mulf %339, %338 : vector<1x256xf32>
    %341 = arith.addf %262, %340 : vector<1x256xf32>
    %c240_i32 = arith.constant 240 : i32
    %342 = tpu.dynamic_rotate %10 by %c240_i32 dim 1 : vector<1x256xf32>, i32 -> vector<1x256xf32>
    %c240_i32_83 = arith.constant 240 : i32
    %343 = tpu.dynamic_rotate %11 by %c240_i32_83 dim 1 : vector<1x256xf32>, i32 -> vector<1x256xf32>
    %cst_84 = arith.constant 0.000000e+00 : f32
    %344 = vector.broadcast %cst_84 : f32 to vector<1x256xf32>
    %c3_i32_85 = arith.constant 3 : i32
    %345 = tpu.dynamic_rotate %342 by %c3_i32_85 dim 1 : vector<1x256xf32>, i32 -> vector<1x256xf32>
    %c3_i32_86 = arith.constant 3 : i32
    %346 = tpu.dynamic_rotate %343 by %c3_i32_86 dim 1 : vector<1x256xf32>, i32 -> vector<1x256xf32>
    %c28 = arith.constant 28 : index
    %347 = memref.load %arg3[%c28] : memref<98xf32, #tpu.memory_space<smem>>
    %c77 = arith.constant 77 : index
    %348 = memref.load %arg3[%c77] : memref<98xf32, #tpu.memory_space<smem>>
    %349 = vector.broadcast %347 : f32 to vector<1x256xf32>
    %350 = arith.mulf %349, %345 : vector<1x256xf32>
    %351 = vector.broadcast %348 : f32 to vector<1x256xf32>
    %352 = arith.mulf %351, %346 : vector<1x256xf32>
    %353 = arith.addf %350, %352 : vector<1x256xf32>
    %354 = arith.mulf %12, %353 : vector<1x256xf32>
    %355 = arith.addf %344, %354 : vector<1x256xf32>
    %c2_i32_87 = arith.constant 2 : i32
    %356 = tpu.dynamic_rotate %342 by %c2_i32_87 dim 1 : vector<1x256xf32>, i32 -> vector<1x256xf32>
    %c2_i32_88 = arith.constant 2 : i32
    %357 = tpu.dynamic_rotate %343 by %c2_i32_88 dim 1 : vector<1x256xf32>, i32 -> vector<1x256xf32>
    %c29 = arith.constant 29 : index
    %358 = memref.load %arg3[%c29] : memref<98xf32, #tpu.memory_space<smem>>
    %c78 = arith.constant 78 : index
    %359 = memref.load %arg3[%c78] : memref<98xf32, #tpu.memory_space<smem>>
    %360 = vector.broadcast %358 : f32 to vector<1x256xf32>
    %361 = arith.mulf %360, %356 : vector<1x256xf32>
    %362 = vector.broadcast %359 : f32 to vector<1x256xf32>
    %363 = arith.mulf %362, %357 : vector<1x256xf32>
    %364 = arith.addf %361, %363 : vector<1x256xf32>
    %365 = arith.mulf %13, %364 : vector<1x256xf32>
    %366 = arith.addf %355, %365 : vector<1x256xf32>
    %c1_i32_89 = arith.constant 1 : i32
    %367 = tpu.dynamic_rotate %342 by %c1_i32_89 dim 1 : vector<1x256xf32>, i32 -> vector<1x256xf32>
    %c1_i32_90 = arith.constant 1 : i32
    %368 = tpu.dynamic_rotate %343 by %c1_i32_90 dim 1 : vector<1x256xf32>, i32 -> vector<1x256xf32>
    %c30 = arith.constant 30 : index
    %369 = memref.load %arg3[%c30] : memref<98xf32, #tpu.memory_space<smem>>
    %c79 = arith.constant 79 : index
    %370 = memref.load %arg3[%c79] : memref<98xf32, #tpu.memory_space<smem>>
    %371 = vector.broadcast %369 : f32 to vector<1x256xf32>
    %372 = arith.mulf %371, %367 : vector<1x256xf32>
    %373 = vector.broadcast %370 : f32 to vector<1x256xf32>
    %374 = arith.mulf %373, %368 : vector<1x256xf32>
    %375 = arith.addf %372, %374 : vector<1x256xf32>
    %376 = arith.mulf %14, %375 : vector<1x256xf32>
    %377 = arith.addf %366, %376 : vector<1x256xf32>
    %c31 = arith.constant 31 : index
    %378 = memref.load %arg3[%c31] : memref<98xf32, #tpu.memory_space<smem>>
    %c80 = arith.constant 80 : index
    %379 = memref.load %arg3[%c80] : memref<98xf32, #tpu.memory_space<smem>>
    %380 = vector.broadcast %378 : f32 to vector<1x256xf32>
    %381 = arith.mulf %380, %342 : vector<1x256xf32>
    %382 = vector.broadcast %379 : f32 to vector<1x256xf32>
    %383 = arith.mulf %382, %343 : vector<1x256xf32>
    %384 = arith.addf %381, %383 : vector<1x256xf32>
    %385 = arith.mulf %15, %384 : vector<1x256xf32>
    %386 = arith.addf %377, %385 : vector<1x256xf32>
    %c255_i32_91 = arith.constant 255 : i32
    %387 = tpu.dynamic_rotate %342 by %c255_i32_91 dim 1 : vector<1x256xf32>, i32 -> vector<1x256xf32>
    %c255_i32_92 = arith.constant 255 : i32
    %388 = tpu.dynamic_rotate %343 by %c255_i32_92 dim 1 : vector<1x256xf32>, i32 -> vector<1x256xf32>
    %c32 = arith.constant 32 : index
    %389 = memref.load %arg3[%c32] : memref<98xf32, #tpu.memory_space<smem>>
    %c81 = arith.constant 81 : index
    %390 = memref.load %arg3[%c81] : memref<98xf32, #tpu.memory_space<smem>>
    %391 = vector.broadcast %389 : f32 to vector<1x256xf32>
    %392 = arith.mulf %391, %387 : vector<1x256xf32>
    %393 = vector.broadcast %390 : f32 to vector<1x256xf32>
    %394 = arith.mulf %393, %388 : vector<1x256xf32>
    %395 = arith.addf %392, %394 : vector<1x256xf32>
    %396 = arith.mulf %16, %395 : vector<1x256xf32>
    %397 = arith.addf %386, %396 : vector<1x256xf32>
    %c254_i32_93 = arith.constant 254 : i32
    %398 = tpu.dynamic_rotate %342 by %c254_i32_93 dim 1 : vector<1x256xf32>, i32 -> vector<1x256xf32>
    %c254_i32_94 = arith.constant 254 : i32
    %399 = tpu.dynamic_rotate %343 by %c254_i32_94 dim 1 : vector<1x256xf32>, i32 -> vector<1x256xf32>
    %c33 = arith.constant 33 : index
    %400 = memref.load %arg3[%c33] : memref<98xf32, #tpu.memory_space<smem>>
    %c82 = arith.constant 82 : index
    %401 = memref.load %arg3[%c82] : memref<98xf32, #tpu.memory_space<smem>>
    %402 = vector.broadcast %400 : f32 to vector<1x256xf32>
    %403 = arith.mulf %402, %398 : vector<1x256xf32>
    %404 = vector.broadcast %401 : f32 to vector<1x256xf32>
    %405 = arith.mulf %404, %399 : vector<1x256xf32>
    %406 = arith.addf %403, %405 : vector<1x256xf32>
    %407 = arith.mulf %17, %406 : vector<1x256xf32>
    %408 = arith.addf %397, %407 : vector<1x256xf32>
    %c253_i32_95 = arith.constant 253 : i32
    %409 = tpu.dynamic_rotate %342 by %c253_i32_95 dim 1 : vector<1x256xf32>, i32 -> vector<1x256xf32>
    %c253_i32_96 = arith.constant 253 : i32
    %410 = tpu.dynamic_rotate %343 by %c253_i32_96 dim 1 : vector<1x256xf32>, i32 -> vector<1x256xf32>
    %c34 = arith.constant 34 : index
    %411 = memref.load %arg3[%c34] : memref<98xf32, #tpu.memory_space<smem>>
    %c83 = arith.constant 83 : index
    %412 = memref.load %arg3[%c83] : memref<98xf32, #tpu.memory_space<smem>>
    %413 = vector.broadcast %411 : f32 to vector<1x256xf32>
    %414 = arith.mulf %413, %409 : vector<1x256xf32>
    %415 = vector.broadcast %412 : f32 to vector<1x256xf32>
    %416 = arith.mulf %415, %410 : vector<1x256xf32>
    %417 = arith.addf %414, %416 : vector<1x256xf32>
    %418 = arith.mulf %18, %417 : vector<1x256xf32>
    %419 = arith.addf %408, %418 : vector<1x256xf32>
    %c4_97 = arith.constant 4 : index
    %c0_98 = arith.constant 0 : index
    %420 = vector.load %arg4[%c4_97, %c0_98] : memref<14x256xf32, #tpu.memory_space<vmem>>, vector<1x256xf32>
    %421 = arith.mulf %420, %419 : vector<1x256xf32>
    %422 = arith.addf %341, %421 : vector<1x256xf32>
    %c224_i32 = arith.constant 224 : i32
    %423 = tpu.dynamic_rotate %10 by %c224_i32 dim 1 : vector<1x256xf32>, i32 -> vector<1x256xf32>
    %c224_i32_99 = arith.constant 224 : i32
    %424 = tpu.dynamic_rotate %11 by %c224_i32_99 dim 1 : vector<1x256xf32>, i32 -> vector<1x256xf32>
    %cst_100 = arith.constant 0.000000e+00 : f32
    %425 = vector.broadcast %cst_100 : f32 to vector<1x256xf32>
    %c3_i32_101 = arith.constant 3 : i32
    %426 = tpu.dynamic_rotate %423 by %c3_i32_101 dim 1 : vector<1x256xf32>, i32 -> vector<1x256xf32>
    %c3_i32_102 = arith.constant 3 : i32
    %427 = tpu.dynamic_rotate %424 by %c3_i32_102 dim 1 : vector<1x256xf32>, i32 -> vector<1x256xf32>
    %c35 = arith.constant 35 : index
    %428 = memref.load %arg3[%c35] : memref<98xf32, #tpu.memory_space<smem>>
    %c84 = arith.constant 84 : index
    %429 = memref.load %arg3[%c84] : memref<98xf32, #tpu.memory_space<smem>>
    %430 = vector.broadcast %428 : f32 to vector<1x256xf32>
    %431 = arith.mulf %430, %426 : vector<1x256xf32>
    %432 = vector.broadcast %429 : f32 to vector<1x256xf32>
    %433 = arith.mulf %432, %427 : vector<1x256xf32>
    %434 = arith.addf %431, %433 : vector<1x256xf32>
    %435 = arith.mulf %12, %434 : vector<1x256xf32>
    %436 = arith.addf %425, %435 : vector<1x256xf32>
    %c2_i32_103 = arith.constant 2 : i32
    %437 = tpu.dynamic_rotate %423 by %c2_i32_103 dim 1 : vector<1x256xf32>, i32 -> vector<1x256xf32>
    %c2_i32_104 = arith.constant 2 : i32
    %438 = tpu.dynamic_rotate %424 by %c2_i32_104 dim 1 : vector<1x256xf32>, i32 -> vector<1x256xf32>
    %c36 = arith.constant 36 : index
    %439 = memref.load %arg3[%c36] : memref<98xf32, #tpu.memory_space<smem>>
    %c85 = arith.constant 85 : index
    %440 = memref.load %arg3[%c85] : memref<98xf32, #tpu.memory_space<smem>>
    %441 = vector.broadcast %439 : f32 to vector<1x256xf32>
    %442 = arith.mulf %441, %437 : vector<1x256xf32>
    %443 = vector.broadcast %440 : f32 to vector<1x256xf32>
    %444 = arith.mulf %443, %438 : vector<1x256xf32>
    %445 = arith.addf %442, %444 : vector<1x256xf32>
    %446 = arith.mulf %13, %445 : vector<1x256xf32>
    %447 = arith.addf %436, %446 : vector<1x256xf32>
    %c1_i32_105 = arith.constant 1 : i32
    %448 = tpu.dynamic_rotate %423 by %c1_i32_105 dim 1 : vector<1x256xf32>, i32 -> vector<1x256xf32>
    %c1_i32_106 = arith.constant 1 : i32
    %449 = tpu.dynamic_rotate %424 by %c1_i32_106 dim 1 : vector<1x256xf32>, i32 -> vector<1x256xf32>
    %c37 = arith.constant 37 : index
    %450 = memref.load %arg3[%c37] : memref<98xf32, #tpu.memory_space<smem>>
    %c86 = arith.constant 86 : index
    %451 = memref.load %arg3[%c86] : memref<98xf32, #tpu.memory_space<smem>>
    %452 = vector.broadcast %450 : f32 to vector<1x256xf32>
    %453 = arith.mulf %452, %448 : vector<1x256xf32>
    %454 = vector.broadcast %451 : f32 to vector<1x256xf32>
    %455 = arith.mulf %454, %449 : vector<1x256xf32>
    %456 = arith.addf %453, %455 : vector<1x256xf32>
    %457 = arith.mulf %14, %456 : vector<1x256xf32>
    %458 = arith.addf %447, %457 : vector<1x256xf32>
    %c38 = arith.constant 38 : index
    %459 = memref.load %arg3[%c38] : memref<98xf32, #tpu.memory_space<smem>>
    %c87 = arith.constant 87 : index
    %460 = memref.load %arg3[%c87] : memref<98xf32, #tpu.memory_space<smem>>
    %461 = vector.broadcast %459 : f32 to vector<1x256xf32>
    %462 = arith.mulf %461, %423 : vector<1x256xf32>
    %463 = vector.broadcast %460 : f32 to vector<1x256xf32>
    %464 = arith.mulf %463, %424 : vector<1x256xf32>
    %465 = arith.addf %462, %464 : vector<1x256xf32>
    %466 = arith.mulf %15, %465 : vector<1x256xf32>
    %467 = arith.addf %458, %466 : vector<1x256xf32>
    %c255_i32_107 = arith.constant 255 : i32
    %468 = tpu.dynamic_rotate %423 by %c255_i32_107 dim 1 : vector<1x256xf32>, i32 -> vector<1x256xf32>
    %c255_i32_108 = arith.constant 255 : i32
    %469 = tpu.dynamic_rotate %424 by %c255_i32_108 dim 1 : vector<1x256xf32>, i32 -> vector<1x256xf32>
    %c39 = arith.constant 39 : index
    %470 = memref.load %arg3[%c39] : memref<98xf32, #tpu.memory_space<smem>>
    %c88 = arith.constant 88 : index
    %471 = memref.load %arg3[%c88] : memref<98xf32, #tpu.memory_space<smem>>
    %472 = vector.broadcast %470 : f32 to vector<1x256xf32>
    %473 = arith.mulf %472, %468 : vector<1x256xf32>
    %474 = vector.broadcast %471 : f32 to vector<1x256xf32>
    %475 = arith.mulf %474, %469 : vector<1x256xf32>
    %476 = arith.addf %473, %475 : vector<1x256xf32>
    %477 = arith.mulf %16, %476 : vector<1x256xf32>
    %478 = arith.addf %467, %477 : vector<1x256xf32>
    %c254_i32_109 = arith.constant 254 : i32
    %479 = tpu.dynamic_rotate %423 by %c254_i32_109 dim 1 : vector<1x256xf32>, i32 -> vector<1x256xf32>
    %c254_i32_110 = arith.constant 254 : i32
    %480 = tpu.dynamic_rotate %424 by %c254_i32_110 dim 1 : vector<1x256xf32>, i32 -> vector<1x256xf32>
    %c40 = arith.constant 40 : index
    %481 = memref.load %arg3[%c40] : memref<98xf32, #tpu.memory_space<smem>>
    %c89 = arith.constant 89 : index
    %482 = memref.load %arg3[%c89] : memref<98xf32, #tpu.memory_space<smem>>
    %483 = vector.broadcast %481 : f32 to vector<1x256xf32>
    %484 = arith.mulf %483, %479 : vector<1x256xf32>
    %485 = vector.broadcast %482 : f32 to vector<1x256xf32>
    %486 = arith.mulf %485, %480 : vector<1x256xf32>
    %487 = arith.addf %484, %486 : vector<1x256xf32>
    %488 = arith.mulf %17, %487 : vector<1x256xf32>
    %489 = arith.addf %478, %488 : vector<1x256xf32>
    %c253_i32_111 = arith.constant 253 : i32
    %490 = tpu.dynamic_rotate %423 by %c253_i32_111 dim 1 : vector<1x256xf32>, i32 -> vector<1x256xf32>
    %c253_i32_112 = arith.constant 253 : i32
    %491 = tpu.dynamic_rotate %424 by %c253_i32_112 dim 1 : vector<1x256xf32>, i32 -> vector<1x256xf32>
    %c41 = arith.constant 41 : index
    %492 = memref.load %arg3[%c41] : memref<98xf32, #tpu.memory_space<smem>>
    %c90 = arith.constant 90 : index
    %493 = memref.load %arg3[%c90] : memref<98xf32, #tpu.memory_space<smem>>
    %494 = vector.broadcast %492 : f32 to vector<1x256xf32>
    %495 = arith.mulf %494, %490 : vector<1x256xf32>
    %496 = vector.broadcast %493 : f32 to vector<1x256xf32>
    %497 = arith.mulf %496, %491 : vector<1x256xf32>
    %498 = arith.addf %495, %497 : vector<1x256xf32>
    %499 = arith.mulf %18, %498 : vector<1x256xf32>
    %500 = arith.addf %489, %499 : vector<1x256xf32>
    %c5_113 = arith.constant 5 : index
    %c0_114 = arith.constant 0 : index
    %501 = vector.load %arg4[%c5_113, %c0_114] : memref<14x256xf32, #tpu.memory_space<vmem>>, vector<1x256xf32>
    %502 = arith.mulf %501, %500 : vector<1x256xf32>
    %503 = arith.addf %422, %502 : vector<1x256xf32>
    %c208_i32 = arith.constant 208 : i32
    %504 = tpu.dynamic_rotate %10 by %c208_i32 dim 1 : vector<1x256xf32>, i32 -> vector<1x256xf32>
    %c208_i32_115 = arith.constant 208 : i32
    %505 = tpu.dynamic_rotate %11 by %c208_i32_115 dim 1 : vector<1x256xf32>, i32 -> vector<1x256xf32>
    %cst_116 = arith.constant 0.000000e+00 : f32
    %506 = vector.broadcast %cst_116 : f32 to vector<1x256xf32>
    %c3_i32_117 = arith.constant 3 : i32
    %507 = tpu.dynamic_rotate %504 by %c3_i32_117 dim 1 : vector<1x256xf32>, i32 -> vector<1x256xf32>
    %c3_i32_118 = arith.constant 3 : i32
    %508 = tpu.dynamic_rotate %505 by %c3_i32_118 dim 1 : vector<1x256xf32>, i32 -> vector<1x256xf32>
    %c42 = arith.constant 42 : index
    %509 = memref.load %arg3[%c42] : memref<98xf32, #tpu.memory_space<smem>>
    %c91 = arith.constant 91 : index
    %510 = memref.load %arg3[%c91] : memref<98xf32, #tpu.memory_space<smem>>
    %511 = vector.broadcast %509 : f32 to vector<1x256xf32>
    %512 = arith.mulf %511, %507 : vector<1x256xf32>
    %513 = vector.broadcast %510 : f32 to vector<1x256xf32>
    %514 = arith.mulf %513, %508 : vector<1x256xf32>
    %515 = arith.addf %512, %514 : vector<1x256xf32>
    %516 = arith.mulf %12, %515 : vector<1x256xf32>
    %517 = arith.addf %506, %516 : vector<1x256xf32>
    %c2_i32_119 = arith.constant 2 : i32
    %518 = tpu.dynamic_rotate %504 by %c2_i32_119 dim 1 : vector<1x256xf32>, i32 -> vector<1x256xf32>
    %c2_i32_120 = arith.constant 2 : i32
    %519 = tpu.dynamic_rotate %505 by %c2_i32_120 dim 1 : vector<1x256xf32>, i32 -> vector<1x256xf32>
    %c43 = arith.constant 43 : index
    %520 = memref.load %arg3[%c43] : memref<98xf32, #tpu.memory_space<smem>>
    %c92 = arith.constant 92 : index
    %521 = memref.load %arg3[%c92] : memref<98xf32, #tpu.memory_space<smem>>
    %522 = vector.broadcast %520 : f32 to vector<1x256xf32>
    %523 = arith.mulf %522, %518 : vector<1x256xf32>
    %524 = vector.broadcast %521 : f32 to vector<1x256xf32>
    %525 = arith.mulf %524, %519 : vector<1x256xf32>
    %526 = arith.addf %523, %525 : vector<1x256xf32>
    %527 = arith.mulf %13, %526 : vector<1x256xf32>
    %528 = arith.addf %517, %527 : vector<1x256xf32>
    %c1_i32_121 = arith.constant 1 : i32
    %529 = tpu.dynamic_rotate %504 by %c1_i32_121 dim 1 : vector<1x256xf32>, i32 -> vector<1x256xf32>
    %c1_i32_122 = arith.constant 1 : i32
    %530 = tpu.dynamic_rotate %505 by %c1_i32_122 dim 1 : vector<1x256xf32>, i32 -> vector<1x256xf32>
    %c44 = arith.constant 44 : index
    %531 = memref.load %arg3[%c44] : memref<98xf32, #tpu.memory_space<smem>>
    %c93 = arith.constant 93 : index
    %532 = memref.load %arg3[%c93] : memref<98xf32, #tpu.memory_space<smem>>
    %533 = vector.broadcast %531 : f32 to vector<1x256xf32>
    %534 = arith.mulf %533, %529 : vector<1x256xf32>
    %535 = vector.broadcast %532 : f32 to vector<1x256xf32>
    %536 = arith.mulf %535, %530 : vector<1x256xf32>
    %537 = arith.addf %534, %536 : vector<1x256xf32>
    %538 = arith.mulf %14, %537 : vector<1x256xf32>
    %539 = arith.addf %528, %538 : vector<1x256xf32>
    %c45 = arith.constant 45 : index
    %540 = memref.load %arg3[%c45] : memref<98xf32, #tpu.memory_space<smem>>
    %c94 = arith.constant 94 : index
    %541 = memref.load %arg3[%c94] : memref<98xf32, #tpu.memory_space<smem>>
    %542 = vector.broadcast %540 : f32 to vector<1x256xf32>
    %543 = arith.mulf %542, %504 : vector<1x256xf32>
    %544 = vector.broadcast %541 : f32 to vector<1x256xf32>
    %545 = arith.mulf %544, %505 : vector<1x256xf32>
    %546 = arith.addf %543, %545 : vector<1x256xf32>
    %547 = arith.mulf %15, %546 : vector<1x256xf32>
    %548 = arith.addf %539, %547 : vector<1x256xf32>
    %c255_i32_123 = arith.constant 255 : i32
    %549 = tpu.dynamic_rotate %504 by %c255_i32_123 dim 1 : vector<1x256xf32>, i32 -> vector<1x256xf32>
    %c255_i32_124 = arith.constant 255 : i32
    %550 = tpu.dynamic_rotate %505 by %c255_i32_124 dim 1 : vector<1x256xf32>, i32 -> vector<1x256xf32>
    %c46 = arith.constant 46 : index
    %551 = memref.load %arg3[%c46] : memref<98xf32, #tpu.memory_space<smem>>
    %c95 = arith.constant 95 : index
    %552 = memref.load %arg3[%c95] : memref<98xf32, #tpu.memory_space<smem>>
    %553 = vector.broadcast %551 : f32 to vector<1x256xf32>
    %554 = arith.mulf %553, %549 : vector<1x256xf32>
    %555 = vector.broadcast %552 : f32 to vector<1x256xf32>
    %556 = arith.mulf %555, %550 : vector<1x256xf32>
    %557 = arith.addf %554, %556 : vector<1x256xf32>
    %558 = arith.mulf %16, %557 : vector<1x256xf32>
    %559 = arith.addf %548, %558 : vector<1x256xf32>
    %c254_i32_125 = arith.constant 254 : i32
    %560 = tpu.dynamic_rotate %504 by %c254_i32_125 dim 1 : vector<1x256xf32>, i32 -> vector<1x256xf32>
    %c254_i32_126 = arith.constant 254 : i32
    %561 = tpu.dynamic_rotate %505 by %c254_i32_126 dim 1 : vector<1x256xf32>, i32 -> vector<1x256xf32>
    %c47 = arith.constant 47 : index
    %562 = memref.load %arg3[%c47] : memref<98xf32, #tpu.memory_space<smem>>
    %c96 = arith.constant 96 : index
    %563 = memref.load %arg3[%c96] : memref<98xf32, #tpu.memory_space<smem>>
    %564 = vector.broadcast %562 : f32 to vector<1x256xf32>
    %565 = arith.mulf %564, %560 : vector<1x256xf32>
    %566 = vector.broadcast %563 : f32 to vector<1x256xf32>
    %567 = arith.mulf %566, %561 : vector<1x256xf32>
    %568 = arith.addf %565, %567 : vector<1x256xf32>
    %569 = arith.mulf %17, %568 : vector<1x256xf32>
    %570 = arith.addf %559, %569 : vector<1x256xf32>
    %c253_i32_127 = arith.constant 253 : i32
    %571 = tpu.dynamic_rotate %504 by %c253_i32_127 dim 1 : vector<1x256xf32>, i32 -> vector<1x256xf32>
    %c253_i32_128 = arith.constant 253 : i32
    %572 = tpu.dynamic_rotate %505 by %c253_i32_128 dim 1 : vector<1x256xf32>, i32 -> vector<1x256xf32>
    %c48 = arith.constant 48 : index
    %573 = memref.load %arg3[%c48] : memref<98xf32, #tpu.memory_space<smem>>
    %c97 = arith.constant 97 : index
    %574 = memref.load %arg3[%c97] : memref<98xf32, #tpu.memory_space<smem>>
    %575 = vector.broadcast %573 : f32 to vector<1x256xf32>
    %576 = arith.mulf %575, %571 : vector<1x256xf32>
    %577 = vector.broadcast %574 : f32 to vector<1x256xf32>
    %578 = arith.mulf %577, %572 : vector<1x256xf32>
    %579 = arith.addf %576, %578 : vector<1x256xf32>
    %580 = arith.mulf %18, %579 : vector<1x256xf32>
    %581 = arith.addf %570, %580 : vector<1x256xf32>
    %c6_129 = arith.constant 6 : index
    %c0_130 = arith.constant 0 : index
    %582 = vector.load %arg4[%c6_129, %c0_130] : memref<14x256xf32, #tpu.memory_space<vmem>>, vector<1x256xf32>
    %583 = arith.mulf %582, %581 : vector<1x256xf32>
    %584 = arith.addf %503, %583 : vector<1x256xf32>
    %585 = arith.negf %584 : vector<1x256xf32>
    %586 = math.exp %585 : vector<1x256xf32>
    %cst_131 = arith.constant 1.000000e+00 : f32
    %587 = vector.broadcast %cst_131 : f32 to vector<1x256xf32>
    %588 = arith.addf %587, %586 : vector<1x256xf32>
    %589 = arith.divf %587, %588 : vector<1x256xf32>
    %c0_132 = arith.constant 0 : index
    %c0_133 = arith.constant 0 : index
    %c0_134 = arith.constant 0 : index
    %590 = vector.load %arg5[%c0_132, %c0_133, %c0_134] : memref<1x1x256xf32, #tpu.memory_space<vmem>>, vector<1x1x256xf32>
    %591 = vector.shape_cast %590 : vector<1x1x256xf32> to vector<1x256xf32>
    %592 = vector.shape_cast %589 : vector<1x256xf32> to vector<1x1x256xf32>
    tpu.vector_store %arg5[%c0_132, %c0_133, %c0_134], %592 {strides = array<i32>} : memref<1x1x256xf32, #tpu.memory_space<vmem>>, vector<1x1x256xf32>,
    return
  }
  func.func @transform_0(%arg0: i32, %arg1: i32) -> (i32, i32, i32) {
    %c0_i32 = arith.constant 0 : i32
    %c0_i32_0 = arith.constant 0 : i32
    return %arg0, %arg1, %c0_i32 : i32, i32, i32
  }
  func.func @transform_1(%arg0: i32, %arg1: i32) -> i32 {
    %c0_i32 = arith.constant 0 : i32
    %c0_i32_0 = arith.constant 0 : i32
    return %c0_i32 : i32
  }
  func.func @transform_2(%arg0: i32, %arg1: i32) -> (i32, i32) {
    %c0_i32 = arith.constant 0 : i32
    %c0_i32_0 = arith.constant 0 : i32
    %c0_i32_1 = arith.constant 0 : i32
    return %c0_i32, %c0_i32_0 : i32, i32
  }
  func.func @transform_3(%arg0: i32, %arg1: i32) -> (i32, i32, i32) {
    %c0_i32 = arith.constant 0 : i32
    %c0_i32_0 = arith.constant 0 : i32
    %c0_i32_1 = arith.constant 0 : i32
    return %arg0, %c0_i32, %c0_i32_0 : i32, i32, i32
  }
}

</mosaic_0001>

<bundles_post_ra>
// kernel: tpu_custom_call.1
= control target key start
LH: loop header
LB: loop body
LE: loop exit
PB: predicated region body
PF: predicated region fallthrough
CT: control target
= control target key end

     0   :  { %8 = vsyncpa [#allocation4], 0  ;;  %s4447_s0 = inlined_call_operand.hbm [shape: f32[2,4,256], index: 0, kind: input, shape index: {}]   ;;  %s4448_s1 = inlined_call_operand.vmem [shape: f32[98], index: 1, kind: input, shape index: {}]   ;;  %s4449_s2 = inlined_call_operand.hbm [shape: f32[14,256], index: 2, kind: input, shape index: {}]   ;;  %s4450_s3 = inlined_call_operand.hbm [shape: f32[2,1,256], index: 3, kind: output, shape index: {}]  }
   0x1   :  { %10 = vsyncpa [#allocation4 + $0x1], 0 }
   0x2   :  { %11 = vsyncpa [#allocation6], 0 }
   0x3   :  { %12 = vsyncpa [#allocation9], 0 }
   0x4   :  { %13 = vsyncpa [#allocation5], 0 }
   0x5   :  { %15 = vsyncpa [#allocation5 + $0x1], 0  ;;  %s2950_s12 = smov 0   ;;  %s2952_s13 = smov 0  }
   0x6   :  { %s2954_s14 = smov 0   ;;  %s2956_s15 = smov 0  }
   0x7   :  { %s2958_s16 = smov 0   ;;  %s2960_s17 = smov 0  }
   0x8 LB: > { %s2513_s18 = sadd.s32 4294967295, %s2909_s17   ;;  %s2514_s19 = sadd.s32 4294967294, %s2909_s17   ;;  %s2909_s17 = sphi %s2960_s17, %s21_s17   ;;  %s2905_s16 = sphi %s2958_s16, %s4472_s16   ;;  %s2901_s15 = sphi %s2956_s15, %s4471_s15   ;;  %s2897_s14 = sphi %s2954_s14, %s4470_s14   ;;  %s2893_s13 = sphi %s2952_s13, %s4469_s13   ;;  %s2889_s12 = sphi %s2950_s12, %s4468_s12  }
   0x9   : > { %p55_p0 = scmp.ne.s32.totalorder %s2893_s13, %s2889_s12  ;;  %p2984_p1 = scmp.eq.s32.totalorder %s2513_s18, 0 }
   0xa   : > { %p2988_p2 = scmp.eq.s32.totalorder %s2513_s18, 1  ;;  %p127_p3 = scmp.eq.s32.totalorder %s2514_s19, 1 }
   0xb   : > { %s4455_s20 = scalar_select %p2984_p1, 1, 0 }
   0xc   : > { %p2994_p4 = por %p2984_p1, %p55_p0  ;;  %p2515_p5 = scmp.ge.s32.totalorder %s2909_s17, 1 }
   0xd   : > { %p2999_p6 = por %p127_p3, %p55_p0  ;;  %p134_p7 = scmp.lt.s32.totalorder %s2909_s17, 3 }
   0xe   : > { %s4457_s22 = scalar_select %p2994_p4, 1, 0 }
   0xf   : > { %s4458_s23 = scalar_select %p2999_p6, 1, 0 }
  0x10   : > { %s147_s26 = sshll.u32 %s4448_s1, 4  ;;  %p3007_p8 = pnand %p2515_p5, %p134_p7  ;;  %s148_s26 = int_to_ptr.vmem [resolvable:$true] %s147_s26 }
  0x11   : > { %s2911_s28 = smov [#allocation8]   ;;  %s2746_s4 = scalar_lea.vmem %s148_s26, 16 }
  0x12   : > { %p2645_p10 = pneg %p3007_p8  ;;  %s157_s29 = sshll.u32 %s2911_s28, 4  ;;  %s3020_s29 = int_to_ptr.vmem [resolvable:$true] %s157_s29 }
  0x13   : > { %p2747_p12 = scmp.ne.s32.totalorder %s148_s26, %s2746_s4  ;;  %p2754_p5 = scmp.lt.s32.totalorder %s148_s26, %s148_s26 }
  0x14   : > { %p3016_p11 = pnand %p2645_p10, %p2984_p1  ;;  %p2755_p7 = scmp.lt.s32.totalorder %s2746_s4, %s2746_s4 }
  0x16   : > { %p2748_p13 = pneg %p3016_p11  ;;  %p2756_p9 = por %p2755_p7, %p2754_p5 }
  0x18   : > { %p2749_p0 = pnand %p2748_p13, %p2747_p12 }
  0x1a   : > { %p2750_p3 = pneg %p2749_p0 }
  0x1c   : > { %p2757_p6 = pnand %p2756_p9, %p2750_p3 }
  0x1e   : > { %2760 = shalt.err (!%p2757_p6)
}
  0x1f   : > { %s2912_s5 = smov [#allocation7]   ;;  %s2761_s8 = scalar_lea.hbm %s4449_s2, 512 }
  0x20   : > { %2648 = dma.vmem_to_smem (!%p3016_p11), %s148_s26, 16, %s2912_s5, [#allocation6]  }
  0x21   : > { %p2762_p10 = scmp.ne.s32.totalorder %s4449_s2, %s2761_s8  ;;  %p2768_p6 = scmp.lt.u32.totalorder %s2761_s8, %s4449_s2 }
  0x23   : > { %p2764_p12 = pnand %p2762_p10, %p2748_p13 }
  0x25   : > { %p2765_p0 = pneg %p2764_p12 }
  0x27   : > { %p2770_p9 = pnand %p2768_p6, %p2765_p0 }
  0x29   : > { %2773 = shalt.err (!%p2770_p9)
}
  0x2a   : > { %s2774_s19 = scalar_lea.vmem %s3020_s29, 512  ;;  %p2782_p1 = scmp.lt.s32.totalorder %s3020_s29, %s3020_s29 }
  0x2b   : > { %p2775_p3 = scmp.ne.s32.totalorder %s3020_s29, %s2774_s19  ;;  %p2783_p10 = scmp.lt.s32.totalorder %s2774_s19, %s2774_s19 }
  0x2d   : > { %p2777_p5 = pnand %p2775_p3, %p2748_p13  ;;  %p2784_p12 = por %p2783_p10, %p2782_p1 }
  0x2f   : > { %p2778_p7 = pneg %p2777_p5 }
  0x31   : > { %p2785_p4 = pnand %p2784_p12, %p2778_p7 }
  0x33   : > { %2788 = shalt.err (!%p2785_p4)
}
  0x34   : > { %s2913_s24 = smov 256   ;;  %s2914_s25 = smov 16  }
  0x35   : > { %2651 = dma.hbm_to_vmem [thread:$0]  (!%p3016_p11), %s4449_s2, 512, %s3020_s29, [#allocation9], %s2913_s24, %s2913_s24, %s2914_s25  }
  0x36   : > { %s33_s4 = sadd.s32 1, %s2905_s16  ;;  %s42_s5 = sadd.s32 1, %s2897_s14 }
  0x37   : > { %p35_p1 = scmp.ge.s32.totalorder %s33_s4, 2  ;;  %p49_p4 = scmp.ne.s32.totalorder %s2897_s14, %s2893_s13 }
  0x38   : > { %p50_p13 = scmp.eq.s32.totalorder %s2909_s17, 0  ;;  %p2662_p0 = scmp.lt.s32.totalorder %s2909_s17, 2 }
  0x39   : > { %s4474_s4 = smov (%p35_p1, %s33_s4), 0  ;;  %p3064_p9 = por %p2988_p2, %p49_p4 }
  0x3a   : > { %p51_p6 = por %p50_p13, %p49_p4  ;;  %s37_s30 = ssub.s32 %s2905_s16, %s4474_s4 }
  0x3b   : > { %s4461_s6 = scalar_select %p3064_p9, 1, 0 }
  0x3c   : > { %s171_s7 = sand.u32 1, %s2897_s14   ;;  %p40_p3 = scmp.eq.s32.totalorder %s37_s30, 0 }
  0x3d   : > { %s2519_s29 = sshll.u32 %s171_s7, 3  ;;  %s2631_s8 = sshll.u32 %s2905_s16, 7 }
  0x3e   : > { %s3073_s9 = scalar_select %p40_p3, %s2897_s14, %s42_s5  }
  0x3f   : > { %s3078_s18 = scalar_lea.hbm %s4447_s0, %s2631_s8  ;;  %s175_s21 = scalar_lea.vmem [#allocation3], %s2519_s29 }
  0x40   : > { %s185_s19 = sshll.u32 %s175_s21, 4  ;;  %p3082_p2 = pnand %p2662_p0, %p51_p6  ;;  %s3086_s19 = int_to_ptr.vmem [resolvable:$true] %s185_s19 }
  0x41   : > { %s172_s25 = scalar_lea.sflag [#allocation4], %s171_s7  ;;  %s2789_s26 = scalar_lea.hbm %s3078_s18, 128 }
  0x42   : > { %p2790_p11 = scmp.ne.s32.totalorder %s3078_s18, %s2789_s26  ;;  %p2791_p5 = pneg %p3082_p2 }
  0x43   : > { %s2794_s30 = scalar_lea.hbm %s4447_s0, 256  ;;  %p2795_p12 = scmp.lt.u32.totalorder %s3078_s18, %s4447_s0 }
  0x44   : > { %p2792_p7 = pnand %p2791_p5, %p2790_p11  ;;  %p2796_p1 = scmp.lt.u32.totalorder %s2794_s30, %s2789_s26 }
  0x45   : > { %p2798_p13 = scmp.lt.u32.totalorder %s2789_s26, %s3078_s18 }
  0x46   : > { %p2793_p10 = pneg %p2792_p7  ;;  %p2797_p4 = por %p2796_p1, %p2795_p12 }
  0x48   : > { %p2799_p0 = por %p2798_p13, %p2797_p4 }
  0x4a   : > { %p2800_p6 = pnand %p2799_p0, %p2793_p10 }
  0x4c   : > { %2803 = shalt.err (!%p2800_p6)
}
  0x4d   : > { %s2804_s7 = scalar_lea.vmem %s3086_s19, 128  ;;  %s2915_s10 = smov [#allocation3]  }
  0x4e   : > { %p2805_p3 = scmp.ne.s32.totalorder %s3086_s19, %s2804_s7  ;;  %s2809_s11 = sshll.u32 %s2915_s10, 4  ;;  %s2810_s11 = int_to_ptr.vmem [resolvable:$false] %s2809_s11 }
  0x4f   : > { %s2811_s21 = scalar_lea.vmem %s2810_s11, 256  ;;  %p2812_p9 = scmp.lt.s32.totalorder %s3086_s19, %s2810_s11 }
  0x50   : > { %p2807_p11 = pnand %p2805_p3, %p2791_p5  ;;  %p2813_p12 = scmp.lt.s32.totalorder %s2811_s21, %s2804_s7 }
  0x52   : > { %p2808_p7 = pneg %p2807_p11  ;;  %p2814_p1 = por %p2813_p12, %p2812_p9 }
  0x54   : > { %p2815_p4 = pnand %p2814_p1, %p2808_p7 }
  0x56   : > { %2818 = shalt.err (!%p2815_p4)
}
  0x57   : > { %2655 = dma.hbm_to_vmem [thread:$0]  (!%p3082_p2), %s3078_s18, 128, %s3086_s19, %s172_s25  }
  0x58   : > { %194 = sbr.rel (%p3007_p8) target bundleno = 869 (0x365), region = 32  ;;  %s3116_s26 = sand.u32 (!%p3007_p8), 1, %s2893_s13  }
  0x59   : > { %s2523_s28 = sshll.u32 (!%p3007_p8), %s3116_s26, 3  ;;  %s197_s5 = scalar_lea.sflag (!%p3007_p8), [#allocation4], %s3116_s26 }
  0x5a   : > { %s200_s30 = scalar_lea.vmem (!%p3007_p8), [#allocation3], %s2523_s28  ;;  %p4463_p9 = scmp.ne.s32.totalorder (!%p3007_p8), %s4457_s22, 0 }
  0x5f   : > { %2872 = dma.done.wait (%p4463_p9), %s197_s5, 128  }
  0x60   : > { %2874 = vsyncadd (%p4463_p9), %s197_s5, 4294967168  ;;  %p4464_p5 = scmp.ne.s32.totalorder %s4455_s20, 0 }
  0x62   : > { %2876 = dma.done.wait (%p4464_p5), [#allocation6], 16  }
  0x63   : > { %2878 = vsyncadd (%p4464_p5), [#allocation6], 4294967280 }
  0x64   : > { %2880 = dma.done.wait (%p4464_p5), [#allocation9], 512  }
  0x65   : > { %2882 = vsyncadd (%p4464_p5), [#allocation9], 4294966784 }
  0x66   : > { %213 = sfence }
  0x67   : > { %v232_v0 = vld [vmem:[%s200_s30] sm:$0xff]  ;;  %vm236_vm0 = vcmask 1043456   ;;  %vm267_vm1 = vcmask 1040384   ;;  %v300_v33 = vlaneseq  ;;  %s2916_s20 = smov 48   ;;  %s2917_s22 = smov 32  }
  0x68   : > { %v234_v1 = vcombine.high %v232_v0, %v232_v0  ;;  %v237_v2 = vsel %vm236_vm0, %v232_v0, -inf  ;;  %v251_v3 = vsel %vm236_vm0, %v232_v0, 0.0  ;;  %s2918_s27 = smov 16   ;;  %s2534_s18 = sld [smem:[#allocation7 + $0x34]]  ;;  %v2919_v46 = vmov 1966171168  }
  0x69   : > { %v238_v4 = vrot.slane %v237_v2, 4  ;;  %v252_v5 = vrot.slane %v251_v3, 4  ;;  %v301_v36 = vshrl.u32 %v300_v33, 7  ;;  %s2533_s19 = sld [smem:[#allocation7 + $0x3]]  ;;  %v3154_v45 = vand.u32 127, %v300_v33  ;;  %s2920_s24 = smov 3  }
  0x6a   : > { %v244_v6 = vsel %vm236_vm0, %v234_v1, -inf  ;;  %v258_v7 = vsel %vm236_vm0, %v234_v1, 0.0  ;;  %v363_v47 = vunpack.c.l.s4 %v2919_v46  ;;  %s2921_s25 = smov 2   ;;  %s2922_s29 = smov 1   ;;  %vm2395_vm14 = vcmp.lt.s32.totalorder %v300_v33, 256 }
  0x6b   : > { %v239_v8 = vmax.f32 %v237_v2, %v238_v4  ;;  %v245_v9 = vrot.slane %v244_v6, 4  ;;  %v253_v10 = vadd.f32 %v252_v5, %v251_v3  ;;  %v259_v11 = vrot.slane %v258_v7, 4  ;;  %s2923_s8 = smov 127   ;;  %s2924_s7 = smov 126  }
  0x6c   : > { %v302_v37 = vsub.s32 0, %v301_v36  ;;  %v306_v38 = vsub.s32 1, %v301_v36  ;;  %vm316_vm2 = vcmp.lt.s32.totalorder %v3154_v45, 48  ;;  %v364_v52 = vunpack.c.0.s8 %v363_v47  ;;  %s2925_s10 = smov 125   ;;  %s2528_s11 = sld [smem:[#allocation7 + $0x31]] }
  0x6d   : > { %v240_v12 = vrot.slane %v239_v8, 2  ;;  %v246_v13 = vmax.f32 %v244_v6, %v245_v9  ;;  %v254_v14 = vrot.slane %v253_v10, 2  ;;  %v260_v15 = vadd.f32 %v259_v11, %v258_v7  ;;  %s349_s21 = sld [smem:[#allocation7]]  ;;  %s3278_s28 = sld [smem:[#allocation7 + $0x1]] }
  0x6e   : > { %v470_v50 = vstv %s2534_s18  ;;  %v3159_v63 = vsub.s32 %v364_v52, %v301_v36  ;;  %vm631_vm3 = vcmp.lt.s32.totalorder %v3154_v45, 32  ;;  %vm930_vm4 = vcmp.lt.s32.totalorder %v3154_v45, 16  ;;  %s3280_s5 = sld [smem:[#allocation7 + $0x32]]  ;;  %s3357_s18 = sld [smem:[#allocation7 + $0x5]] }
  0x6f   : > { %v241_v16 = vmax.f32 %v239_v8, %v240_v12  ;;  %v247_v17 = vrot.slane %v246_v13, 2  ;;  %v255_v18 = vadd.f32 %v254_v14, %v253_v10  ;;  %v261_v19 = vrot.slane %v260_v15, 2  ;;  %s3306_s30 = sld [smem:[#allocation7 + $0x2]]  ;;  %p4465_p2 = scmp.ne.s32.totalorder %s4461_s6, 0 }
  0x70   : > { %v467_v51 = vstv %s2533_s19  ;;  %vm340_vm5 = vcmp.lt.s32.totalorder %v3154_v45, 3  ;;  %vm383_vm6 = vcmp.lt.s32.totalorder %v3154_v45, 2  ;;  %vm426_vm7 = vcmp.lt.s32.totalorder %v3154_v45, 1  ;;  %s3362_s19 = sld [smem:[#allocation7 + $0x36]] }
  0x71   : > { %v242_v20 = vrot.slane %v241_v16, 1  ;;  %v248_v21 = vmax.f32 %v246_v13, %v247_v17  ;;  %v256_v22 = vrot.slane %v255_v18, 1  ;;  %v262_v23 = vadd.f32 %v261_v19, %v260_v15 }
  0x72   : > { %vm499_vm8 = vcmp.lt.s32.totalorder %v3154_v45, 127  ;;  %vm542_vm9 = vcmp.lt.s32.totalorder %v3154_v45, 126  ;;  %vm585_vm10 = vcmp.lt.s32.totalorder %v3154_v45, 125  ;;  %vm1494_vm11 = vcmp.lt.s32.totalorder %v3154_v45, 112 }
  0x73   : > { %v243_v24 = vmax.f32 %v241_v16, %v242_v20  ;;  %v249_v25 = vrot.slane %v248_v21, 1  ;;  %v257_v26 = vadd.f32 %v256_v22, %v255_v18  ;;  %v263_v27 = vrot.slane %v262_v23, 1 }
  0x74   : > { %v394_v36 = vstv %s3278_s28  ;;  %s3452_s28 = sld [smem:[#allocation7 + $0xa]]  ;;  %vm1793_vm12 = vcmp.lt.s32.totalorder %v3154_v45, 96  ;;  %vm2092_vm13 = vcmp.lt.s32.totalorder %v3154_v45, 80  ;;  %v2745_v45 = vld [vmem:[#allocation8 + $0x15] ss:$8 sm:$0x3] }
  0x75   : > { %v250_v28 = vmax.f32 %v248_v21, %v249_v25  ;;  %v264_v29 = vadd.f32 %v263_v27, %v262_v23  ;;  %v265_v30 = vmul.f32 0.25, %v257_v26  ;;  %v354_v25 = vstv %s2528_s11  ;;  %s3393_s11 = sld [smem:[#allocation7 + $0x6]] }
  0x77   : > { %v266_v31 = vmul.f32 0.25, %v264_v29  ;;  %v268_v32 = vsel %vm267_vm1, %v243_v24, %v265_v30  ;;  %v351_v29 = vstv %s349_s21  ;;  %s3398_s21 = sld [smem:[#allocation7 + $0x37]] }
  0x79   : > { %v269_v34 = vsel %vm267_vm1, %v250_v28, %v266_v31 }
  0x7a   : > { %v272_v35 = vcombine.low %v268_v32, %v269_v34 }
  0x7c   : > { %2527 = vst.sshfl [vmem:[#allocation2] sm:$0x33 pattern:$0x76325410] %v272_v35 }
  0x83   : > { %v284_v39 = vld [vmem:[#allocation2 + $0x1] ss:$2 sm:$0x3]  ;;  %v282_v40 = vld [vmem:[#allocation2] ss:$2 sm:$0x3] }
  0x84   : > { %v3133_v41 = vrot.slane %v284_v39, %v302_v37  ;;  %v3135_v42 = vrot.slane %v282_v40, %v302_v37  ;;  %v3139_v43 = vrot.slane %v284_v39, %v306_v38  ;;  %v3141_v44 = vrot.slane %v282_v40, %v306_v38 }
  0x85   : > { %v397_v37 = vstv %s3280_s5  ;;  %s3454_s5 = sld [smem:[#allocation7 + $0x3b]] }
  0x86   : > { %330 = vrot.lane.b32.xlu1 %v3133_v41, %s2916_s20  ;;  %310 = vrot.lane.b32.xlu0 %v3135_v42, %s2916_s20 }
  0x8a   : > { %332 = vrot.lane.b32.xlu1 %v3139_v43, %s2916_s20  ;;  %312 = vrot.lane.b32.xlu0 %v3141_v44, %s2916_s20  ;;  %s3308_s20 = sld [smem:[#allocation7 + $0x33]] }
  0x8e   : > { %629 = vrot.lane.b32.xlu1 %v3141_v44, %s2917_s22  ;;  %627 = vrot.lane.b32.xlu0 %v3135_v42, %s2917_s22 }
  0x92   : > { %636 = vrot.lane.b32.xlu1 %v3139_v43, %s2917_s22  ;;  %634 = vrot.lane.b32.xlu0 %v3133_v41, %s2917_s22  ;;  %s3323_s22 = sld [smem:[#allocation7 + $0x4]] }
  0x96   : > { %928 = vrot.lane.b32.xlu1 %v3141_v44, %s2918_s27  ;;  %926 = vrot.lane.b32.xlu0 %v3135_v42, %s2918_s27 }
  0x9a   : > { %935 = vrot.lane.b32.xlu1 %v3139_v43, %s2918_s27  ;;  %933 = vrot.lane.b32.xlu0 %v3133_v41, %s2918_s27  ;;  %s3331_s27 = sld [smem:[#allocation7 + $0x35]] }
  0xf8   : > { %v331_v48 = vpop.permute.xlu1 %330  ;;  %v311_v49 = vpop.permute.xlu0 %310 }
  0xfc   : > { %v333_v53 = vpop.permute.xlu1 %332  ;;  %v313_v54 = vpop.permute.xlu0 %312 }
  0xfd   : > { %v334_v55 = vsel %vm316_vm2, %v331_v48, %v333_v53  ;;  %v335_v56 = vsel %vm316_vm2, %v333_v53, %v331_v48  ;;  %v317_v57 = vsel %vm316_vm2, %v311_v49, %v313_v54  ;;  %v318_v58 = vsel %vm316_vm2, %v313_v54, %v311_v49 }
  0xfe   : > { %v471_v59 = vmul.f32 %v470_v50, %v335_v56  ;;  %v472_v60 = vmul.f32 %v470_v50, %v334_v55  ;;  %v468_v61 = vmul.f32 %v467_v51, %v318_v58  ;;  %v469_v62 = vmul.f32 %v467_v51, %v317_v57  ;;  %336 = vrot.lane.b32.xlu0 %v318_v58, %s2920_s24 }
  0xff   : > { %338 = vrot.lane.b32.xlu1 %v317_v57, %s2920_s24 }
 0x100   : > { %v473_v0 = vadd.f32 %v471_v59, %v468_v61  ;;  %v474_v1 = vadd.f32 %v472_v60, %v469_v62  ;;  %v630_v5 = vpop.permute.xlu1 %629  ;;  %v628_v6 = vpop.permute.xlu0 %627 }
 0x101   : > { %v3188_v7 = vsel %vm631_vm3, %v630_v5, %v628_v6  ;;  %v3191_v8 = vsel %vm631_vm3, %v628_v6, %v630_v5  ;;  %v440_v5 = vstv %s3308_s20  ;;  %s3464_s20 = sld [smem:[#allocation7 + $0x39]] }
 0x102   : > { %v477_v2 = vcombine.low %v473_v0, %v474_v1  ;;  %343 = vrot.lane.b32.xlu0 %v335_v56, %s2920_s24  ;;  %v437_v0 = vstv %s3306_s30  ;;  %s3460_s30 = sld [smem:[#allocation7 + $0x7]] }
 0x103   : > { %345 = vrot.lane.b32.xlu1 %v334_v55, %s2920_s24 }
 0x104   : > { %v3164_v3 = vrot.slane %v477_v2, %v3159_v63  ;;  %v637_v9 = vpop.permute.xlu1 %636  ;;  %v635_v10 = vpop.permute.xlu0 %634 }
 0x105   : > { %v3197_v11 = vsel %vm631_vm3, %v637_v9, %v635_v10  ;;  %v3199_v12 = vsel %vm631_vm3, %v635_v10, %v637_v9 }
 0x106   : > { %379 = vrot.lane.b32.xlu0 %v318_v58, %s2921_s25  ;;  %v491_v4 = vrot.slane %v3164_v3, %v3159_v63 }
 0x107   : > { %381 = vrot.lane.b32.xlu1 %v317_v57, %s2921_s25 }
 0x108   : > { %v929_v13 = vpop.permute.xlu1 %928  ;;  %v927_v14 = vpop.permute.xlu0 %926 }
 0x109   : > { %v3244_v15 = vsel %vm930_vm4, %v929_v13, %v927_v14  ;;  %v3248_v16 = vsel %vm930_vm4, %v927_v14, %v929_v13 }
 0x10a   : > { %386 = vrot.lane.b32.xlu0 %v335_v56, %s2921_s25 }
 0x10b   : > { %388 = vrot.lane.b32.xlu1 %v334_v55, %s2921_s25 }
 0x10c   : > { %v936_v17 = vpop.permute.xlu1 %935  ;;  %v934_v18 = vpop.permute.xlu0 %933 }
 0x10d   : > { %v3254_v19 = vsel %vm930_vm4, %v936_v17, %v934_v18  ;;  %v3256_v20 = vsel %vm930_vm4, %v934_v18, %v936_v17 }
 0x10e   : > { %422 = vrot.lane.b32.xlu0 %v318_v58, %s2922_s29 }
 0x10f   : > { %424 = vrot.lane.b32.xlu1 %v317_v57, %s2922_s29 }
 0x112   : > { %429 = vrot.lane.b32.xlu0 %v335_v56, %s2922_s29 }
 0x113   : > { %431 = vrot.lane.b32.xlu1 %v334_v55, %s2922_s29 }
 0x116   : > { %495 = vrot.lane.b32.xlu0 %v318_v58, %s2923_s8 }
 0x117   : > { %497 = vrot.lane.b32.xlu1 %v317_v57, %s2923_s8 }
 0x11a   : > { %502 = vrot.lane.b32.xlu0 %v335_v56, %s2923_s8 }
 0x11b   : > { %504 = vrot.lane.b32.xlu1 %v334_v55, %s2923_s8 }
 0x11e   : > { %538 = vrot.lane.b32.xlu0 %v318_v58, %s2924_s7 }
 0x11f   : > { %540 = vrot.lane.b32.xlu1 %v317_v57, %s2924_s7 }
 0x122   : > { %545 = vrot.lane.b32.xlu0 %v335_v56, %s2924_s7 }
 0x123   : > { %547 = vrot.lane.b32.xlu1 %v334_v55, %s2924_s7 }
 0x126   : > { %581 = vrot.lane.b32.xlu0 %v318_v58, %s2925_s10 }
 0x127   : > { %583 = vrot.lane.b32.xlu1 %v317_v57, %s2925_s10 }
 0x12a   : > { %588 = vrot.lane.b32.xlu0 %v335_v56, %s2925_s10 }
 0x12b   : > { %590 = vrot.lane.b32.xlu1 %v334_v55, %s2925_s10 }
 0x12e   : > { %640 = vrot.lane.b32.xlu0 %v3188_v7, %s2920_s24 }
 0x12f   : > { %642 = vrot.lane.b32.xlu1 %v3191_v8, %s2920_s24 }
 0x132   : > { %646 = vrot.lane.b32.xlu0 %v3197_v11, %s2920_s24 }
 0x133   : > { %648 = vrot.lane.b32.xlu1 %v3199_v12, %s2920_s24 }
 0x136   : > { %682 = vrot.lane.b32.xlu0 %v3188_v7, %s2921_s25 }
 0x137   : > { %684 = vrot.lane.b32.xlu1 %v3191_v8, %s2921_s25 }
 0x13a   : > { %688 = vrot.lane.b32.xlu0 %v3197_v11, %s2921_s25 }
 0x13b   : > { %690 = vrot.lane.b32.xlu1 %v3199_v12, %s2921_s25 }
 0x13e   : > { %724 = vrot.lane.b32.xlu0 %v3188_v7, %s2922_s29 }
 0x13f   : > { %726 = vrot.lane.b32.xlu1 %v3191_v8, %s2922_s29 }
 0x142   : > { %730 = vrot.lane.b32.xlu0 %v3197_v11, %s2922_s29 }
 0x143   : > { %732 = vrot.lane.b32.xlu1 %v3199_v12, %s2922_s29 }
 0x146   : > { %796 = vrot.lane.b32.xlu0 %v3188_v7, %s2923_s8 }
 0x147   : > { %798 = vrot.lane.b32.xlu1 %v3191_v8, %s2923_s8 }
 0x14a   : > { %802 = vrot.lane.b32.xlu0 %v3197_v11, %s2923_s8 }
 0x14b   : > { %804 = vrot.lane.b32.xlu1 %v3199_v12, %s2923_s8 }
 0x14e   : > { %838 = vrot.lane.b32.xlu0 %v3188_v7, %s2924_s7 }
 0x14f   : > { %840 = vrot.lane.b32.xlu1 %v3191_v8, %s2924_s7 }
 0x152   : > { %844 = vrot.lane.b32.xlu0 %v3197_v11, %s2924_s7 }
 0x153   : > { %846 = vrot.lane.b32.xlu1 %v3199_v12, %s2924_s7 }
 0x156   : > { %880 = vrot.lane.b32.xlu0 %v3188_v7, %s2925_s10 }
 0x157   : > { %882 = vrot.lane.b32.xlu1 %v3191_v8, %s2925_s10 }
 0x15a   : > { %886 = vrot.lane.b32.xlu0 %v3197_v11, %s2925_s10 }
 0x15b   : > { %888 = vrot.lane.b32.xlu1 %v3199_v12, %s2925_s10 }
 0x15e   : > { %939 = vrot.lane.b32.xlu0 %v3244_v15, %s2920_s24 }
 0x15f   : > { %941 = vrot.lane.b32.xlu1 %v3248_v16, %s2920_s24 }
 0x162   : > { %945 = vrot.lane.b32.xlu0 %v3254_v19, %s2920_s24 }
 0x163   : > { %947 = vrot.lane.b32.xlu1 %v3256_v20, %s2920_s24 }
 0x166   : > { %981 = vrot.lane.b32.xlu0 %v3244_v15, %s2921_s25 }
 0x167   : > { %983 = vrot.lane.b32.xlu1 %v3248_v16, %s2921_s25 }
 0x16a   : > { %987 = vrot.lane.b32.xlu0 %v3254_v19, %s2921_s25 }
 0x16b   : > { %989 = vrot.lane.b32.xlu1 %v3256_v20, %s2921_s25 }
 0x16e   : > { %1023 = vrot.lane.b32.xlu0 %v3244_v15, %s2922_s29 }
 0x16f   : > { %1025 = vrot.lane.b32.xlu1 %v3248_v16, %s2922_s29 }
 0x170   : > { %v337_v21 = vpop.permute.xlu0 %336 }
 0x171   : > { %v339_v22 = vpop.permute.xlu1 %338 }
 0x172   : > { %1029 = vrot.lane.b32.xlu0 %v3254_v19, %s2922_s29  ;;  %v341_v30 = vsel %vm340_vm5, %v337_v21, %v339_v22  ;;  %v342_v31 = vsel %vm340_vm5, %v339_v22, %v337_v21 }
 0x173   : > { %1031 = vrot.lane.b32.xlu1 %v3256_v20, %s2922_s29  ;;  %v352_v38 = vmul.f32 %v351_v29, %v342_v31  ;;  %v353_v39 = vmul.f32 %v351_v29, %v341_v30  ;;  %v3346_v30 = vld [vmem:[#allocation8 + $0x10] ss:$8 sm:$0x3]  ;;  %v3350_v31 = vld [vmem:[#allocation8 + $0x7] ss:$8 sm:$0x3] }
 0x174   : > { %v344_v23 = vpop.permute.xlu0 %343 }
 0x175   : > { %v346_v24 = vpop.permute.xlu1 %345 }
 0x176   : > { %1095 = vrot.lane.b32.xlu0 %v3244_v15, %s2923_s8  ;;  %v347_v26 = vsel %vm340_vm5, %v344_v23, %v346_v24  ;;  %v348_v27 = vsel %vm340_vm5, %v346_v24, %v344_v23 }
 0x177   : > { %1097 = vrot.lane.b32.xlu1 %v3248_v16, %s2923_s8  ;;  %v355_v34 = vmul.f32 %v354_v25, %v348_v27  ;;  %v356_v35 = vmul.f32 %v354_v25, %v347_v26 }
 0x178   : > { %v380_v28 = vpop.permute.xlu0 %379 }
 0x179   : > { %v382_v32 = vpop.permute.xlu1 %381  ;;  %v357_v49 = vadd.f32 %v355_v34, %v352_v38  ;;  %v358_v50 = vadd.f32 %v356_v35, %v353_v39  ;;  %v510_v34 = vstv %s3323_s22  ;;  %s3466_s22 = sld [smem:[#allocation7 + $0x38]] }
 0x17a   : > { %1101 = vrot.lane.b32.xlu0 %v3254_v19, %s2923_s8  ;;  %v384_v40 = vsel %vm383_vm6, %v380_v28, %v382_v32  ;;  %v385_v46 = vsel %vm383_vm6, %v382_v32, %v380_v28 }
 0x17b   : > { %1103 = vrot.lane.b32.xlu1 %v3256_v20, %s2923_s8  ;;  %v395_v53 = vmul.f32 %v394_v36, %v385_v46  ;;  %v396_v54 = vmul.f32 %v394_v36, %v384_v40  ;;  %v361_v61 = vcombine.low %v357_v49, %v358_v50 }
 0x17c   : > { %v387_v47 = vpop.permute.xlu0 %386 }
 0x17d   : > { %v389_v48 = vpop.permute.xlu1 %388  ;;  %v368_v13 = vrot.slane %v361_v61, %v3159_v63 }
 0x17e   : > { %v390_v51 = vsel %vm383_vm6, %v387_v47, %v389_v48  ;;  %v391_v52 = vsel %vm383_vm6, %v389_v48, %v387_v47  ;;  %1137 = vrot.lane.b32.xlu0 %v3244_v15, %s2924_s7  ;;  %v3367_v48 = vld [vmem:[#allocation8 + $0x11] ss:$8 sm:$0x3] }
 0x17f   : > { %v398_v55 = vmul.f32 %v397_v37, %v391_v52  ;;  %v399_v56 = vmul.f32 %v397_v37, %v390_v51  ;;  %1139 = vrot.lane.b32.xlu1 %v3248_v16, %s2924_s7  ;;  %v375_v29 = vrot.slane %v368_v13, %v3159_v63  ;;  %v513_v37 = vstv %s3331_s27  ;;  %s3468_s27 = sld [smem:[#allocation7 + $0x8]] }
 0x180   : > { %v423_v57 = vpop.permute.xlu0 %422 }
 0x181   : > { %v400_v58 = vadd.f32 %v398_v55, %v395_v53  ;;  %v401_v59 = vadd.f32 %v399_v56, %v396_v54  ;;  %v425_v60 = vpop.permute.xlu1 %424  ;;  %v377_v47 = vmul.f32 %v375_v29, %v3350_v31  ;;  %v3376_v54 = vld [vmem:[#allocation8 + $0x12] ss:$8 sm:$0x3] }
 0x182   : > { %1143 = vrot.lane.b32.xlu0 %v3254_v19, %s2924_s7  ;;  %v427_v1 = vsel %vm426_vm7, %v423_v57, %v425_v60  ;;  %v428_v2 = vsel %vm426_vm7, %v425_v60, %v423_v57 }
 0x183   : > { %v404_v62 = vcombine.low %v400_v58, %v401_v59  ;;  %1145 = vrot.lane.b32.xlu1 %v3256_v20, %s2924_s7  ;;  %v438_v18 = vmul.f32 %v437_v0, %v428_v2  ;;  %v439_v21 = vmul.f32 %v437_v0, %v427_v1  ;;  %v493_v0 = vmul.f32 %v491_v4, %v3376_v54 }
 0x184   : > { %v430_v6 = vpop.permute.xlu0 %429 }
 0x185   : > { %v411_v9 = vrot.slane %v404_v62, %v3159_v63  ;;  %v432_v10 = vpop.permute.xlu1 %431 }
 0x186   : > { %v433_v14 = vsel %vm426_vm7, %v430_v6, %v432_v10  ;;  %v434_v17 = vsel %vm426_vm7, %v432_v10, %v430_v6  ;;  %1179 = vrot.lane.b32.xlu0 %v3244_v15, %s2925_s10  ;;  %v556_v10 = vstv %s3362_s19  ;;  %s3472_s19 = sld [smem:[#allocation7 + $0x3a]] }
 0x187   : > { %v441_v22 = vmul.f32 %v440_v5, %v434_v17  ;;  %v442_v23 = vmul.f32 %v440_v5, %v433_v14  ;;  %1181 = vrot.lane.b32.xlu1 %v3248_v16, %s2925_s10  ;;  %v418_v25 = vrot.slane %v411_v9, %v3159_v63  ;;  %v553_v5 = vstv %s3357_s18  ;;  %v3401_v17 = vld [vmem:[#allocation8 + $0x13] ss:$8 sm:$0x3]  ;;  %s3470_s18 = sld [smem:[#allocation7 + $0x9]] }
 0x188   : > { %v496_v24 = vpop.permute.xlu0 %495 }
 0x189   : > { %v443_v26 = vadd.f32 %v441_v22, %v438_v18  ;;  %v444_v27 = vadd.f32 %v442_v23, %v439_v21  ;;  %v498_v28 = vpop.permute.xlu1 %497  ;;  %v420_v39 = vmul.f32 %v418_v25, %v3346_v30 }
 0x18a   : > { %1185 = vrot.lane.b32.xlu0 %v3254_v19, %s2925_s10  ;;  %v500_v35 = vsel %vm499_vm8, %v496_v24, %v498_v28  ;;  %v501_v36 = vsel %vm499_vm8, %v498_v28, %v496_v24 }
 0x18b   : > { %v447_v32 = vcombine.low %v443_v26, %v444_v27  ;;  %1187 = vrot.lane.b32.xlu1 %v3256_v20, %s2925_s10  ;;  %v511_v49 = vmul.f32 %v510_v34, %v500_v35  ;;  %v512_v53 = vmul.f32 %v510_v34, %v501_v36  ;;  %v421_v58 = vadd.f32 %v420_v39, %v377_v47 }
 0x18c   : > { %v503_v38 = vpop.permute.xlu0 %502 }
 0x18d   : > { %v454_v40 = vrot.slane %v447_v32, %v3159_v63  ;;  %v505_v46 = vpop.permute.xlu1 %504 }
 0x18e   : > { %v506_v50 = vsel %vm499_vm8, %v503_v38, %v505_v46  ;;  %v507_v51 = vsel %vm499_vm8, %v505_v46, %v503_v38  ;;  %1225 = vrot.lane.b32.xlu0 %v3135_v42, %s2920_s24 }
 0x18f   : > { %v461_v52 = vrot.slane %v454_v40, %v3159_v63  ;;  %v514_v55 = vmul.f32 %v513_v37, %v506_v50  ;;  %v515_v56 = vmul.f32 %v513_v37, %v507_v51  ;;  %1227 = vrot.lane.b32.xlu1 %v3141_v44, %s2920_s24  ;;  %v596_v37 = vstv %s3393_s11  ;;  %v3425_v50 = vld [vmem:[#allocation8 + $0x14] ss:$8 sm:$0x3]  ;;  %s3496_s11 = sld [smem:[#allocation7 + $0xb]] }
 0x190   : > { %v539_v57 = vpop.permute.xlu0 %538  ;;  %v599_v40 = vstv %s3398_s21  ;;  %s3498_s21 = sld [smem:[#allocation7 + $0x3c]] }
 0x191   : > { %v463_v59 = vmul.f32 %v461_v52, %v3367_v48  ;;  %v516_v60 = vadd.f32 %v514_v55, %v511_v49  ;;  %v517_v61 = vadd.f32 %v515_v56, %v512_v53  ;;  %v541_v62 = vpop.permute.xlu1 %540 }
 0x192   : > { %1231 = vrot.lane.b32.xlu0 %v3133_v41, %s2920_s24  ;;  %v543_v6 = vsel %vm542_vm9, %v539_v57, %v541_v62  ;;  %v544_v9 = vsel %vm542_vm9, %v541_v62, %v539_v57 }
 0x193   : > { %v464_v1 = vadd.f32 %v463_v59, %v421_v58  ;;  %v520_v2 = vcombine.low %v516_v60, %v517_v61  ;;  %1233 = vrot.lane.b32.xlu1 %v3139_v43, %s2920_s24  ;;  %v554_v18 = vmul.f32 %v553_v5, %v543_v6  ;;  %v555_v24 = vmul.f32 %v553_v5, %v544_v9 }
 0x194   : > { %v546_v3 = vpop.permute.xlu0 %545 }
 0x195   : > { %v494_v4 = vadd.f32 %v493_v0, %v464_v1  ;;  %v527_v13 = vrot.slane %v520_v2, %v3159_v63  ;;  %v548_v14 = vpop.permute.xlu1 %547 }
 0x196   : > { %v549_v21 = vsel %vm542_vm9, %v546_v3, %v548_v14  ;;  %v550_v22 = vsel %vm542_vm9, %v548_v14, %v546_v3  ;;  %1267 = vrot.lane.b32.xlu0 %v3135_v42, %s2921_s25 }
 0x197   : > { %v534_v23 = vrot.slane %v527_v13, %v3159_v63  ;;  %v557_v25 = vmul.f32 %v556_v10, %v549_v21  ;;  %v558_v26 = vmul.f32 %v556_v10, %v550_v22  ;;  %1269 = vrot.lane.b32.xlu1 %v3141_v44, %s2921_s25  ;;  %v3444_v10 = vld [vmem:[#allocation8 + $0x15] ss:$8 sm:$0x3] }
 0x198   : > { %v582_v27 = vpop.permute.xlu0 %581 }
 0x199   : > { %v536_v28 = vmul.f32 %v534_v23, %v3401_v17  ;;  %v559_v29 = vadd.f32 %v557_v25, %v554_v18  ;;  %v560_v32 = vadd.f32 %v558_v26, %v555_v24  ;;  %v584_v34 = vpop.permute.xlu1 %583  ;;  %v768_v25 = vstv %s3452_s28  ;;  %s2926_s28 = smov 112  }
 0x19a   : > { %1273 = vrot.lane.b32.xlu0 %v3133_v41, %s2921_s25  ;;  %v586_v38 = vsel %vm585_vm10, %v582_v27, %v584_v34  ;;  %v587_v39 = vsel %vm585_vm10, %v584_v34, %v582_v27  ;;  %v771_v26 = vstv %s3454_s5  ;;  %v654_v27 = vstv %s3460_s30  ;;  %s3528_s5 = sld [smem:[#allocation7 + $0xc]]  ;;  %s3532_s30 = sld [smem:[#allocation7 + $0x3d]] }
 0x19b   : > { %v537_v35 = vadd.f32 %v536_v28, %v494_v4  ;;  %v563_v36 = vcombine.low %v559_v29, %v560_v32  ;;  %1275 = vrot.lane.b32.xlu1 %v3139_v43, %s2921_s25  ;;  %v597_v51 = vmul.f32 %v596_v37, %v586_v38  ;;  %v598_v56 = vmul.f32 %v596_v37, %v587_v39 }
 0x19c   : > { %v589_v46 = vpop.permute.xlu0 %588  ;;  %v699_v28 = vstv %s3464_s20  ;;  %v657_v34 = vstv %s3466_s22  ;;  %v696_v37 = vstv %s3468_s27  ;;  %s2927_s20 = smov 96   ;;  %s3548_s22 = sld [smem:[#allocation7 + $0xd]] }
 0x19d   : > { %v570_v47 = vrot.slane %v563_v36, %v3159_v63  ;;  %v591_v49 = vpop.permute.xlu1 %590  ;;  %s3556_s27 = sld [smem:[#allocation7 + $0x3e]] }
 0x19e   : > { %v592_v52 = vsel %vm585_vm10, %v589_v46, %v591_v49  ;;  %v593_v53 = vsel %vm585_vm10, %v591_v49, %v589_v46  ;;  %1309 = vrot.lane.b32.xlu0 %v3135_v42, %s2922_s29  ;;  %v738_v46 = vstv %s3470_s18  ;;  %v741_v49 = vstv %s3472_s19  ;;  %s2928_s18 = smov 80   ;;  %s3604_s19 = sld [smem:[#allocation7 + $0x11]] }
 0x19f   : > { %v577_v55 = vrot.slane %v570_v47, %v3159_v63  ;;  %v600_v57 = vmul.f32 %v599_v40, %v592_v52  ;;  %v601_v58 = vmul.f32 %v599_v40, %v593_v53  ;;  %1311 = vrot.lane.b32.xlu1 %v3141_v44, %s2922_s29 }
 0x1a0   : > { %v3436_v59 = vpop.permute.xlu0 %640 }
 0x1a1   : > { %v579_v60 = vmul.f32 %v577_v55, %v3425_v50  ;;  %v602_v61 = vadd.f32 %v600_v57, %v597_v51  ;;  %v603_v62 = vadd.f32 %v601_v58, %v598_v56  ;;  %v643_v0 = vpop.permute.xlu1 %642 }
 0x1a2   : > { %1315 = vrot.lane.b32.xlu0 %v3133_v41, %s2922_s29  ;;  %v644_v56 = vsel %vm340_vm5, %v3436_v59, %v643_v0  ;;  %v645_v57 = vsel %vm340_vm5, %v643_v0, %v3436_v59 }
 0x1a3   : > { %v580_v1 = vadd.f32 %v579_v60, %v537_v35  ;;  %v606_v2 = vcombine.low %v602_v61, %v603_v62  ;;  %1317 = vrot.lane.b32.xlu1 %v3139_v43, %s2922_s29 }
 0x1a4   : > { %v647_v5 = vpop.permute.xlu0 %646 }
 0x1a5   : > { %v613_v6 = vrot.slane %v606_v2, %v3159_v63  ;;  %v649_v9 = vpop.permute.xlu1 %648 }
 0x1a6   : > { %1360 = vrot.lane.b32.xlu0 %v3135_v42, %s2923_s8  ;;  %v650_v35 = vsel %vm340_vm5, %v647_v5, %v649_v9  ;;  %v651_v36 = vsel %vm340_vm5, %v649_v9, %v647_v5  ;;  %v770_v9 = vmul.f32 %v768_v25, %v3191_v8 }
 0x1a7   : > { %v620_v3 = vrot.slane %v613_v6, %v3159_v63  ;;  %1362 = vrot.lane.b32.xlu1 %v3141_v44, %s2923_s8  ;;  %v658_v58 = vmul.f32 %v657_v34, %v651_v36  ;;  %v659_v60 = vmul.f32 %v657_v34, %v650_v35  ;;  %v769_v6 = vmul.f32 %v768_v25, %v3188_v7 }
 0x1a8   : > { %v683_v4 = vpop.permute.xlu0 %682  ;;  %v810_v25 = vstv %s3496_s11  ;;  %s3606_s11 = sld [smem:[#allocation7 + $0x42]] }
 0x1a9   : > { %v622_v13 = vmul.f32 %v620_v3, %v3444_v10  ;;  %v685_v14 = vpop.permute.xlu1 %684 }
 0x1aa   : > { %1366 = vrot.lane.b32.xlu0 %v3133_v41, %s2923_s8  ;;  %v686_v39 = vsel %vm383_vm6, %v683_v4, %v685_v14  ;;  %v687_v40 = vsel %vm383_vm6, %v685_v14, %v683_v4  ;;  %v655_v4 = vmul.f32 %v654_v27, %v645_v57 }
 0x1ab   : > { %v3458_v18 = vadd.f32 %v622_v13, %v580_v1  ;;  %1368 = vrot.lane.b32.xlu1 %v3139_v43, %s2923_s8  ;;  %v697_v61 = vmul.f32 %v696_v37, %v687_v40  ;;  %v698_v62 = vmul.f32 %v696_v37, %v686_v39  ;;  %v656_v13 = vmul.f32 %v654_v27, %v644_v56 }
 0x1ac   : > { %v689_v21 = vpop.permute.xlu0 %688  ;;  %v660_v7 = vadd.f32 %v658_v58, %v655_v4 }
 0x1ad   : > { %v691_v22 = vpop.permute.xlu1 %690  ;;  %v661_v8 = vadd.f32 %v659_v60, %v656_v13  ;;  %v852_v60 = vstv %s3528_s5  ;;  %s3613_s5 = sld [smem:[#allocation7 + $0x3f]] }
 0x1ae   : > { %1402 = vrot.lane.b32.xlu0 %v3135_v42, %s2924_s7  ;;  %v692_v29 = vsel %vm383_vm6, %v689_v21, %v691_v22  ;;  %v693_v32 = vsel %vm383_vm6, %v691_v22, %v689_v21  ;;  %v772_v22 = vmul.f32 %v771_v26, %v3197_v11 }
 0x1af   : > { %1404 = vrot.lane.b32.xlu1 %v3141_v44, %s2924_s7  ;;  %v700_v51 = vmul.f32 %v699_v28, %v693_v32  ;;  %v701_v52 = vmul.f32 %v699_v28, %v692_v29  ;;  %v813_v29 = vstv %s3498_s21  ;;  %v664_v40 = vcombine.low %v660_v7, %v661_v8  ;;  %s3609_s21 = sld [smem:[#allocation7 + $0xe]] }
 0x1b0   : > { %v725_v23 = vpop.permute.xlu0 %724 }
 0x1b1   : > { %v727_v24 = vpop.permute.xlu1 %726  ;;  %v702_v14 = vadd.f32 %v700_v51, %v697_v61  ;;  %v703_v21 = vadd.f32 %v701_v52, %v698_v62  ;;  %v774_v51 = vadd.f32 %v772_v22, %v769_v6  ;;  %v671_v61 = vrot.slane %v664_v40, %v3159_v63 }
 0x1b2   : > { %1408 = vrot.lane.b32.xlu0 %v3133_v41, %s2924_s7  ;;  %v728_v1 = vsel %vm426_vm7, %v725_v23, %v727_v24  ;;  %v729_v2 = vsel %vm426_vm7, %v727_v24, %v725_v23  ;;  %v773_v23 = vmul.f32 %v771_v26, %v3199_v12 }
 0x1b3   : > { %1410 = vrot.lane.b32.xlu1 %v3139_v43, %s2924_s7  ;;  %v739_v24 = vmul.f32 %v738_v46, %v729_v2  ;;  %v740_v28 = vmul.f32 %v738_v46, %v728_v1  ;;  %v706_v35 = vcombine.low %v702_v14, %v703_v21  ;;  %v855_v2 = vstv %s3532_s30  ;;  %s3615_s30 = sld [smem:[#allocation7 + $0xf]] }
 0x1b4   : > { %v731_v38 = vpop.permute.xlu0 %730  ;;  %v775_v52 = vadd.f32 %v773_v23, %v770_v9 }
 0x1b5   : > { %v733_v47 = vpop.permute.xlu1 %732  ;;  %v713_v56 = vrot.slane %v706_v35, %v3159_v63 }
 0x1b6   : > { %v734_v53 = vsel %vm426_vm7, %v731_v38, %v733_v47  ;;  %v735_v55 = vsel %vm426_vm7, %v733_v47, %v731_v38  ;;  %1490 = vrot.lane.b32.xlu0 %v3135_v42, %s2926_s28  ;;  %v778_v6 = vcombine.low %v774_v51, %v775_v52 }
 0x1b7   : > { %1492 = vrot.lane.b32.xlu1 %v3141_v44, %s2926_s28  ;;  %v742_v3 = vmul.f32 %v741_v49, %v735_v55  ;;  %v743_v59 = vmul.f32 %v741_v49, %v734_v53 }
 0x1b8   : > { %v797_v5 = vpop.permute.xlu0 %796  ;;  %v785_v7 = vrot.slane %v778_v6, %v3159_v63 }
 0x1b9   : > { %v799_v0 = vpop.permute.xlu1 %798  ;;  %v744_v27 = vadd.f32 %v742_v3, %v739_v24  ;;  %v745_v34 = vadd.f32 %v743_v59, %v740_v28  ;;  %v720_v59 = vrot.slane %v713_v56, %v3159_v63  ;;  %v678_v24 = vrot.slane %v671_v61, %v3159_v63 }
 0x1ba   : > { %1497 = vrot.lane.b32.xlu0 %v3133_v41, %s2926_s28  ;;  %v800_v11 = vsel %vm499_vm8, %v797_v5, %v799_v0  ;;  %v801_v12 = vsel %vm499_vm8, %v799_v0, %v797_v5  ;;  %v792_v40 = vrot.slane %v785_v7, %v3159_v63 }
 0x1bb   : > { %1499 = vrot.lane.b32.xlu1 %v3139_v43, %s2926_s28  ;;  %v811_v46 = vmul.f32 %v810_v25, %v800_v11  ;;  %v812_v47 = vmul.f32 %v810_v25, %v801_v12  ;;  %v748_v53 = vcombine.low %v744_v27, %v745_v34  ;;  %v722_v27 = vmul.f32 %v720_v59, %v3346_v30  ;;  %s3611_s28 = sld [smem:[#allocation7 + $0x40]] }
 0x1bc   : > { %v803_v32 = vpop.permute.xlu0 %802  ;;  %v894_v12 = vstv %s3548_s22  ;;  %s3620_s22 = sld [smem:[#allocation7 + $0x41]] }
 0x1bd   : > { %v805_v26 = vpop.permute.xlu1 %804  ;;  %v755_v9 = vrot.slane %v748_v53, %v3159_v63 }
 0x1be   : > { %v806_v36 = vsel %vm499_vm8, %v803_v32, %v805_v26  ;;  %v807_v37 = vsel %vm499_vm8, %v805_v26, %v803_v32  ;;  %1789 = vrot.lane.b32.xlu0 %v3135_v42, %s2927_s20  ;;  %v680_v26 = vmul.f32 %v678_v24, %v3350_v31  ;;  %v923_v24 = vld [vmem:[#allocation8 + $0x1] ss:$8 sm:$0x3] }
 0x1bf   : > { %v814_v38 = vmul.f32 %v813_v29, %v806_v36  ;;  %v815_v39 = vmul.f32 %v813_v29, %v807_v37  ;;  %1791 = vrot.lane.b32.xlu1 %v3141_v44, %s2927_s20  ;;  %v762_v8 = vrot.slane %v755_v9, %v3159_v63  ;;  %v897_v37 = vstv %s3556_s27  ;;  %s3638_s27 = sld [smem:[#allocation7 + $0x12]] }
 0x1c0   : > { %v839_v49 = vpop.permute.xlu0 %838 }
 0x1c1   : > { %v841_v55 = vpop.permute.xlu1 %840  ;;  %v816_v57 = vadd.f32 %v814_v38, %v811_v46  ;;  %v817_v58 = vadd.f32 %v815_v39, %v812_v47  ;;  %v764_v39 = vmul.f32 %v762_v8, %v3367_v48 }
 0x1c2   : > { %1796 = vrot.lane.b32.xlu0 %v3133_v41, %s2927_s20  ;;  %v842_v62 = vsel %vm542_vm9, %v839_v49, %v841_v55  ;;  %v843_v1 = vsel %vm542_vm9, %v841_v55, %v839_v49  ;;  %v723_v49 = vadd.f32 %v722_v27, %v680_v26  ;;  %v953_v26 = vstv %s3609_s21  ;;  %s3682_s21 = sld [smem:[#allocation7 + $0x14]] }
 0x1c3   : > { %1798 = vrot.lane.b32.xlu1 %v3139_v43, %s2927_s20  ;;  %v820_v0 = vcombine.low %v816_v57, %v817_v58  ;;  %v853_v14 = vmul.f32 %v852_v60, %v842_v62  ;;  %v854_v21 = vmul.f32 %v852_v60, %v843_v1  ;;  %s3618_s20 = sld [smem:[#allocation7 + $0x10]] }
 0x1c4   : > { %v845_v5 = vpop.permute.xlu0 %844  ;;  %v765_v61 = vadd.f32 %v764_v39, %v723_v49 }
 0x1c5   : > { %v847_v3 = vpop.permute.xlu1 %846  ;;  %v827_v34 = vrot.slane %v820_v0, %v3159_v63 }
 0x1c6   : > { %v848_v4 = vsel %vm542_vm9, %v845_v5, %v847_v3  ;;  %v849_v13 = vsel %vm542_vm9, %v847_v3, %v845_v5  ;;  %2088 = vrot.lane.b32.xlu0 %v3135_v42, %s2928_s18 }
 0x1c7   : > { %v856_v22 = vmul.f32 %v855_v2, %v848_v4  ;;  %v857_v23 = vmul.f32 %v855_v2, %v849_v13  ;;  %2090 = vrot.lane.b32.xlu1 %v3141_v44, %s2928_s18  ;;  %v834_v51 = vrot.slane %v827_v34, %v3159_v63 }
 0x1c8   : > { %v881_v28 = vpop.permute.xlu0 %880 }
 0x1c9   : > { %v858_v25 = vadd.f32 %v856_v22, %v853_v14  ;;  %v859_v29 = vadd.f32 %v857_v23, %v854_v21  ;;  %v883_v32 = vpop.permute.xlu1 %882  ;;  %v836_v6 = vmul.f32 %v834_v51, %v3401_v17  ;;  %v1037_v51 = vstv %s3618_s20  ;;  %s3725_s20 = sld [smem:[#allocation7 + $0x16]] }
 0x1ca   : > { %2095 = vrot.lane.b32.xlu0 %v3133_v41, %s2928_s18  ;;  %v884_v35 = vsel %vm585_vm10, %v881_v28, %v883_v32  ;;  %v885_v36 = vsel %vm585_vm10, %v883_v32, %v881_v28 }
 0x1cb   : > { %v862_v11 = vcombine.low %v858_v25, %v859_v29  ;;  %2097 = vrot.lane.b32.xlu1 %v3139_v43, %s2928_s18  ;;  %v895_v55 = vmul.f32 %v894_v12, %v884_v35  ;;  %v896_v56 = vmul.f32 %v894_v12, %v885_v36  ;;  %v1070_v12 = vstv %s3606_s11  ;;  %s3640_s18 = sld [smem:[#allocation7 + $0x43]]  ;;  %s3670_s11 = sld [smem:[#allocation7 + $0x44]] }
 0x1cc   : > { %v887_v38 = vpop.permute.xlu0 %886  ;;  %v998_v35 = vstv %s3611_s28  ;;  %s3690_s28 = sld [smem:[#allocation7 + $0x45]] }
 0x1cd   : > { %v869_v46 = vrot.slane %v862_v11, %v3159_v63  ;;  %v889_v47 = vpop.permute.xlu1 %888  ;;  %v1067_v11 = vstv %s3604_s19  ;;  %s3666_s19 = sld [smem:[#allocation7 + $0x13]] }
 0x1ce   : > { %v890_v52 = vsel %vm585_vm10, %v887_v38, %v889_v47  ;;  %v891_v53 = vsel %vm585_vm10, %v889_v47, %v887_v38  ;;  %1444 = vrot.lane.b32.xlu0 %v3135_v42, %s2925_s10  ;;  %v794_v42 = vmul.f32 %v792_v40, %v3376_v54  ;;  %v995_v40 = vstv %s3615_s30  ;;  %s3720_s30 = sld [smem:[#allocation7 + $0x15]] }
 0x1cf   : > { %v898_v57 = vmul.f32 %v897_v37, %v890_v52  ;;  %v899_v58 = vmul.f32 %v897_v37, %v891_v53  ;;  %1446 = vrot.lane.b32.xlu1 %v3141_v44, %s2925_s10  ;;  %v876_v62 = vrot.slane %v869_v46, %v3159_v63  ;;  %v956_v37 = vstv %s3613_s5  ;;  %s3718_s5 = sld [smem:[#allocation7 + $0x46]] }
 0x1d0   : > { %v3592_v60 = vpop.permute.xlu0 %939  ;;  %v795_v3 = vadd.f32 %v794_v42, %v765_v61  ;;  %v1040_v53 = vstv %s3620_s22  ;;  %s3727_s22 = sld [smem:[#allocation7 + $0x47]] }
 0x1d1   : > { %v900_v1 = vadd.f32 %v898_v57, %v895_v55  ;;  %v901_v2 = vadd.f32 %v899_v58, %v896_v56  ;;  %v942_v5 = vpop.permute.xlu1 %941  ;;  %v878_v59 = vmul.f32 %v876_v62, %v3425_v50 }
 0x1d2   : > { %1450 = vrot.lane.b32.xlu0 %v3133_v41, %s2925_s10  ;;  %v837_v13 = vadd.f32 %v836_v6, %v795_v3  ;;  %v943_v61 = vsel %vm340_vm5, %v3592_v60, %v942_v5  ;;  %v944_v62 = vsel %vm340_vm5, %v942_v5, %v3592_v60 }
 0x1d3   : > { %v904_v9 = vcombine.low %v900_v1, %v901_v2  ;;  %1452 = vrot.lane.b32.xlu1 %v3139_v43, %s2925_s10  ;;  %v624_v43 = vld [vmem:[#allocation8] ss:$8 sm:$0x3]  ;;  %v954_v5 = vmul.f32 %v953_v26, %v944_v62 }
 0x1d4   : > { %v946_v44 = vpop.permute.xlu0 %945  ;;  %v879_v41 = vadd.f32 %v878_v59, %v837_v13  ;;  %v625_v8 = vmul.f32 %v624_v43, %v3458_v18  ;;  %v1068_v59 = vmul.f32 %v1067_v11, %v3244_v15 }
 0x1d5   : > { %v911_v0 = vrot.slane %v904_v9, %v3159_v63  ;;  %v948_v4 = vpop.permute.xlu1 %947 }
 0x1d6   : > { %v949_v38 = vsel %vm340_vm5, %v946_v44, %v948_v4  ;;  %v950_v39 = vsel %vm340_vm5, %v948_v4, %v946_v44 }
 0x1d7   : > { %v918_v14 = vrot.slane %v911_v0, %v3159_v63  ;;  %v957_v1 = vmul.f32 %v956_v37, %v950_v39  ;;  %v958_v2 = vmul.f32 %v956_v37, %v949_v38  ;;  %v1069_v0 = vmul.f32 %v1067_v11, %v3248_v16 }
 0x1d8   : > { %v982_v21 = vpop.permute.xlu0 %981  ;;  %v1112_v16 = vstv %s3640_s18  ;;  %s3751_s18 = sld [smem:[#allocation7 + $0x48]] }
 0x1d9   : > { %v920_v22 = vmul.f32 %v918_v14, %v3444_v10  ;;  %v984_v23 = vpop.permute.xlu1 %983  ;;  %v955_v14 = vmul.f32 %v953_v26, %v943_v61  ;;  %v959_v15 = vadd.f32 %v957_v1, %v954_v5 }
 0x1da   : > { %v985_v47 = vsel %vm383_vm6, %v982_v21, %v984_v23  ;;  %v986_v49 = vsel %vm383_vm6, %v984_v23, %v982_v21  ;;  %v1072_v23 = vmul.f32 %v1070_v12, %v3256_v20 }
 0x1db   : > { %v921_v28 = vadd.f32 %v920_v22, %v879_v41  ;;  %v996_v42 = vmul.f32 %v995_v40, %v986_v49  ;;  %v997_v6 = vmul.f32 %v995_v40, %v985_v47  ;;  %v1071_v22 = vmul.f32 %v1070_v12, %v3254_v19 }
 0x1dc   : > { %v988_v7 = vpop.permute.xlu0 %987  ;;  %v1074_v40 = vadd.f32 %v1072_v23, %v1069_v0 }
 0x1dd   : > { %v924_v25 = vmul.f32 %v923_v24, %v921_v28  ;;  %v990_v29 = vpop.permute.xlu1 %989  ;;  %v960_v28 = vadd.f32 %v958_v2, %v955_v14  ;;  %v1073_v39 = vadd.f32 %v1071_v22, %v1068_v59 }
 0x1de   : > { %v991_v18 = vsel %vm383_vm6, %v988_v7, %v990_v29  ;;  %v992_v36 = vsel %vm383_vm6, %v990_v29, %v988_v7  ;;  %v1109_v7 = vstv %s3638_s27  ;;  %s3749_s27 = sld [smem:[#allocation7 + $0x17]] }
 0x1df   : > { %v3622_v32 = vadd.f32 %v924_v25, %v625_v8  ;;  %v999_v55 = vmul.f32 %v998_v35, %v992_v36  ;;  %v1000_v56 = vmul.f32 %v998_v35, %v991_v18  ;;  %v963_v18 = vcombine.low %v959_v15, %v960_v28 }
 0x1e0   : > { %v1024_v27 = vpop.permute.xlu0 %1023  ;;  %v1077_v62 = vcombine.low %v1073_v39, %v1074_v40  ;;  %v1193_v15 = vstv %s3682_s21  ;;  %s3764_s21 = sld [smem:[#allocation7 + $0x19]] }
 0x1e1   : > { %v1026_v34 = vpop.permute.xlu1 %1025  ;;  %v1001_v21 = vadd.f32 %v999_v55, %v996_v42  ;;  %v1002_v41 = vadd.f32 %v1000_v56, %v997_v6  ;;  %v970_v55 = vrot.slane %v963_v18, %v3159_v63 }
 0x1e2   : > { %v1027_v9 = vsel %vm426_vm7, %v1024_v27, %v1026_v34  ;;  %v1028_v44 = vsel %vm426_vm7, %v1026_v34, %v1024_v27  ;;  %v1084_v5 = vrot.slane %v1077_v62, %v3159_v63 }
 0x1e3   : > { %v1038_v43 = vmul.f32 %v1037_v51, %v1028_v44  ;;  %v1039_v24 = vmul.f32 %v1037_v51, %v1027_v9  ;;  %v1005_v34 = vcombine.low %v1001_v21, %v1002_v41 }
 0x1e4   : > { %v1030_v46 = vpop.permute.xlu0 %1029 }
 0x1e5   : > { %v1032_v52 = vpop.permute.xlu1 %1031  ;;  %v1012_v49 = vrot.slane %v1005_v34, %v3159_v63 }
 0x1e6   : > { %v1033_v57 = vsel %vm426_vm7, %v1030_v46, %v1032_v52  ;;  %v1034_v58 = vsel %vm426_vm7, %v1032_v52, %v1030_v46 }
 0x1e7   : > { %v1041_v4 = vmul.f32 %v1040_v53, %v1034_v58  ;;  %v1042_v13 = vmul.f32 %v1040_v53, %v1033_v57  ;;  %v1151_v53 = vstv %s3666_s19  ;;  %v1154_v58 = vstv %s3670_s11  ;;  %s3760_s19 = sld [smem:[#allocation7 + $0x18]]  ;;  %s3762_s11 = sld [smem:[#allocation7 + $0x49]] }
 0x1e8   : > { %v1096_v3 = vpop.permute.xlu0 %1095  ;;  %v1019_v42 = vrot.slane %v1012_v49, %v3159_v63 }
 0x1e9   : > { %v1098_v60 = vpop.permute.xlu1 %1097  ;;  %v1043_v25 = vadd.f32 %v1041_v4, %v1038_v43  ;;  %v1044_v29 = vadd.f32 %v1042_v13, %v1039_v24  ;;  %v977_v13 = vrot.slane %v970_v55, %v3159_v63 }
 0x1ea   : > { %v1099_v27 = vsel %vm499_vm8, %v1096_v3, %v1098_v60  ;;  %v1100_v19 = vsel %vm499_vm8, %v1098_v60, %v1096_v3  ;;  %v1021_v23 = vmul.f32 %v1019_v42, %v3346_v30 }
 0x1eb   : > { %v1110_v36 = vmul.f32 %v1109_v7, %v1099_v27  ;;  %v1111_v37 = vmul.f32 %v1109_v7, %v1100_v19  ;;  %v1047_v46 = vcombine.low %v1043_v25, %v1044_v29  ;;  %v979_v28 = vmul.f32 %v977_v13, %v3350_v31 }
 0x1ec   : > { %v1102_v8 = vpop.permute.xlu0 %1101  ;;  %v1091_v27 = vrot.slane %v1084_v5, %v3159_v63  ;;  %v1281_v5 = vstv %s3725_s20  ;;  %s2581_s20 = sld [smem:[#allocation7 + $0x1b]] }
 0x1ed   : > { %v1104_v20 = vpop.permute.xlu1 %1103  ;;  %v1054_v1 = vrot.slane %v1047_v46, %v3159_v63 }
 0x1ee   : > { %v1105_v11 = vsel %vm499_vm8, %v1102_v8, %v1104_v20  ;;  %v1106_v12 = vsel %vm499_vm8, %v1104_v20, %v1102_v8  ;;  %v1196_v8 = vstv %s3690_s28  ;;  %v1022_v20 = vadd.f32 %v1021_v23, %v979_v28  ;;  %s3772_s28 = sld [smem:[#allocation7 + $0x4a]] }
 0x1ef   : > { %v1113_v26 = vmul.f32 %v1112_v16, %v1105_v11  ;;  %v1114_v35 = vmul.f32 %v1112_v16, %v1106_v12  ;;  %v1061_v14 = vrot.slane %v1054_v1, %v3159_v63  ;;  %v1093_v46 = vmul.f32 %v1091_v27, %v3376_v54 }
 0x1f0   : > { %v1138_v38 = vpop.permute.xlu0 %1137  ;;  %v1239_v1 = vstv %s3720_s30  ;;  %s3792_s30 = sld [smem:[#allocation7 + $0x4b]] }
 0x1f1   : > { %v1140_v47 = vpop.permute.xlu1 %1139  ;;  %v1115_v51 = vadd.f32 %v1113_v26, %v1110_v36  ;;  %v1116_v52 = vadd.f32 %v1114_v35, %v1111_v37  ;;  %v1063_v29 = vmul.f32 %v1061_v14, %v3367_v48 }
 0x1f2   : > { %v1141_v56 = vsel %vm542_vm9, %v1138_v38, %v1140_v47  ;;  %v1142_v57 = vsel %vm542_vm9, %v1140_v47, %v1138_v38 }
 0x1f3   : > { %v1119_v6 = vcombine.low %v1115_v51, %v1116_v52  ;;  %v1152_v3 = vmul.f32 %v1151_v53, %v1141_v56  ;;  %v1153_v59 = vmul.f32 %v1151_v53, %v1142_v57  ;;  %v1064_v36 = vadd.f32 %v1063_v29, %v1022_v20 }
 0x1f4   : > { %v1144_v61 = vpop.permute.xlu0 %1143  ;;  %v1242_v57 = vstv %s3718_s5  ;;  %s3789_s5 = sld [smem:[#allocation7 + $0x1a]] }
 0x1f5   : > { %v1146_v2 = vpop.permute.xlu1 %1145  ;;  %v1126_v43 = vrot.slane %v1119_v6, %v3159_v63  ;;  %v1094_v52 = vadd.f32 %v1093_v46, %v1064_v36 }
 0x1f6   : > { %v1147_v9 = vsel %vm542_vm9, %v1144_v61, %v1146_v2  ;;  %v1148_v44 = vsel %vm542_vm9, %v1146_v2, %v1144_v61 }
 0x1f7   : > { %v1155_v0 = vmul.f32 %v1154_v58, %v1147_v9  ;;  %v1156_v4 = vmul.f32 %v1154_v58, %v1148_v44  ;;  %v1133_v34 = vrot.slane %v1126_v43, %v3159_v63 }
 0x1f8   : > { %v1180_v60 = vpop.permute.xlu0 %1179 }
 0x1f9   : > { %v1157_v21 = vadd.f32 %v1155_v0, %v1152_v3  ;;  %v1158_v41 = vadd.f32 %v1156_v4, %v1153_v59  ;;  %v1182_v22 = vpop.permute.xlu1 %1181  ;;  %v1135_v47 = vmul.f32 %v1133_v34, %v3401_v17  ;;  %v1222_v0 = vld [vmem:[#allocation8 + $0x2] ss:$8 sm:$0x3] }
 0x1fa   : > { %v1183_v7 = vsel %vm585_vm10, %v1180_v60, %v1182_v22  ;;  %v1184_v16 = vsel %vm585_vm10, %v1182_v22, %v1180_v60  ;;  %v1284_v22 = vstv %s3727_s22  ;;  %s2582_s22 = sld [smem:[#allocation7 + $0x4c]] }
 0x1fb   : > { %v1161_v24 = vcombine.low %v1157_v21, %v1158_v41  ;;  %v1194_v12 = vmul.f32 %v1193_v15, %v1183_v7  ;;  %v1195_v26 = vmul.f32 %v1193_v15, %v1184_v16  ;;  %v1136_v54 = vadd.f32 %v1135_v47, %v1094_v52 }
 0x1fc   : > { %v1186_v25 = vpop.permute.xlu0 %1185  ;;  %v1353_v52 = vstv %s3760_s19  ;;  %s4017_s19 = sld [smem:[#allocation7 + $0x1f]] }
 0x1fd   : > { %v1168_v30 = vrot.slane %v1161_v24, %v3159_v63  ;;  %v1188_v19 = vpop.permute.xlu1 %1187 }
 0x1fe   : > { %v1189_v31 = vsel %vm585_vm10, %v1186_v25, %v1188_v19  ;;  %v1190_v11 = vsel %vm585_vm10, %v1188_v19, %v1186_v25 }
 0x1ff   : > { %v1197_v35 = vmul.f32 %v1196_v8, %v1189_v31  ;;  %v1198_v48 = vmul.f32 %v1196_v8, %v1190_v11  ;;  %v1175_v37 = vrot.slane %v1168_v30, %v3159_v63 }
 0x200   : > { %v1226_v18 = vpop.permute.xlu0 %1225 }
 0x201   : > { %v1199_v38 = vadd.f32 %v1197_v35, %v1194_v12  ;;  %v1200_v39 = vadd.f32 %v1198_v48, %v1195_v26  ;;  %v1228_v40 = vpop.permute.xlu1 %1227  ;;  %v1177_v53 = vmul.f32 %v1175_v37, %v3425_v50  ;;  %v1323_v12 = vstv %s3749_s27  ;;  %s4013_s27 = sld [smem:[#allocation7 + $0x1d]] }
 0x202   : > { %v1230_v2 = vsel %vm340_vm5, %v1228_v40, %v1226_v18  ;;  %v1229_v44 = vsel %vm340_vm5, %v1226_v18, %v1228_v40  ;;  %v1326_v35 = vstv %s3751_s18  ;;  %s4015_s18 = sld [smem:[#allocation7 + $0x4e]] }
 0x203   : > { %v1203_v49 = vcombine.low %v1199_v38, %v1200_v39  ;;  %v1178_v6 = vadd.f32 %v1177_v53, %v1136_v54  ;;  %v1240_v60 = vmul.f32 %v1239_v1, %v1230_v2  ;;  %v1241_v21 = vmul.f32 %v1239_v1, %v1229_v44 }
 0x204   : > { %v1232_v51 = vpop.permute.xlu0 %1231  ;;  %v1374_v2 = vstv %s3764_s21  ;;  %s4079_s21 = sld [smem:[#allocation7 + $0x54]] }
 0x205   : > { %v1210_v55 = vrot.slane %v1203_v49, %v3159_v63  ;;  %v1234_v56 = vpop.permute.xlu1 %1233 }
 0x206   : > { %v1236_v58 = vsel %vm340_vm5, %v1234_v56, %v1232_v51  ;;  %v1235_v62 = vsel %vm340_vm5, %v1232_v51, %v1234_v56 }
 0x207   : > { %v1217_v61 = vrot.slane %v1210_v55, %v3159_v63  ;;  %v1243_v3 = vmul.f32 %v1242_v57, %v1236_v58  ;;  %v1244_v4 = vmul.f32 %v1242_v57, %v1235_v62  ;;  %v1355_v58 = vstv %s3762_s11  ;;  %s4040_s11 = sld [smem:[#allocation7 + $0x4f]] }
 0x208   : > { %v1268_v42 = vpop.permute.xlu0 %1267 }
 0x209   : > { %v1219_v9 = vmul.f32 %v1217_v61, %v3444_v10  ;;  %v1270_v59 = vpop.permute.xlu1 %1269  ;;  %v1245_v43 = vadd.f32 %v1243_v3, %v1240_v60  ;;  %v1246_v15 = vadd.f32 %v1244_v4, %v1241_v21  ;;  %v1377_v3 = vstv %s3772_s28  ;;  %s4097_s28 = sld [smem:[#allocation7 + $0x26]] }
 0x20a   : > { %v1272_v14 = vsel %vm383_vm6, %v1270_v59, %v1268_v42  ;;  %v1271_v41 = vsel %vm383_vm6, %v1268_v42, %v1270_v59  ;;  %v2736_v42 = vld [vmem:[#allocation2] ss:$2 sm:$0x3] }
 0x20b   : > { %v1220_v13 = vadd.f32 %v1219_v9, %v1178_v6  ;;  %v1282_v28 = vmul.f32 %v1281_v5, %v1272_v14  ;;  %v1283_v25 = vmul.f32 %v1281_v5, %v1271_v41  ;;  %v1249_v31 = vcombine.low %v1245_v43, %v1246_v15  ;;  %v2737_v9 = vld [vmem:[#allocation2 + $0x1] ss:$2 sm:$0x3] }
 0x20c   : > { %v1274_v23 = vpop.permute.xlu0 %1273  ;;  %v1354_v6 = vmul.f32 %v2736_v42, %v1353_v52  ;;  %v1356_v44 = vmul.f32 %v2737_v9, %v1355_v58  ;;  %v3798_v5 = vld [vmem:[#allocation8 + $0x7] ss:$8 sm:$0x3] }
 0x20d   : > { %v1223_v10 = vmul.f32 %v1222_v0, %v1220_v13  ;;  %v1276_v24 = vpop.permute.xlu1 %1275  ;;  %v1256_v37 = vrot.slane %v1249_v31, %v3159_v63  ;;  %v3794_v0 = vld [vmem:[#allocation8 + $0x10] ss:$8 sm:$0x3] }
 0x20e   : > { %v1277_v7 = vsel %vm383_vm6, %v1274_v23, %v1276_v24  ;;  %v1278_v16 = vsel %vm383_vm6, %v1276_v24, %v1274_v23  ;;  %v1357_v15 = vadd.f32 %v1356_v44, %v1354_v6 }
 0x20f   : > { %v3758_v8 = vadd.f32 %v1223_v10, %v3622_v32  ;;  %v1285_v29 = vmul.f32 %v1284_v22, %v1278_v16  ;;  %v1286_v27 = vmul.f32 %v1284_v22, %v1277_v7  ;;  %v1263_v54 = vrot.slane %v1256_v37, %v3159_v63  ;;  %v3806_v16 = vld [vmem:[#allocation8 + $0x11] ss:$8 sm:$0x3] }
 0x210   : > { %v1310_v30 = vpop.permute.xlu0 %1309 }
 0x211   : > { %v1287_v19 = vadd.f32 %v1285_v29, %v1282_v28  ;;  %v1288_v20 = vadd.f32 %v1286_v27, %v1283_v25  ;;  %v1312_v34 = vpop.permute.xlu1 %1311  ;;  %v1265_v14 = vmul.f32 %v3798_v5, %v1263_v54 }
 0x212   : > { %v1313_v32 = vsel %vm426_vm7, %v1310_v30, %v1312_v34  ;;  %v1314_v26 = vsel %vm426_vm7, %v1312_v34, %v1310_v30 }
 0x213   : > { %v1291_v11 = vcombine.low %v1287_v19, %v1288_v20  ;;  %v1324_v40 = vmul.f32 %v1323_v12, %v1314_v26  ;;  %v1325_v46 = vmul.f32 %v1323_v12, %v1313_v32  ;;  %v1419_v12 = vstv %s3792_s30  ;;  %v3815_v26 = vld [vmem:[#allocation8 + $0x12] ss:$8 sm:$0x3]  ;;  %s4111_s30 = sld [smem:[#allocation7 + $0x55]] }
 0x214   : > { %v1316_v48 = vpop.permute.xlu0 %1315 }
 0x215   : > { %v1298_v18 = vrot.slane %v1291_v11, %v3159_v63  ;;  %v1318_v36 = vpop.permute.xlu1 %1317  ;;  %v1416_v11 = vstv %s3789_s5  ;;  %s4099_s5 = sld [smem:[#allocation7 + $0x57]] }
 0x216   : > { %v1319_v38 = vsel %vm426_vm7, %v1316_v48, %v1318_v36  ;;  %v1320_v39 = vsel %vm426_vm7, %v1318_v36, %v1316_v48 }
 0x217   : > { %v1327_v47 = vmul.f32 %v1326_v35, %v1320_v39  ;;  %v1328_v49 = vmul.f32 %v1326_v35, %v1319_v38  ;;  %v1305_v53 = vrot.slane %v1298_v18, %v3159_v63  ;;  %v1358_v35 = vmul.f32 %v3815_v26, %v1357_v15 }
 0x218   : > { %v1361_v51 = vpop.permute.xlu0 %1360  ;;  %v1461_v15 = vstv %s2582_s22  ;;  %s4131_s22 = sld [smem:[#allocation7 + $0x56]] }
 0x219   : > { %v1329_v55 = vadd.f32 %v1327_v47, %v1324_v40  ;;  %v1330_v56 = vadd.f32 %v1328_v49, %v1325_v46  ;;  %v1363_v57 = vpop.permute.xlu1 %1362  ;;  %v1307_v4 = vmul.f32 %v3794_v0, %v1305_v53 }
 0x21a   : > { %v1364_v61 = vsel %vm499_vm8, %v1361_v51, %v1363_v57  ;;  %v1365_v62 = vsel %vm499_vm8, %v1363_v57, %v1361_v51 }
 0x21b   : > { %v1333_v1 = vcombine.low %v1329_v55, %v1330_v56  ;;  %v1375_v21 = vmul.f32 %v1374_v2, %v1364_v61  ;;  %v1376_v10 = vmul.f32 %v1374_v2, %v1365_v62  ;;  %v1308_v7 = vadd.f32 %v1307_v4, %v1265_v14 }
 0x21c   : > { %v1367_v59 = vpop.permute.xlu0 %1366 }
 0x21d   : > { %v1340_v13 = vrot.slane %v1333_v1, %v3159_v63  ;;  %v1369_v60 = vpop.permute.xlu1 %1368 }
 0x21e   : > { %v1370_v41 = vsel %vm499_vm8, %v1367_v59, %v1369_v60  ;;  %v1371_v22 = vsel %vm499_vm8, %v1369_v60, %v1367_v59 }
 0x21f   : > { %v1347_v23 = vrot.slane %v1340_v13, %v3159_v63  ;;  %v1378_v43 = vmul.f32 %v1377_v3, %v1370_v41  ;;  %v1379_v24 = vmul.f32 %v1377_v3, %v1371_v22 }
 0x220   : > { %v1403_v28 = vpop.permute.xlu0 %1402 }
 0x221   : > { %v1349_v25 = vmul.f32 %v3806_v16, %v1347_v23  ;;  %v1380_v29 = vadd.f32 %v1378_v43, %v1375_v21  ;;  %v1381_v27 = vadd.f32 %v1379_v24, %v1376_v10  ;;  %v1405_v30 = vpop.permute.xlu1 %1404  ;;  %v1458_v23 = vstv %s2581_s20  ;;  %s4128_s20 = sld [smem:[#allocation7 + $0x25]] }
 0x222   : > { %v1406_v19 = vsel %vm542_vm9, %v1403_v28, %v1405_v30  ;;  %v1407_v20 = vsel %vm542_vm9, %v1405_v30, %v1403_v28 }
 0x223   : > { %v1350_v34 = vadd.f32 %v1349_v25, %v1308_v7  ;;  %v1384_v31 = vcombine.low %v1380_v29, %v1381_v27  ;;  %v1417_v36 = vmul.f32 %v1416_v11, %v1406_v19  ;;  %v1418_v40 = vmul.f32 %v1416_v11, %v1407_v20 }
 0x224   : > { %v1409_v32 = vpop.permute.xlu0 %1408 }
 0x225   : > { %v1391_v48 = vrot.slane %v1384_v31, %v3159_v63  ;;  %v1411_v18 = vpop.permute.xlu1 %1410  ;;  %v1359_v51 = vadd.f32 %v1358_v35, %v1350_v34 }
 0x226   : > { %v1412_v37 = vsel %vm542_vm9, %v1409_v32, %v1411_v18  ;;  %v1413_v38 = vsel %vm542_vm9, %v1411_v18, %v1409_v32 }
 0x227   : > { %v1398_v39 = vrot.slane %v1391_v48, %v3159_v63  ;;  %v1420_v46 = vmul.f32 %v1419_v12, %v1412_v37  ;;  %v1421_v47 = vmul.f32 %v1419_v12, %v1413_v38  ;;  %v1487_v38 = vld [vmem:[#allocation8 + $0x3] ss:$8 sm:$0x3] }
 0x228   : > { %v1491_v49 = vpop.permute.xlu0 %1490 }
 0x229   : > { %v1400_v52 = vmul.f32 %v1398_v39, %v3401_v17  ;;  %v1422_v53 = vadd.f32 %v1420_v46, %v1417_v36  ;;  %v1423_v55 = vadd.f32 %v1421_v47, %v1418_v40  ;;  %v1493_v56 = vpop.permute.xlu1 %1492  ;;  %v3912_v36 = vld [vmem:[#allocation8 + $0x15] ss:$8 sm:$0x3] }
 0x22a   : > { %v3828_v57 = vsel %vm1494_vm11, %v1491_v49, %v1493_v56  ;;  %v3832_v58 = vsel %vm1494_vm11, %v1493_v56, %v1491_v49 }
 0x22b   : > { %v1401_v54 = vadd.f32 %v1400_v52, %v1359_v51  ;;  %v1426_v61 = vcombine.low %v1422_v53, %v1423_v55  ;;  %1505 = vrot.lane.b32.xlu1 %v3832_v58, %s2920_s24  ;;  %1503 = vrot.lane.b32.xlu0 %v3828_v57, %s2920_s24 }
 0x22c   : > { %v1498_v17 = vpop.permute.xlu0 %1497 }
 0x22d   : > { %v1433_v62 = vrot.slane %v1426_v61, %v3159_v63  ;;  %v1500_v1 = vpop.permute.xlu1 %1499 }
 0x22e   : > { %v3841_v2 = vsel %vm1494_vm11, %v1498_v17, %v1500_v1  ;;  %v3845_v42 = vsel %vm1494_vm11, %v1500_v1, %v1498_v17 }
 0x22f   : > { %v1440_v6 = vrot.slane %v1433_v62, %v3159_v63  ;;  %1511 = vrot.lane.b32.xlu1 %v3845_v42, %s2920_s24  ;;  %1509 = vrot.lane.b32.xlu0 %v3841_v2, %s2920_s24 }
 0x230   : > { %v1790_v9 = vpop.permute.xlu0 %1789 }
 0x231   : > { %v1442_v44 = vmul.f32 %v1440_v6, %v3425_v50  ;;  %v1792_v3 = vpop.permute.xlu1 %1791 }
 0x232   : > { %v3878_v24 = vsel %vm1793_vm12, %v1792_v3, %v1790_v9  ;;  %v3884_v7 = vsel %vm1793_vm12, %v1790_v9, %v1792_v3 }
 0x233   : > { %v1443_v59 = vadd.f32 %v1442_v44, %v1401_v54  ;;  %1547 = vrot.lane.b32.xlu1 %v3832_v58, %s2921_s25  ;;  %1545 = vrot.lane.b32.xlu0 %v3828_v57, %s2921_s25 }
 0x234   : > { %v1797_v4 = vpop.permute.xlu0 %1796 }
 0x235   : > { %v1799_v13 = vpop.permute.xlu1 %1798 }
 0x236   : > { %v3896_v12 = vsel %vm1793_vm12, %v1799_v13, %v1797_v4  ;;  %v3900_v32 = vsel %vm1793_vm12, %v1797_v4, %v1799_v13 }
 0x237   : > { %1553 = vrot.lane.b32.xlu1 %v3845_v42, %s2921_s25  ;;  %1551 = vrot.lane.b32.xlu0 %v3841_v2, %s2921_s25 }
 0x238   : > { %v2089_v60 = vpop.permute.xlu0 %2088 }
 0x239   : > { %v2091_v14 = vpop.permute.xlu1 %2090 }
 0x23a   : > { %v3929_v47 = vsel %vm2092_vm13, %v2091_v14, %v2089_v60  ;;  %v3933_v49 = vsel %vm2092_vm13, %v2089_v60, %v2091_v14 }
 0x23b   : > { %1589 = vrot.lane.b32.xlu1 %v3832_v58, %s2922_s29  ;;  %1587 = vrot.lane.b32.xlu0 %v3828_v57, %s2922_s29 }
 0x23c   : > { %v2096_v50 = vpop.permute.xlu0 %2095 }
 0x23d   : > { %v2098_v21 = vpop.permute.xlu1 %2097 }
 0x23e   : > { %v3941_v51 = vsel %vm2092_vm13, %v2096_v50, %v2098_v21 }
 0x23f   : > { %1595 = vrot.lane.b32.xlu1 %v3845_v42, %s2922_s29  ;;  %1593 = vrot.lane.b32.xlu0 %v3841_v2, %s2922_s29 }
 0x240   : > { %v1445_v41 = vpop.permute.xlu0 %1444 }
 0x241   : > { %v1447_v22 = vpop.permute.xlu1 %1446 }
 0x242   : > { %v1448_v10 = vsel %vm585_vm10, %v1445_v41, %v1447_v22  ;;  %v1449_v43 = vsel %vm585_vm10, %v1447_v22, %v1445_v41 }
 0x243   : > { %1661 = vrot.lane.b32.xlu1 %v3832_v58, %s2923_s8  ;;  %1659 = vrot.lane.b32.xlu0 %v3828_v57, %s2923_s8  ;;  %v1459_v25 = vmul.f32 %v1458_v23, %v1448_v10  ;;  %v1460_v29 = vmul.f32 %v1458_v23, %v1449_v43  ;;  %v1559_v23 = vstv %s4013_s27  ;;  %v1562_v43 = vstv %s4015_s18  ;;  %s4170_s27 = sld [smem:[#allocation7 + $0x5c]]  ;;  %s4172_s18 = sld [smem:[#allocation7 + $0x2d]] }
 0x244   : > { %v1451_v28 = vpop.permute.xlu0 %1450 }
 0x245   : > { %v1453_v27 = vpop.permute.xlu1 %1452 }
 0x246   : > { %v1454_v30 = vsel %vm585_vm10, %v1451_v28, %v1453_v27  ;;  %v1455_v19 = vsel %vm585_vm10, %v1453_v27, %v1451_v28 }
 0x247   : > { %v1462_v20 = vmul.f32 %v1461_v15, %v1454_v30  ;;  %v1463_v34 = vmul.f32 %v1461_v15, %v1455_v19  ;;  %1804 = vrot.lane.b32.xlu1 %v3878_v24, %s2920_s24  ;;  %1802 = vrot.lane.b32.xlu0 %v3884_v7, %s2920_s24  ;;  %v1631_v15 = vstv %s4017_s19  ;;  %s4174_s19 = sld [smem:[#allocation7 + $0x5e]] }
 0x249   : > { %v1464_v31 = vadd.f32 %v1462_v20, %v1459_v25  ;;  %v1465_v11 = vadd.f32 %v1463_v34, %v1460_v29 }
 0x24b   : > { %v1468_v35 = vcombine.low %v1464_v31, %v1465_v11  ;;  %1810 = vrot.lane.b32.xlu1 %v3896_v12, %s2920_s24  ;;  %1808 = vrot.lane.b32.xlu0 %v3900_v32, %s2920_s24 }
 0x24d   : > { %v1475_v48 = vrot.slane %v1468_v35, %v3159_v63  ;;  %v1633_v35 = vmul.f32 %v1631_v15, %v3832_v58 }
 0x24f   : > { %v1482_v18 = vrot.slane %v1475_v48, %v3159_v63  ;;  %1846 = vrot.lane.b32.xlu1 %v3878_v24, %s2921_s25  ;;  %1844 = vrot.lane.b32.xlu0 %v3884_v7, %s2921_s25 }
 0x251   : > { %v1484_v37 = vmul.f32 %v3912_v36, %v1482_v18 }
 0x253   : > { %v1485_v39 = vadd.f32 %v1484_v37, %v1443_v59  ;;  %1852 = vrot.lane.b32.xlu1 %v3896_v12, %s2921_s25  ;;  %1850 = vrot.lane.b32.xlu0 %v3900_v32, %s2921_s25 }
 0x255   : > { %v1488_v40 = vmul.f32 %v1487_v38, %v1485_v39 }
 0x257   : > { %v3920_v46 = vadd.f32 %v1488_v40, %v3758_v8  ;;  %1888 = vrot.lane.b32.xlu1 %v3878_v24, %s2922_s29  ;;  %1886 = vrot.lane.b32.xlu0 %v3884_v7, %s2922_s29  ;;  %v3939_v8 = vsel %vm2092_vm13, %v2098_v21, %v2096_v50 }
 0x25b   : > { %1894 = vrot.lane.b32.xlu1 %v3896_v12, %s2922_s29  ;;  %1892 = vrot.lane.b32.xlu0 %v3900_v32, %s2922_s29 }
 0x25f   : > { %2103 = vrot.lane.b32.xlu1 %v3929_v47, %s2920_s24  ;;  %2101 = vrot.lane.b32.xlu0 %v3933_v49, %s2920_s24 }
 0x263   : > { %2109 = vrot.lane.b32.xlu1 %v3939_v8, %s2920_s24  ;;  %2107 = vrot.lane.b32.xlu0 %v3941_v51, %s2920_s24  ;;  %s2583_s24 = sld [smem:[#allocation7 + $0x1c]] }
 0x267   : > { %2145 = vrot.lane.b32.xlu1 %v3929_v47, %s2921_s25  ;;  %2143 = vrot.lane.b32.xlu0 %v3933_v49, %s2921_s25 }
 0x269   : > { %v1517_v54 = vstv %s2583_s24  ;;  %s4148_s24 = sld [smem:[#allocation7 + $0x2a]] }
 0x26b   : > { %2151 = vrot.lane.b32.xlu1 %v3939_v8, %s2921_s25  ;;  %2149 = vrot.lane.b32.xlu0 %v3941_v51, %s2921_s25  ;;  %s2584_s25 = sld [smem:[#allocation7 + $0x4d]] }
 0x26f   : > { %1667 = vrot.lane.b32.xlu1 %v3845_v42, %s2923_s8  ;;  %1665 = vrot.lane.b32.xlu0 %v3841_v2, %s2923_s8 }
 0x271   : > { %v1520_v17 = vstv %s2584_s25  ;;  %s4151_s25 = sld [smem:[#allocation7 + $0x5b]] }
 0x273   : > { %2187 = vrot.lane.b32.xlu1 %v3929_v47, %s2922_s29  ;;  %2185 = vrot.lane.b32.xlu0 %v3933_v49, %s2922_s29 }
 0x277   : > { %2193 = vrot.lane.b32.xlu1 %v3939_v8, %s2922_s29  ;;  %2191 = vrot.lane.b32.xlu0 %v3941_v51, %s2922_s29  ;;  %s4003_s29 = sld [smem:[#allocation7 + $0x50]] }
 0x27b   : > { %1703 = vrot.lane.b32.xlu1 %v3832_v58, %s2924_s7  ;;  %1701 = vrot.lane.b32.xlu0 %v3828_v57, %s2924_s7 }
 0x27d   : > { %v1634_v50 = vstv %s4003_s29  ;;  %s4167_s29 = sld [smem:[#allocation7 + $0x2b]] }
 0x27e   : > { %v1635_v28 = vmul.f32 %v1634_v50, %v3841_v2  ;;  %v1636_v27 = vmul.f32 %v1634_v50, %v3845_v42 }
 0x27f   : > { %1709 = vrot.lane.b32.xlu1 %v3845_v42, %s2924_s7  ;;  %1707 = vrot.lane.b32.xlu0 %v3841_v2, %s2924_s7 }
 0x280   : > { %v1638_v40 = vadd.f32 %v1636_v27, %v1633_v35 }
 0x283   : > { %1960 = vrot.lane.b32.xlu1 %v3878_v24, %s2923_s8  ;;  %1958 = vrot.lane.b32.xlu0 %v3884_v7, %s2923_s8 }
 0x287   : > { %1966 = vrot.lane.b32.xlu1 %v3896_v12, %s2923_s8  ;;  %1964 = vrot.lane.b32.xlu0 %v3900_v32, %s2923_s8 }
 0x28b   : > { %1745 = vrot.lane.b32.xlu1 %v3832_v58, %s2925_s10  ;;  %1743 = vrot.lane.b32.xlu0 %v3828_v57, %s2925_s10  ;;  %v1604_v58 = vstv %s4040_s11  ;;  %s4185_s11 = sld [smem:[#allocation7 + $0x51]] }
 0x28f   : > { %1751 = vrot.lane.b32.xlu1 %v3845_v42, %s2925_s10  ;;  %1749 = vrot.lane.b32.xlu0 %v3841_v2, %s2925_s10  ;;  %v1632_v42 = vmul.f32 %v1631_v15, %v3828_v57 }
 0x291   : > { %v1637_v39 = vadd.f32 %v1635_v28, %v1632_v42 }
 0x293   : > { %2002 = vrot.lane.b32.xlu1 %v3878_v24, %s2924_s7  ;;  %2000 = vrot.lane.b32.xlu0 %v3884_v7, %s2924_s7 }
 0x297   : > { %2008 = vrot.lane.b32.xlu1 %v3896_v12, %s2924_s7  ;;  %2006 = vrot.lane.b32.xlu0 %v3900_v32, %s2924_s7 }
 0x29b   : > { %2259 = vrot.lane.b32.xlu1 %v3929_v47, %s2923_s8  ;;  %2257 = vrot.lane.b32.xlu0 %v3933_v49, %s2923_s8 }
 0x29d   : > { %v1506_v52 = vpop.permute.xlu1 %1505  ;;  %v1504_v53 = vpop.permute.xlu0 %1503 }
 0x29e   : > { %v1507_v55 = vsel %vm340_vm5, %v1504_v53, %v1506_v52  ;;  %v1508_v56 = vsel %vm340_vm5, %v1506_v52, %v1504_v53 }
 0x29f   : > { %2265 = vrot.lane.b32.xlu1 %v3939_v8, %s2923_s8  ;;  %2263 = vrot.lane.b32.xlu0 %v3941_v51, %s2923_s8  ;;  %v1518_v9 = vmul.f32 %v1517_v54, %v1508_v56  ;;  %v1519_v44 = vmul.f32 %v1517_v54, %v1507_v55  ;;  %s4037_s8 = sld [smem:[#allocation7 + $0x1e]] }
 0x2a1   : > { %v1512_v61 = vpop.permute.xlu1 %1511  ;;  %v1510_v62 = vpop.permute.xlu0 %1509 }
 0x2a2   : > { %v1513_v1 = vsel %vm340_vm5, %v1510_v62, %v1512_v61  ;;  %v1514_v6 = vsel %vm340_vm5, %v1512_v61, %v1510_v62 }
 0x2a3   : > { %2044 = vrot.lane.b32.xlu1 %v3878_v24, %s2925_s10  ;;  %v1521_v3 = vmul.f32 %v1520_v17, %v1514_v6  ;;  %v1522_v59 = vmul.f32 %v1520_v17, %v1513_v1  ;;  %2042 = vrot.lane.b32.xlu0 %v3884_v7, %s2925_s10  ;;  %v1641_v17 = vcombine.low %v1637_v39, %v1638_v40 }
 0x2a5   : > { %v1548_v4 = vpop.permute.xlu1 %1547  ;;  %v1523_v13 = vadd.f32 %v1521_v3, %v1518_v9  ;;  %v1524_v60 = vadd.f32 %v1522_v59, %v1519_v44  ;;  %v1546_v14 = vpop.permute.xlu0 %1545  ;;  %v1601_v56 = vstv %s4037_s8  ;;  %s4177_s8 = sld [smem:[#allocation7 + $0x20]] }
 0x2a6   : > { %v1549_v21 = vsel %vm383_vm6, %v1546_v14, %v1548_v4  ;;  %v1550_v41 = vsel %vm383_vm6, %v1548_v4, %v1546_v14 }
 0x2a7   : > { %2050 = vrot.lane.b32.xlu1 %v3896_v12, %s2925_s10  ;;  %v1527_v22 = vcombine.low %v1523_v13, %v1524_v60  ;;  %2048 = vrot.lane.b32.xlu0 %v3900_v32, %s2925_s10  ;;  %v1560_v30 = vmul.f32 %v1559_v23, %v1550_v41  ;;  %v1561_v31 = vmul.f32 %v1559_v23, %v1549_v21 }
 0x2a8   : > { %v1648_v41 = vrot.slane %v1641_v17, %v3159_v63 }
 0x2a9   : > { %v1554_v10 = vpop.permute.xlu1 %1553  ;;  %v1534_v25 = vrot.slane %v1527_v22, %v3159_v63  ;;  %v1552_v29 = vpop.permute.xlu0 %1551 }
 0x2aa   : > { %v1555_v19 = vsel %vm383_vm6, %v1552_v29, %v1554_v10  ;;  %v1556_v20 = vsel %vm383_vm6, %v1554_v10, %v1552_v29 }
 0x2ab   : > { %2301 = vrot.lane.b32.xlu1 %v3929_v47, %s2924_s7  ;;  %v1541_v34 = vrot.slane %v1534_v25, %v3159_v63  ;;  %v1563_v2 = vmul.f32 %v1562_v43, %v1556_v20  ;;  %v1564_v11 = vmul.f32 %v1562_v43, %v1555_v19  ;;  %2299 = vrot.lane.b32.xlu0 %v3933_v49, %s2924_s7 }
 0x2ad   : > { %v1590_v48 = vpop.permute.xlu1 %1589  ;;  %v1565_v18 = vadd.f32 %v1563_v2, %v1560_v30  ;;  %v1566_v37 = vadd.f32 %v1564_v11, %v1561_v31  ;;  %v1588_v38 = vpop.permute.xlu0 %1587  ;;  %v1543_v13 = vmul.f32 %v3798_v5, %v1541_v34  ;;  %v1655_v30 = vrot.slane %v1648_v41, %v3159_v63 }
 0x2ae   : > { %v1591_v52 = vsel %vm426_vm7, %v1588_v38, %v1590_v48  ;;  %v1592_v53 = vsel %vm426_vm7, %v1590_v48, %v1588_v38  ;;  %v1819_v31 = vstv %s4079_s21  ;;  %s4211_s21 = sld [smem:[#allocation7 + $0x5d]] }
 0x2af   : > { %2307 = vrot.lane.b32.xlu1 %v3939_v8, %s2924_s7  ;;  %v1569_v55 = vcombine.low %v1565_v18, %v1566_v37  ;;  %2305 = vrot.lane.b32.xlu0 %v3941_v51, %s2924_s7  ;;  %v1602_v62 = vmul.f32 %v1601_v56, %v1592_v53  ;;  %v1603_v44 = vmul.f32 %v1601_v56, %v1591_v52  ;;  %s4077_s7 = sld [smem:[#allocation7 + $0x23]] }
 0x2b0   : > { %v1657_v18 = vmul.f32 %v3815_v26, %v1655_v30 }
 0x2b1   : > { %v1596_v57 = vpop.permute.xlu1 %1595  ;;  %v1576_v54 = vrot.slane %v1569_v55, %v3159_v63  ;;  %v1594_v61 = vpop.permute.xlu0 %1593 }
 0x2b2   : > { %v1597_v1 = vsel %vm426_vm7, %v1594_v61, %v1596_v57  ;;  %v1598_v6 = vsel %vm426_vm7, %v1596_v57, %v1594_v61 }
 0x2b3   : > { %2343 = vrot.lane.b32.xlu1 %v3929_v47, %s2925_s10  ;;  %v1583_v9 = vrot.slane %v1576_v54, %v3159_v63  ;;  %v1605_v3 = vmul.f32 %v1604_v58, %v1598_v6  ;;  %v1606_v59 = vmul.f32 %v1604_v58, %v1597_v1  ;;  %2341 = vrot.lane.b32.xlu0 %v3933_v49, %s2925_s10  ;;  %v1930_v58 = vstv %s4097_s28  ;;  %s4228_s28 = sld [smem:[#allocation7 + $0x21]] }
 0x2b4   : > { %v1933_v54 = vstv %s4099_s5  ;;  %s4231_s5 = sld [smem:[#allocation7 + $0x52]] }
 0x2b5   : > { %v1662_v4 = vpop.permute.xlu1 %1661  ;;  %v1585_v60 = vmul.f32 %v3794_v0, %v1583_v9  ;;  %v1607_v14 = vadd.f32 %v1605_v3, %v1602_v62  ;;  %v1608_v50 = vadd.f32 %v1606_v59, %v1603_v44  ;;  %v1660_v21 = vpop.permute.xlu0 %1659  ;;  %v1816_v20 = vstv %s4077_s7  ;;  %s4205_s7 = sld [smem:[#allocation7 + $0x2c]] }
 0x2b6   : > { %v4086_v22 = vsel %vm499_vm8, %v1660_v21, %v1662_v4  ;;  %v4090_v23 = vsel %vm499_vm8, %v1662_v4, %v1660_v21  ;;  %v1861_v9 = vstv %s4111_s30  ;;  %v1931_v44 = vmul.f32 %v1930_v58, %v3884_v7  ;;  %s4254_s30 = sld [smem:[#allocation7 + $0x58]] }
 0x2b7   : > { %2349 = vrot.lane.b32.xlu1 %v3939_v8, %s2925_s10  ;;  %v1586_v10 = vadd.f32 %v1585_v60, %v1543_v13  ;;  %v1611_v43 = vcombine.low %v1607_v14, %v1608_v50  ;;  %2347 = vrot.lane.b32.xlu0 %v3941_v51, %s2925_s10  ;;  %s4108_s10 = sld [smem:[#allocation7 + $0x24]]  ;;  %v1932_v3 = vmul.f32 %v1930_v58, %v3878_v24 }
 0x2b8   : > { %v1934_v59 = vmul.f32 %v1933_v54, %v3900_v32  ;;  %v1935_v60 = vmul.f32 %v1933_v54, %v3896_v12 }
 0x2b9   : > { %v1805_v15 = vpop.permute.xlu1 %1804  ;;  %v1618_v28 = vrot.slane %v1611_v43, %v3159_v63  ;;  %v1803_v25 = vpop.permute.xlu0 %1802 }
 0x2ba   : > { %v1806_v29 = vsel %vm340_vm5, %v1803_v25, %v1805_v15  ;;  %v1807_v27 = vsel %vm340_vm5, %v1805_v15, %v1803_v25  ;;  %v1936_v25 = vadd.f32 %v1934_v59, %v1931_v44  ;;  %v1937_v12 = vadd.f32 %v1935_v60, %v1932_v3 }
 0x2bb   : > { %v1625_v19 = vrot.slane %v1618_v28, %v3159_v63  ;;  %v1817_v42 = vmul.f32 %v1816_v20, %v1807_v27  ;;  %v1818_v38 = vmul.f32 %v1816_v20, %v1806_v29  ;;  %v2118_v44 = vstv %s4151_s25  ;;  %s4294_s25 = sld [smem:[#allocation7 + $0x59]] }
 0x2bd   : > { %v1811_v34 = vpop.permute.xlu1 %1810  ;;  %v1627_v2 = vmul.f32 %v3806_v16, %v1625_v19  ;;  %v1809_v11 = vpop.permute.xlu0 %1808  ;;  %v1858_v1 = vstv %s4108_s10  ;;  %v1900_v19 = vstv %s4128_s20  ;;  %s4249_s10 = sld [smem:[#allocation7 + $0x27]]  ;;  %s4268_s20 = sld [smem:[#allocation7 + $0x22]] }
 0x2be   : > { %v1812_v35 = vsel %vm340_vm5, %v1809_v11, %v1811_v34  ;;  %v1813_v48 = vsel %vm340_vm5, %v1811_v34, %v1809_v11  ;;  %v1903_v34 = vstv %s4131_s22  ;;  %v1940_v11 = vcombine.low %v1936_v25, %v1937_v12  ;;  %s4273_s22 = sld [smem:[#allocation7 + $0x53]] }
 0x2bf   : > { %v1628_v37 = vadd.f32 %v1627_v2, %v1586_v10  ;;  %v1820_v39 = vmul.f32 %v1819_v31, %v1813_v48  ;;  %v1821_v40 = vmul.f32 %v1819_v31, %v1812_v35 }
 0x2c0   : > { %v1947_v54 = vrot.slane %v1940_v11, %v3159_v63 }
 0x2c1   : > { %v1847_v52 = vpop.permute.xlu1 %1846  ;;  %v1822_v53 = vadd.f32 %v1820_v39, %v1817_v42  ;;  %v1823_v55 = vadd.f32 %v1821_v40, %v1818_v38  ;;  %v1845_v56 = vpop.permute.xlu0 %1844  ;;  %v4119_v57 = vadd.f32 %v1657_v18, %v1628_v37 }
 0x2c2   : > { %v1848_v61 = vsel %vm383_vm6, %v1845_v56, %v1847_v52  ;;  %v1849_v17 = vsel %vm383_vm6, %v1847_v52, %v1845_v56 }
 0x2c3   : > { %v1826_v62 = vcombine.low %v1822_v53, %v1823_v55  ;;  %v1859_v14 = vmul.f32 %v1858_v1, %v1849_v17  ;;  %v1860_v7 = vmul.f32 %v1858_v1, %v1848_v61 }
 0x2c5   : > { %v1853_v6 = vpop.permute.xlu1 %1852  ;;  %v1833_v4 = vrot.slane %v1826_v62, %v3159_v63  ;;  %v1851_v13 = vpop.permute.xlu0 %1850 }
 0x2c6   : > { %v1854_v50 = vsel %vm383_vm6, %v1851_v13, %v1853_v6  ;;  %v1855_v21 = vsel %vm383_vm6, %v1853_v6, %v1851_v13  ;;  %v2115_v6 = vstv %s4148_s24  ;;  %s4289_s24 = sld [smem:[#allocation7 + $0x28]] }
 0x2c7   : > { %v1840_v41 = vrot.slane %v1833_v4, %v3159_v63  ;;  %v1862_v24 = vmul.f32 %v1861_v9, %v1855_v21  ;;  %v1863_v10 = vmul.f32 %v1861_v9, %v1854_v50 }
 0x2c9   : > { %v1889_v32 = vpop.permute.xlu1 %1888  ;;  %v1864_v43 = vadd.f32 %v1862_v24, %v1859_v14  ;;  %v1865_v15 = vadd.f32 %v1863_v10, %v1860_v7  ;;  %v1887_v28 = vpop.permute.xlu0 %1886  ;;  %v1842_v52 = vmul.f32 %v3798_v5, %v1840_v41  ;;  %v1954_v14 = vrot.slane %v1947_v54, %v3159_v63 }
 0x2ca   : > { %v1890_v29 = vsel %vm426_vm7, %v1887_v28, %v1889_v32  ;;  %v1891_v27 = vsel %vm426_vm7, %v1889_v32, %v1887_v28 }
 0x2cb   : > { %v1868_v30 = vcombine.low %v1864_v43, %v1865_v15  ;;  %v1901_v42 = vmul.f32 %v1900_v19, %v1891_v27  ;;  %v1902_v37 = vmul.f32 %v1900_v19, %v1890_v29  ;;  %v2157_v27 = vstv %s4167_s29  ;;  %s4303_s29 = sld [smem:[#allocation7 + $0x2e]] }
 0x2cd   : > { %v1895_v20 = vpop.permute.xlu1 %1894  ;;  %v1875_v31 = vrot.slane %v1868_v30, %v3159_v63  ;;  %v1893_v2 = vpop.permute.xlu0 %1892  ;;  %v1956_v30 = vmul.f32 %v3815_v26, %v1954_v14 }
 0x2ce   : > { %v1896_v35 = vsel %vm426_vm7, %v1893_v2, %v1895_v20  ;;  %v1897_v48 = vsel %vm426_vm7, %v1895_v20, %v1893_v2  ;;  %v2160_v20 = vstv %s4170_s27  ;;  %s4312_s27 = sld [smem:[#allocation7 + $0x5f]] }
 0x2cf   : > { %v1882_v18 = vrot.slane %v1875_v31, %v3159_v63  ;;  %v1904_v38 = vmul.f32 %v1903_v34, %v1897_v48  ;;  %v1905_v39 = vmul.f32 %v1903_v34, %v1896_v35  ;;  %v2229_v34 = vstv %s4172_s18  ;;  %s4326_s18 = sld [smem:[#allocation7 + $0x29]] }
 0x2d0   : > { %v2232_v31 = vstv %s4174_s19  ;;  %v1673_v35 = vstv %s4177_s8  ;;  %v2231_v54 = vmul.f32 %v2229_v34, %v3929_v47  ;;  %s4329_s19 = sld [smem:[#allocation7 + $0x5a]]  ;;  %s4344_s8 = sld [smem:[#allocation7 + $0x2f]] }
 0x2d1   : > { %v2104_v40 = vpop.permute.xlu1 %2103  ;;  %v1884_v53 = vmul.f32 %v3794_v0, %v1882_v18  ;;  %v1906_v55 = vadd.f32 %v1904_v38, %v1901_v42  ;;  %v1907_v56 = vadd.f32 %v1905_v39, %v1902_v37  ;;  %v2102_v58 = vpop.permute.xlu0 %2101 }
 0x2d2   : > { %v2105_v61 = vsel %vm340_vm5, %v2102_v58, %v2104_v40  ;;  %v2106_v17 = vsel %vm340_vm5, %v2104_v40, %v2102_v58  ;;  %v1676_v58 = vstv %s4185_s11  ;;  %s4349_s11 = sld [smem:[#allocation7 + $0x60]] }
 0x2d3   : > { %v1885_v62 = vadd.f32 %v1884_v53, %v1842_v52  ;;  %v1910_v1 = vcombine.low %v1906_v55, %v1907_v56  ;;  %v2116_v4 = vmul.f32 %v2115_v6, %v2106_v17  ;;  %v2117_v21 = vmul.f32 %v2115_v6, %v2105_v61 }
 0x2d4   : > { %v2230_v53 = vmul.f32 %v2229_v34, %v3933_v49  ;;  %v2233_v55 = vmul.f32 %v2232_v31, %v3941_v51  ;;  %v2234_v61 = vmul.f32 %v2232_v31, %v3939_v8  ;;  %v1674_v6 = vmul.f32 %v1673_v35, %v4086_v22 }
 0x2d5   : > { %v2110_v9 = vpop.permute.xlu1 %2109  ;;  %v1917_v3 = vrot.slane %v1910_v1, %v3159_v63  ;;  %v2108_v59 = vpop.permute.xlu0 %2107  ;;  %v1675_v51 = vmul.f32 %v1673_v35, %v4090_v23 }
 0x2d6   : > { %v2111_v13 = vsel %vm340_vm5, %v2108_v59, %v2110_v9  ;;  %v2112_v60 = vsel %vm340_vm5, %v2110_v9, %v2108_v59  ;;  %v2235_v59 = vadd.f32 %v2233_v55, %v2230_v53  ;;  %v1718_v55 = vstv %s4231_s5  ;;  %s2632_s5 = sshll.u32 %s2901_s15, 5  ;;  %s2929_s15 = smov [#allocation10]  }
 0x2d7   : > { %v1924_v50 = vrot.slane %v1917_v3, %v3159_v63  ;;  %v2119_v41 = vmul.f32 %v2118_v44, %v2112_v60  ;;  %v2120_v7 = vmul.f32 %v2118_v44, %v2111_v13 }
 0x2d9   : > { %v2146_v24 = vpop.permute.xlu1 %2145  ;;  %v1926_v10 = vmul.f32 %v3806_v16, %v1924_v50  ;;  %v2121_v32 = vadd.f32 %v2119_v41, %v2116_v4  ;;  %v2122_v43 = vadd.f32 %v2120_v7, %v2117_v21  ;;  %v2144_v15 = vpop.permute.xlu0 %2143  ;;  %v2236_v4 = vadd.f32 %v2234_v61, %v2231_v54 }
 0x2da   : > { %v2147_v28 = vsel %vm383_vm6, %v2144_v15, %v2146_v24  ;;  %v2148_v25 = vsel %vm383_vm6, %v2146_v24, %v2144_v15  ;;  %v2199_v50 = vstv %s4205_s7  ;;  %s4358_s7 = sld [smem:[#allocation7 + $0x30]] }
 0x2db   : > { %v1927_v12 = vadd.f32 %v1926_v10, %v1885_v62  ;;  %v2125_v29 = vcombine.low %v2121_v32, %v2122_v43  ;;  %v2158_v48 = vmul.f32 %v2157_v27, %v2148_v25  ;;  %v2159_v39 = vmul.f32 %v2157_v27, %v2147_v28 }
 0x2dc   : > { %v2202_v10 = vstv %s4211_s21  ;;  %v2239_v32 = vcombine.low %v2235_v59, %v2236_v4  ;;  %s4367_s21 = sld [smem:[#allocation7 + $0x61]] }
 0x2dd   : > { %v2152_v19 = vpop.permute.xlu1 %2151  ;;  %v2132_v2 = vrot.slane %v2125_v29, %v3159_v63  ;;  %v2150_v11 = vpop.permute.xlu0 %2149  ;;  %v4198_v42 = vadd.f32 %v1956_v30, %v1927_v12 }
 0x2de   : > { %v2153_v18 = vsel %vm383_vm6, %v2150_v11, %v2152_v19  ;;  %v2154_v37 = vsel %vm383_vm6, %v2152_v19, %v2150_v11 }
 0x2df   : > { %v2139_v38 = vrot.slane %v2132_v2, %v3159_v63  ;;  %v2161_v40 = vmul.f32 %v2160_v20, %v2154_v37  ;;  %v2162_v52 = vmul.f32 %v2160_v20, %v2153_v18  ;;  %v2246_v18 = vrot.slane %v2239_v32, %v3159_v63 }
 0x2e1   : > { %v1668_v56 = vpop.permute.xlu1 %1667  ;;  %v2163_v17 = vadd.f32 %v2161_v40, %v2158_v48  ;;  %v2164_v62 = vadd.f32 %v2162_v52, %v2159_v39  ;;  %v1666_v1 = vpop.permute.xlu0 %1665  ;;  %v2141_v43 = vmul.f32 %v3798_v5, %v2139_v38  ;;  %v1715_v39 = vstv %s4228_s28  ;;  %s2526_s28 = sshll.u32 %s3116_s26, 1 }
 0x2e2   : > { %v1669_v9 = vsel %vm499_vm8, %v1666_v1, %v1668_v56  ;;  %v1670_v49 = vsel %vm499_vm8, %v1668_v56, %v1666_v1 }
 0x2e3   : > { %v2167_v44 = vcombine.low %v2163_v17, %v2164_v62  ;;  %v1677_v3 = vmul.f32 %v1676_v58, %v1669_v9  ;;  %v1678_v47 = vmul.f32 %v1676_v58, %v1670_v49  ;;  %v2253_v17 = vrot.slane %v2246_v18, %v3159_v63 }
 0x2e5   : > { %v2188_v8 = vpop.permute.xlu1 %2187  ;;  %v2174_v13 = vrot.slane %v2167_v44, %v3159_v63  ;;  %v1679_v60 = vadd.f32 %v1677_v3, %v1674_v6  ;;  %v1680_v14 = vadd.f32 %v1678_v47, %v1675_v51  ;;  %v2186_v22 = vpop.permute.xlu0 %2185  ;;  %v2255_v59 = vmul.f32 %v3815_v26, %v2253_v17 }
 0x2e6   : > { %v2189_v7 = vsel %vm426_vm7, %v2186_v22, %v2188_v8  ;;  %v2190_v23 = vsel %vm426_vm7, %v2188_v8, %v2186_v22  ;;  %v2014_v17 = vstv %s4289_s24  ;;  %s4398_s24 = scalar_lea.hbm %s4450_s3, %s2632_s5 }
 0x2e7   : > { %v2181_v21 = vrot.slane %v2174_v13, %v3159_v63  ;;  %v1683_v41 = vcombine.low %v1679_v60, %v1680_v14  ;;  %v2200_v12 = vmul.f32 %v2199_v50, %v2190_v23  ;;  %v2201_v29 = vmul.f32 %v2199_v50, %v2189_v7 }
 0x2e8   : > { %v1972_v13 = vstv %s4249_s10  ;;  %v1975_v50 = vstv %s4254_s30  ;;  %s231_s10 = scalar_lea.vmem [#allocation10], %s2526_s28 }
 0x2e9   : > { %v2194_v24 = vpop.permute.xlu1 %2193  ;;  %v2183_v15 = vmul.f32 %v3794_v0, %v2181_v21  ;;  %v1690_v28 = vrot.slane %v1683_v41, %v3159_v63  ;;  %v2192_v25 = vpop.permute.xlu0 %2191  ;;  %v4241_v0 = vld [vmem:[#allocation8 + $0x13] ss:$8 sm:$0x3]  ;;  %s2413_s30 = sshll.u32 %s231_s10, 4  ;;  %s4400_s30 = int_to_ptr.vmem [resolvable:$true] %s2413_s30 }
 0x2ea   : > { %v2195_v27 = vsel %vm426_vm7, %v2192_v25, %v2194_v24  ;;  %v2196_v30 = vsel %vm426_vm7, %v2194_v24, %v2192_v25 }
 0x2eb   : > { %v2184_v19 = vadd.f32 %v2183_v15, %v2141_v43  ;;  %v1697_v20 = vrot.slane %v1690_v28, %v3159_v63  ;;  %v2203_v34 = vmul.f32 %v2202_v10, %v2196_v30  ;;  %v2204_v5 = vmul.f32 %v2202_v10, %v2195_v27  ;;  %v4283_v28 = vld [vmem:[#allocation8 + $0x14] ss:$8 sm:$0x3] }
 0x2ed   : > { %v1704_v31 = vpop.permute.xlu1 %1703  ;;  %v1699_v2 = vmul.f32 %v4241_v0, %v1697_v20  ;;  %v2205_v11 = vadd.f32 %v2203_v34, %v2200_v12  ;;  %v2206_v35 = vadd.f32 %v2204_v5, %v2201_v29  ;;  %v1702_v48 = vpop.permute.xlu0 %1701  ;;  %v1757_v20 = vstv %s4268_s20 }
 0x2ee   : > { %v1705_v40 = vsel %vm542_vm9, %v1702_v48, %v1704_v31  ;;  %v1706_v52 = vsel %vm542_vm9, %v1704_v31, %v1702_v48 }
 0x2ef   : > { %v1700_v37 = vadd.f32 %v1699_v2, %v4119_v57  ;;  %v2209_v38 = vcombine.low %v2205_v11, %v2206_v35  ;;  %v1716_v54 = vmul.f32 %v1715_v39, %v1705_v40  ;;  %v1717_v1 = vmul.f32 %v1715_v39, %v1706_v52 }
 0x2f0   : > { %v1760_v2 = vstv %s4273_s22 }
 0x2f1   : > { %v1710_v53 = vpop.permute.xlu1 %1709  ;;  %v2216_v56 = vrot.slane %v2209_v38, %v3159_v63  ;;  %v1708_v58 = vpop.permute.xlu0 %1707 }
 0x2f2   : > { %v1711_v57 = vsel %vm542_vm9, %v1708_v58, %v1710_v53  ;;  %v1712_v61 = vsel %vm542_vm9, %v1710_v53, %v1708_v58 }
 0x2f3   : > { %v2223_v62 = vrot.slane %v2216_v56, %v3159_v63  ;;  %v1719_v6 = vmul.f32 %v1718_v55, %v1711_v57  ;;  %v1720_v9 = vmul.f32 %v1718_v55, %v1712_v61 }
 0x2f5   : > { %v1961_v49 = vpop.permute.xlu1 %1960  ;;  %v2225_v51 = vmul.f32 %v3806_v16, %v2223_v62  ;;  %v1721_v44 = vadd.f32 %v1719_v6, %v1716_v54  ;;  %v1722_v3 = vadd.f32 %v1720_v9, %v1717_v1  ;;  %v1959_v47 = vpop.permute.xlu0 %1958  ;;  %v2017_v9 = vstv %s4294_s25  ;;  %s2399_s25 = scalar_lea.sflag [#allocation5], %s3116_s26 }
 0x2f6   : > { %v1962_v60 = vsel %vm499_vm8, %v1959_v47, %v1961_v49  ;;  %v1963_v14 = vsel %vm499_vm8, %v1961_v49, %v1959_v47 }
 0x2f7   : > { %v2226_v8 = vadd.f32 %v2225_v51, %v2184_v19  ;;  %v1725_v4 = vcombine.low %v1721_v44, %v1722_v3  ;;  %v1973_v26 = vmul.f32 %v1972_v13, %v1962_v60  ;;  %v1974_v10 = vmul.f32 %v1972_v13, %v1963_v14 }
 0x2f9   : > { %v1967_v22 = vpop.permute.xlu1 %1966  ;;  %v1732_v16 = vrot.slane %v1725_v4, %v3159_v63  ;;  %v1965_v21 = vpop.permute.xlu0 %1964  ;;  %v4276_v41 = vadd.f32 %v2255_v59, %v2226_v8 }
 0x2fa   : > { %v1968_v7 = vsel %vm499_vm8, %v1965_v21, %v1967_v22  ;;  %v1969_v23 = vsel %vm499_vm8, %v1967_v22, %v1965_v21  ;;  %v2271_v21 = vstv %s4303_s29  ;;  %s2819_s29 = scalar_lea.vmem %s4400_s30, 32 }
 0x2fb   : > { %v1739_v24 = vrot.slane %v1732_v16, %v3159_v63  ;;  %v1976_v32 = vmul.f32 %v1975_v50, %v1968_v7  ;;  %v1977_v43 = vmul.f32 %v1975_v50, %v1969_v23  ;;  %v1786_v16 = vld [vmem:[#allocation8 + $0x4] ss:$8 sm:$0x3]  ;;  %p2820_p8 = scmp.ne.s32.totalorder %s4400_s30, %s2819_s29 }
 0x2fd   : > { %v1746_v15 = vpop.permute.xlu1 %1745  ;;  %v1741_v25 = vmul.f32 %v4283_v28, %v1739_v24  ;;  %v1978_v12 = vadd.f32 %v1976_v32, %v1973_v26  ;;  %v1979_v29 = vadd.f32 %v1977_v43, %v1974_v10  ;;  %v1744_v27 = vpop.permute.xlu0 %1743  ;;  %v2274_v32 = vstv %s4312_s27  ;;  %p2821_p10 = pnand %p2820_p8, %p4465_p2  ;;  %s2823_s27 = sshll.u32 %s2929_s15, 4  ;;  %s2824_s27 = int_to_ptr.vmem [resolvable:$false] %s2823_s27 }
 0x2fe   : > { %v1747_v34 = vsel %vm585_vm10, %v1744_v27, %v1746_v15  ;;  %v1748_v5 = vsel %vm585_vm10, %v1746_v15, %v1744_v27  ;;  %p2826_p0 = scmp.lt.s32.totalorder %s4400_s30, %s2824_s27 }
 0x2ff   : > { %v1742_v30 = vadd.f32 %v1741_v25, %v1700_v37  ;;  %v1982_v19 = vcombine.low %v1978_v12, %v1979_v29  ;;  %v1758_v48 = vmul.f32 %v1757_v20, %v1747_v34  ;;  %v1759_v39 = vmul.f32 %v1757_v20, %v1748_v5  ;;  %p2822_p13 = pneg %p2821_p10 }
 0x301   : > { %v1752_v31 = vpop.permute.xlu1 %1751  ;;  %v1989_v11 = vrot.slane %v1982_v19, %v3159_v63  ;;  %v1750_v35 = vpop.permute.xlu0 %1749 }
 0x302   : > { %v1753_v18 = vsel %vm585_vm10, %v1750_v35, %v1752_v31  ;;  %v1754_v37 = vsel %vm585_vm10, %v1752_v31, %v1750_v35 }
 0x303   : > { %v1996_v38 = vrot.slane %v1989_v11, %v3159_v63  ;;  %v1761_v40 = vmul.f32 %v1760_v2, %v1753_v18  ;;  %v1762_v52 = vmul.f32 %v1760_v2, %v1754_v37 }
 0x305   : > { %v2003_v53 = vpop.permute.xlu1 %2002  ;;  %v1998_v55 = vmul.f32 %v4241_v0, %v1996_v38  ;;  %v1763_v56 = vadd.f32 %v1761_v40, %v1758_v48  ;;  %v1764_v58 = vadd.f32 %v1762_v52, %v1759_v39  ;;  %v2001_v54 = vpop.permute.xlu0 %2000  ;;  %v2056_v38 = vstv %s4326_s18  ;;  %s2825_s18 = scalar_lea.vmem %s2824_s27, 64 }
 0x306   : > { %v2004_v62 = vsel %vm542_vm9, %v2001_v54, %v2003_v53  ;;  %v2005_v1 = vsel %vm542_vm9, %v2003_v53, %v2001_v54  ;;  %v2059_v52 = vstv %s4329_s19  ;;  %p2827_p6 = scmp.lt.s32.totalorder %s2825_s18, %s2819_s29 }
 0x307   : > { %v1999_v57 = vadd.f32 %v1998_v55, %v4198_v42  ;;  %v1767_v61 = vcombine.low %v1763_v56, %v1764_v58  ;;  %v2015_v44 = vmul.f32 %v2014_v17, %v2004_v62  ;;  %v2016_v59 = vmul.f32 %v2014_v17, %v2005_v1 }
 0x308   : > { %p2828_p3 = por %p2827_p6, %p2826_p0 }
 0x309   : > { %v2009_v6 = vpop.permute.xlu1 %2008  ;;  %v1774_v49 = vrot.slane %v1767_v61, %v3159_v63  ;;  %v2007_v51 = vpop.permute.xlu0 %2006 }
 0x30a   : > { %v2010_v42 = vsel %vm542_vm9, %v2007_v51, %v2009_v6  ;;  %v2011_v3 = vsel %vm542_vm9, %v2009_v6, %v2007_v51  ;;  %p2829_p11 = pnand %p2828_p3, %p2822_p13 }
 0x30b   : > { %v1781_v47 = vrot.slane %v1774_v49, %v3159_v63  ;;  %v2018_v8 = vmul.f32 %v2017_v9, %v2010_v42  ;;  %v2019_v4 = vmul.f32 %v2017_v9, %v2011_v3  ;;  %v2313_v3 = vstv %s4344_s8 }
 0x30d   : > { %v2260_v13 = vpop.permute.xlu1 %2259  ;;  %v1783_v60 = vmul.f32 %v3912_v36, %v1781_v47  ;;  %v2020_v14 = vadd.f32 %v2018_v8, %v2015_v44  ;;  %v2021_v22 = vadd.f32 %v2019_v4, %v2016_v59  ;;  %v2258_v50 = vpop.permute.xlu0 %2257  ;;  %v2316_v4 = vstv %s4349_s11 }
 0x30e   : > { %v2261_v23 = vsel %vm499_vm8, %v2258_v50, %v2260_v13  ;;  %v2262_v24 = vsel %vm499_vm8, %v2260_v13, %v2258_v50 }
 0x30f   : > { %v1784_v26 = vadd.f32 %v1783_v60, %v1742_v30  ;;  %v2024_v7 = vcombine.low %v2020_v14, %v2021_v22  ;;  %v2272_v12 = vmul.f32 %v2271_v21, %v2261_v23  ;;  %v2273_v29 = vmul.f32 %v2271_v21, %v2262_v24 }
 0x311   : > { %v2266_v10 = vpop.permute.xlu1 %2265  ;;  %v1787_v43 = vmul.f32 %v1786_v16, %v1784_v26  ;;  %v2031_v15 = vrot.slane %v2024_v7, %v3159_v63  ;;  %v2264_v25 = vpop.permute.xlu0 %2263 }
 0x312   : > { %v2267_v27 = vsel %vm499_vm8, %v2264_v25, %v2266_v10  ;;  %v2268_v30 = vsel %vm499_vm8, %v2266_v10, %v2264_v25 }
 0x313   : > { %v4337_v19 = vadd.f32 %v1787_v43, %v3920_v46  ;;  %v2038_v20 = vrot.slane %v2031_v15, %v3159_v63  ;;  %v2275_v34 = vmul.f32 %v2274_v32, %v2267_v27  ;;  %v2276_v5 = vmul.f32 %v2274_v32, %v2268_v30  ;;  %v2085_v32 = vld [vmem:[#allocation8 + $0x5] ss:$8 sm:$0x3] }
 0x314   : > { %v2355_v43 = vstv %s4358_s7  ;;  %v2358_v30 = vstv %s4367_s21 }
 0x315   : > { %v2045_v31 = vpop.permute.xlu1 %2044  ;;  %v2040_v2 = vmul.f32 %v4283_v28, %v2038_v20  ;;  %v2277_v11 = vadd.f32 %v2275_v34, %v2272_v12  ;;  %v2278_v35 = vadd.f32 %v2276_v5, %v2273_v29  ;;  %v2043_v48 = vpop.permute.xlu0 %2042 }
 0x316   : > { %v2046_v39 = vsel %vm585_vm10, %v2043_v48, %v2045_v31  ;;  %v2047_v46 = vsel %vm585_vm10, %v2045_v31, %v2043_v48 }
 0x317   : > { %v2041_v18 = vadd.f32 %v2040_v2, %v1999_v57  ;;  %v2281_v37 = vcombine.low %v2277_v11, %v2278_v35  ;;  %v2057_v56 = vmul.f32 %v2056_v38, %v2046_v39  ;;  %v2058_v61 = vmul.f32 %v2056_v38, %v2047_v46 }
 0x319   : > { %v2051_v40 = vpop.permute.xlu1 %2050  ;;  %v2288_v53 = vrot.slane %v2281_v37, %v3159_v63  ;;  %v2049_v55 = vpop.permute.xlu0 %2048 }
 0x31a   : > { %v2052_v58 = vsel %vm585_vm10, %v2049_v55, %v2051_v40  ;;  %v2053_v54 = vsel %vm585_vm10, %v2051_v40, %v2049_v55 }
 0x31b   : > { %v2295_v57 = vrot.slane %v2288_v53, %v3159_v63  ;;  %v2060_v17 = vmul.f32 %v2059_v52, %v2052_v58  ;;  %v2061_v62 = vmul.f32 %v2059_v52, %v2053_v54  ;;  %v2384_v58 = vld [vmem:[#allocation8 + $0x6] ss:$8 sm:$0x3] }
 0x31d   : > { %v2302_v1 = vpop.permute.xlu1 %2301  ;;  %v2297_v6 = vmul.f32 %v4241_v0, %v2295_v57  ;;  %v2062_v9 = vadd.f32 %v2060_v17, %v2057_v56  ;;  %v2063_v49 = vadd.f32 %v2061_v62, %v2058_v61  ;;  %v2300_v51 = vpop.permute.xlu0 %2299 }
 0x31e   : > { %v2303_v47 = vsel %vm542_vm9, %v2300_v51, %v2302_v1  ;;  %v2304_v59 = vsel %vm542_vm9, %v2302_v1, %v2300_v51 }
 0x31f   : > { %v2298_v44 = vadd.f32 %v2297_v6, %v4276_v41  ;;  %v2066_v42 = vcombine.low %v2062_v9, %v2063_v49  ;;  %v2314_v60 = vmul.f32 %v2313_v3, %v2303_v47  ;;  %v2315_v50 = vmul.f32 %v2313_v3, %v2304_v59 }
 0x321   : > { %v2308_v8 = vpop.permute.xlu1 %2307  ;;  %v2073_v0 = vrot.slane %v2066_v42, %v3159_v63  ;;  %v2306_v13 = vpop.permute.xlu0 %2305 }
 0x322   : > { %v2309_v41 = vsel %vm542_vm9, %v2306_v13, %v2308_v8  ;;  %v2310_v14 = vsel %vm542_vm9, %v2308_v8, %v2306_v13 }
 0x323   : > { %v2080_v22 = vrot.slane %v2073_v0, %v3159_v63  ;;  %v2317_v16 = vmul.f32 %v2316_v4, %v2309_v41  ;;  %v2318_v21 = vmul.f32 %v2316_v4, %v2310_v14 }
 0x325   : > { %v2344_v26 = vpop.permute.xlu1 %2343  ;;  %v2082_v7 = vmul.f32 %v3912_v36, %v2080_v22  ;;  %v2319_v23 = vadd.f32 %v2317_v16, %v2314_v60  ;;  %v2320_v24 = vadd.f32 %v2318_v21, %v2315_v50  ;;  %v2342_v10 = vpop.permute.xlu0 %2341 }
 0x326   : > { %v2345_v12 = vsel %vm585_vm10, %v2342_v10, %v2344_v26  ;;  %v2346_v29 = vsel %vm585_vm10, %v2344_v26, %v2342_v10 }
 0x327   : > { %v2083_v15 = vadd.f32 %v2082_v7, %v2041_v18  ;;  %v2323_v25 = vcombine.low %v2319_v23, %v2320_v24  ;;  %v2356_v36 = vmul.f32 %v2355_v43, %v2345_v12  ;;  %v2357_v31 = vmul.f32 %v2355_v43, %v2346_v29 }
 0x329   : > { %v2350_v27 = vpop.permute.xlu1 %2349  ;;  %v2086_v20 = vmul.f32 %v2085_v32, %v2083_v15  ;;  %v2330_v34 = vrot.slane %v2323_v25, %v3159_v63  ;;  %v2348_v5 = vpop.permute.xlu0 %2347 }
 0x32a   : > { %v2351_v2 = vsel %vm585_vm10, %v2348_v5, %v2350_v27  ;;  %v2352_v11 = vsel %vm585_vm10, %v2350_v27, %v2348_v5 }
 0x32b   : > { %v2087_v35 = vadd.f32 %v2086_v20, %v4337_v19  ;;  %v2337_v48 = vrot.slane %v2330_v34, %v3159_v63  ;;  %v2359_v18 = vmul.f32 %v2358_v30, %v2351_v2  ;;  %v2360_v37 = vmul.f32 %v2358_v30, %v2352_v11 }
 0x32d   : > { %v2339_v38 = vmul.f32 %v4283_v28, %v2337_v48  ;;  %v2361_v39 = vadd.f32 %v2359_v18, %v2356_v36  ;;  %v2362_v46 = vadd.f32 %v2360_v37, %v2357_v31 }
 0x32f   : > { %v2340_v40 = vadd.f32 %v2339_v38, %v2298_v44  ;;  %v2365_v52 = vcombine.low %v2361_v39, %v2362_v46 }
 0x331   : > { %v2372_v53 = vrot.slane %v2365_v52, %v3159_v63 }
 0x333   : > { %v2379_v55 = vrot.slane %v2372_v53, %v3159_v63 }
 0x335   : > { %v2381_v56 = vmul.f32 %v2745_v45, %v2379_v55 }
 0x337   : > { %v2382_v19 = vadd.f32 %v2381_v56, %v2340_v40 }
 0x339   : > { %v2385_v54 = vmul.f32 %v2384_v58, %v2382_v19 }
 0x33b   : > { %v2386_v57 = vadd.f32 %v2385_v54, %v2087_v35 }
 0x33d   : > { %v2625_v61 = vmul.f32 -1.442695, %v2386_v57 }
 0x33f   : > { %2732 = vpow2.f32 %v2625_v61 }
 0x349   : > { %v2733_v28 = vpop.eup %2732 }
 0x34a   : > { %v2390_v17 = vadd.f32 1.0, %v2733_v28 }
 0x34c   : > { %2734 = vrcp.f32 %v2390_v17 }
 0x356   : > { %v2735_v63 = vpop.eup %2734 }
 0x357   : > { %2397 = vst.msk [vmem:[%s231_s10] sm:$0x3] %vm2395_vm14, %v2735_v63 }
 0x358   : > { %2832 = shalt.err (!%p2829_p11)
}
 0x359   : > { %s2833_s26 = scalar_lea.hbm %s4398_s24, 32  ;;  %s2837_s11 = scalar_lea.hbm %s4450_s3, 64 }
 0x35a   : > { %p2834_p7 = scmp.ne.s32.totalorder %s4398_s24, %s2833_s26  ;;  %p2838_p4 = scmp.lt.u32.totalorder %s4398_s24, %s4450_s3 }
 0x35b   : > { %p2839_p9 = scmp.lt.u32.totalorder %s2837_s11, %s2833_s26  ;;  %p2841_p8 = scmp.lt.u32.totalorder %s2833_s26, %s4398_s24 }
 0x35c   : > { %p2835_p12 = pnand %p2834_p7, %p4465_p2 }
 0x35d   : > { %p2840_p5 = por %p2839_p9, %p2838_p4 }
 0x35e   : > { %p2836_p1 = pneg %p2835_p12 }
 0x35f   : > { %p2842_p10 = por %p2841_p8, %p2840_p5 }
 0x361   : > { %p2843_p13 = pnand %p2842_p10, %p2836_p1 }
 0x363   : > { %2846 = shalt.err (!%p2843_p13)
}
 0x364   : > { %2643 = dma.vmem_to_hbm [thread:$0]  (%p4465_p2), %s4400_s30, 32, %s4398_s24, %s2399_s25  }
 0x365 PF: > { %s2425_s28 = sand.u32 1, %s2889_s12   ;;  %p4466_p0 = scmp.ne.s32.totalorder %s4458_s23, 0 }
 0x366   : > { %p4467_p6 = scmp.ge.s32.totalorder %s2909_s17, 2  ;;  %s2426_s5 = scalar_lea.sflag [#allocation5], %s2425_s28 }
 0x368   : > { %p2657_p3 = pnand %p4467_p6, %p4466_p0 }
 0x36a   : > { %2884 = dma.done.wait (!%p2657_p3), %s2426_s5, 32  }
 0x36b   : > { %2886 = vsyncadd (!%p2657_p3), %s2426_s5, 4294967264  ;;  %s21_s17 = sadd.s32 1, %s2909_s17   ;;  %s4468_s12 = smov %s2893_s13 }
 0x36c   : > { %p18_p11 = scmp.ge.s32.totalorder %s21_s17, 4   ;;  %s4469_s13 = smov %s2897_s14 }
 0x36d   : > { %s4470_s14 = smov %s3073_s9  ;;  %s4471_s15 = smov %s2905_s16 }
 0x36e   : > { %s4472_s16 = smov %s4474_s4  ;;  %20 = sbr.rel (!%p18_p11) target bundleno = 8 (0x8), region = 100 }
 0x375   :  { %2431 = vsyncpa [#allocation4], 1 }
 0x376   :  { %2433 = vsyncpa [#allocation4 + $0x1], 1 }
 0x377   :  { %2434 = vsyncpa [#allocation9], 1 }
 0x378   :  { %2435 = vsyncpa [#allocation5], 1 }
 0x379   :  { %2437 = vsyncpa [#allocation5 + $0x1], 1 }
 0x37a   :  { %2438 = vsyncpa [#allocation6], 1 }
 0x37b   :  { %2440 = vsyncpa [#allocation6 + $0x1], 1 }

</bundles_post_ra>
